<compile_context>
chip_gen: v7x
topology: tpu7x:2x2x1
jax: 0.10.0
libtpu: 0.0.40
codegen_flags: <defaults>
</compile_context>

<pallas_src>
import functools

import jax
import jax.numpy as jnp
import numpy as np
from jax.experimental import pallas as pl
from jax.experimental.pallas import tpu as pltpu


def gather_embed_kernel(seq_len, ids_ref, pos_ref, tok_hbm, x_out_ref,
                        x_f32, sems):
    """Row-gather token embeddings from HBM + one vectorized positional add.

    ids_ref  : SMEM (M,) int32   -- scalar-prefetched token ids (row-major B,S)
    pos_ref  : VMEM (S, E) f32   -- positional embeddings for this sequence
    tok_hbm  : ANY  (V, E) f32   -- token embedding table, left in HBM
    x_out_ref: VMEM (M, E)       -- hidden state in compute dtype (bf16)
    x_f32    : VMEM scratch (M, E) f32
    sems     : DMA semaphores (M,)
    """
    n_rows = x_f32.shape[0]

    def row_copy(i):
        return pltpu.make_async_copy(
            tok_hbm.at[pl.ds(ids_ref[i], 1), :],   # one (1, E) row from HBM
            x_f32.at[pl.ds(i, 1), :],
            sems.at[i])

    # Issue all row gathers first, then wait: the copies overlap each other.
    for i in range(n_rows):
        row_copy(i).start()
    for i in range(n_rows):
        row_copy(i).wait()

    # Single full-width VPU add over the whole (M, E) tile (pos broadcast over
    # the batch), instead of per-row scalar-indexed adds.
    batch = n_rows // seq_len
    pos_tiled = jnp.tile(pos_ref[...], (batch, 1))               # (M, E)
    # drop_emb(rate=0.0), DummyTransformerBlock, DummyLayerNorm: identities.
    # TODO(synk): training-mode dropout with drop_rate > 0 not implemented.
    x_out_ref[...] = (x_f32[...] + pos_tiled).astype(x_out_ref.dtype)


def out_head_kernel(x_ref, w_ref, out_ref):
    """One vocab tile of logits = x @ W_tile (bf16 operands, f32 accumulate)."""
    out_ref[...] = jnp.dot(x_ref[...], w_ref[...],
                           preferred_element_type=jnp.float32)


def _round_up(x, m):
    return (x + m - 1) // m * m


def _pick_vocab_tile(m_rows, emb_dim, vocab, compute_itemsize,
                     budget_bytes=12 * 1024 * 1024, tn_max=2048):
    """Largest multiple-of-128 vocab tile whose double-buffered weight/output
    tiles plus the resident activation fit a conservative VMEM budget
    (safe under v5e's 16 MiB scoped default and v7x's 64 MiB VMEM)."""
    tn = min(tn_max, _round_up(vocab, 128))
    while tn > 128:
        need = (2 * emb_dim * tn * compute_itemsize          # weight dbl-buffer
                + 2 * m_rows * tn * 4                        # f32 logits dbl-buffer
                + 2 * m_rows * emb_dim * compute_itemsize)   # resident activation
        if need <= budget_bytes:
            break
        tn //= 2
    return max(tn, 128)


def dummy_gpt_forward(in_idx, tok_emb, pos_emb, w_out,
                      compute_dtype=jnp.bfloat16):
    """Pallas forward of DummyGPTModel.

    in_idx : (B, S) int32 token ids (assumed < vocab_size; not bounds-checked)
    tok_emb: (V, E) f32 token embedding table
    pos_emb: (CTX, E) f32 positional embedding table
    w_out  : (V, E) f32  -- nn.Linear(E, V, bias=False).weight (PyTorch layout)
    """
    B, S = in_idx.shape
    V, E = tok_emb.shape
    M = B * S
    ids = in_idx.reshape(-1).astype(jnp.int32)
    pos = pos_emb[:S]                                          # (S, E)

    # ---- Kernel A: embedding gather + positional add ------------------------
    x = pl.pallas_call(
        functools.partial(gather_embed_kernel, S),
        out_shape=jax.ShapeDtypeStruct((M, E), compute_dtype),
        grid_spec=pltpu.PrefetchScalarGridSpec(
            num_scalar_prefetch=1,
            grid=(1,),
            in_specs=[
                pl.BlockSpec((S, E), lambda i, ids_sref: (0, 0)),  # pos rows
                pl.BlockSpec(memory_space=pl.ANY),                 # tok table (HBM)
            ],
            out_specs=pl.BlockSpec((M, E), lambda i, ids_sref: (0, 0)),
            scratch_shapes=[pltpu.VMEM((M, E), jnp.float32),
                            pltpu.SemaphoreType.DMA((M,))],
        ),
        compiler_params=pltpu.CompilerParams(
            dimension_semantics=("arbitrary",)),
    )(ids, pos, tok_emb)

    # ---- Kernel B: vocab-tiled out_head matmul -------------------------------
    itemsize = jnp.dtype(compute_dtype).itemsize
    tn = _pick_vocab_tile(M, E, V, itemsize)
    V_pad = _round_up(V, tn)

    # x @ W.T  ==  x @ w_t  with  w_t = W.T  (pre-transposed, bf16, zero-padded)
    w_t = w_out.T.astype(compute_dtype)                        # (E, V)
    if V_pad != V:
        w_t = jnp.pad(w_t, ((0, 0), (0, V_pad - V)))

    n_tiles = V_pad // tn
    logits_flat = pl.pallas_call(
        out_head_kernel,
        out_shape=jax.ShapeDtypeStruct((M, V_pad), jnp.float32),
        grid_spec=pltpu.PrefetchScalarGridSpec(
            num_scalar_prefetch=0,
            grid=(n_tiles,),
            in_specs=[
                pl.BlockSpec((M, E), lambda j: (0, 0)),    # activation (resident)
                pl.BlockSpec((E, tn), lambda j: (0, j)),   # weight tile (streamed)
            ],
            out_specs=pl.BlockSpec((M, tn), lambda j: (0, j)),
        ),
        compiler_params=pltpu.CompilerParams(
            dimension_semantics=("parallel",),             # 2-TC split on v7x
            vmem_limit_bytes=32 * 1024 * 1024),
        cost_estimate=pl.CostEstimate(
            flops=2 * M * E * V_pad,
            transcendentals=0,
            bytes_accessed=(E * V_pad * itemsize           # weight
                            + M * V_pad * 4                # logits
                            + M * E * itemsize)),          # activation
    )(x, w_t)

    return logits_flat[:, :V].reshape(B, S, V)


def reference_forward(in_idx, tok_emb, pos_emb, w_out,
                      compute_dtype=jnp.float32):
    B, S = in_idx.shape
    tok = jnp.take(tok_emb, in_idx, axis=0)                    # (B, S, E)
    x = (tok + pos_emb[:S][None, :, :]).astype(compute_dtype)
    w_t = w_out.T.astype(compute_dtype)                        # (E, V)
    return jnp.einsum("bse,ev->bsv", x, w_t,
                      preferred_element_type=jnp.float32)


if __name__ == "__main__":
    # Small, TPU-tile-friendly config consistent with the module's __init__.
    cfg = dict(vocab_size=8192, context_length=64, emb_dim=256,
               drop_rate=0.0, n_layers=2)
    B, S = 2, 16

    key = jax.random.PRNGKey(0)
    k_tok, k_pos, k_w, k_idx = jax.random.split(key, 4)

    tok_emb = jax.random.normal(k_tok, (cfg["vocab_size"], cfg["emb_dim"]),
                                dtype=jnp.float32) * 0.02
    pos_emb = jax.random.normal(k_pos, (cfg["context_length"], cfg["emb_dim"]),
                                dtype=jnp.float32) * 0.02
    # nn.Linear(emb_dim, vocab_size, bias=False).weight has shape (vocab, emb).
    w_out = jax.random.normal(k_w, (cfg["vocab_size"], cfg["emb_dim"]),
                              dtype=jnp.float32) * 0.02
    in_idx = jax.random.randint(k_idx, (B, S), 0, cfg["vocab_size"],
                                dtype=jnp.int32)

    logits = dummy_gpt_forward(in_idx, tok_emb, pos_emb, w_out)
    logits = jax.block_until_ready(logits)
    assert logits.shape == (B, S, cfg["vocab_size"])

    # Primary check: exact-path reference using the same bf16 operand cast.
    ref_bf16 = reference_forward(in_idx, tok_emb, pos_emb, w_out,
                                 compute_dtype=jnp.bfloat16)
    np.testing.assert_allclose(np.asarray(logits), np.asarray(ref_bf16),
                               rtol=1e-2, atol=1e-5)

    # Secondary sanity check against the full-f32 module semantics.
    ref_f32 = reference_forward(in_idx, tok_emb, pos_emb, w_out,
                                compute_dtype=jnp.float32)
    np.testing.assert_allclose(np.asarray(logits), np.asarray(ref_f32),
                               rtol=5e-2, atol=2e-3)

    print("KERNEL_OK")
</pallas_src>

<mosaic_0001>
module attributes {stable_mosaic.version = 11 : i64} {
  func.func @gather_embed_kernel(%arg0: i32, %arg1: memref<32xi32, #tpu.memory_space<smem>>, %arg2: memref<16x256xf32, #tpu.memory_space<vmem>>, %arg3: memref<8192x256xf32, #tpu.memory_space<any>>, %arg4: memref<32x256xbf16, #tpu.memory_space<vmem>>, %arg5: memref<32x256xf32, #tpu.memory_space<vmem>>, %arg6: memref<32x!tpu.dma_semaphore, #tpu.memory_space<semaphore_mem>>) attributes {dimension_semantics = [#tpu.dimension_semantics<arbitrary>], iteration_bounds = array<i64: 1>, scalar_prefetch = 1 : i64, scratch_operands = 2 : i64, tpu.core_type = #tpu.core_type<tc>, window_params = [{pipeline_mode = #tpu.pipeline_mode<synchronous>, transform_indices = @transform_0, window_bounds = array<i64: 16, 256>}, {}, {pipeline_mode = #tpu.pipeline_mode<synchronous>, transform_indices = @transform_2, window_bounds = array<i64: 32, 256>}]} {
    %c0 = arith.constant 0 : index
    %0 = memref.load %arg1[%c0] : memref<32xi32, #tpu.memory_space<smem>>
    %c0_i32 = arith.constant 0 : i32
    %c0_i32_0 = arith.constant 0 : i32
    %1 = tpu.memref_slice %arg3[%0, %c0_i32_0] : memref<8192x256xf32, #tpu.memory_space<any>> -> memref<1x256xf32, #tpu.memory_space<any>>
    %c0_i32_1 = arith.constant 0 : i32
    %c0_i32_2 = arith.constant 0 : i32
    %2 = tpu.memref_slice %arg5[%c0_i32_1, %c0_i32_2] : memref<32x256xf32, #tpu.memory_space<vmem>> -> memref<1x256xf32, #tpu.memory_space<vmem>>
    %3 = tpu.memref_slice %arg6[%c0_i32] : memref<32x!tpu.dma_semaphore, #tpu.memory_space<semaphore_mem>> -> memref<1x!tpu.dma_semaphore, #tpu.memory_space<semaphore_mem>>
    %4 = tpu.memref_squeeze %3 : memref<1x!tpu.dma_semaphore, #tpu.memory_space<semaphore_mem>> -> memref<!tpu.dma_semaphore, #tpu.memory_space<semaphore_mem>>
    tpu.enqueue_dma source(%1 : memref<1x256xf32, #tpu.memory_space<any>>) target(%2 : memref<1x256xf32, #tpu.memory_space<vmem>>) target_semaphore(%4 : memref<!tpu.dma_semaphore, #tpu.memory_space<semaphore_mem>>)
    %c1 = arith.constant 1 : index
    %5 = memref.load %arg1[%c1] : memref<32xi32, #tpu.memory_space<smem>>
    %c1_i32 = arith.constant 1 : i32
    %c0_i32_3 = arith.constant 0 : i32
    %6 = tpu.memref_slice %arg3[%5, %c0_i32_3] : memref<8192x256xf32, #tpu.memory_space<any>> -> memref<1x256xf32, #tpu.memory_space<any>>
    %c1_i32_4 = arith.constant 1 : i32
    %c0_i32_5 = arith.constant 0 : i32
    %7 = tpu.memref_slice %arg5[%c1_i32_4, %c0_i32_5] : memref<32x256xf32, #tpu.memory_space<vmem>> -> memref<1x256xf32, #tpu.memory_space<vmem>>
    %8 = tpu.memref_slice %arg6[%c1_i32] : memref<32x!tpu.dma_semaphore, #tpu.memory_space<semaphore_mem>> -> memref<1x!tpu.dma_semaphore, #tpu.memory_space<semaphore_mem>>
    %9 = tpu.memref_squeeze %8 : memref<1x!tpu.dma_semaphore, #tpu.memory_space<semaphore_mem>> -> memref<!tpu.dma_semaphore, #tpu.memory_space<semaphore_mem>>
    tpu.enqueue_dma source(%6 : memref<1x256xf32, #tpu.memory_space<any>>) target(%7 : memref<1x256xf32, #tpu.memory_space<vmem>>) target_semaphore(%9 : memref<!tpu.dma_semaphore, #tpu.memory_space<semaphore_mem>>)
    %c2 = arith.constant 2 : index
    %10 = memref.load %arg1[%c2] : memref<32xi32, #tpu.memory_space<smem>>
    %c2_i32 = arith.constant 2 : i32
    %c0_i32_6 = arith.constant 0 : i32
    %11 = tpu.memref_slice %arg3[%10, %c0_i32_6] : memref<8192x256xf32, #tpu.memory_space<any>> -> memref<1x256xf32, #tpu.memory_space<any>>
    %c2_i32_7 = arith.constant 2 : i32
    %c0_i32_8 = arith.constant 0 : i32
    %12 = tpu.memref_slice %arg5[%c2_i32_7, %c0_i32_8] : memref<32x256xf32, #tpu.memory_space<vmem>> -> memref<1x256xf32, #tpu.memory_space<vmem>>
    %13 = tpu.memref_slice %arg6[%c2_i32] : memref<32x!tpu.dma_semaphore, #tpu.memory_space<semaphore_mem>> -> memref<1x!tpu.dma_semaphore, #tpu.memory_space<semaphore_mem>>
    %14 = tpu.memref_squeeze %13 : memref<1x!tpu.dma_semaphore, #tpu.memory_space<semaphore_mem>> -> memref<!tpu.dma_semaphore, #tpu.memory_space<semaphore_mem>>
    tpu.enqueue_dma source(%11 : memref<1x256xf32, #tpu.memory_space<any>>) target(%12 : memref<1x256xf32, #tpu.memory_space<vmem>>) target_semaphore(%14 : memref<!tpu.dma_semaphore, #tpu.memory_space<semaphore_mem>>)
    %c3 = arith.constant 3 : index
    %15 = memref.load %arg1[%c3] : memref<32xi32, #tpu.memory_space<smem>>
    %c3_i32 = arith.constant 3 : i32
    %c0_i32_9 = arith.constant 0 : i32
    %16 = tpu.memref_slice %arg3[%15, %c0_i32_9] : memref<8192x256xf32, #tpu.memory_space<any>> -> memref<1x256xf32, #tpu.memory_space<any>>
    %c3_i32_10 = arith.constant 3 : i32
    %c0_i32_11 = arith.constant 0 : i32
    %17 = tpu.memref_slice %arg5[%c3_i32_10, %c0_i32_11] : memref<32x256xf32, #tpu.memory_space<vmem>> -> memref<1x256xf32, #tpu.memory_space<vmem>>
    %18 = tpu.memref_slice %arg6[%c3_i32] : memref<32x!tpu.dma_semaphore, #tpu.memory_space<semaphore_mem>> -> memref<1x!tpu.dma_semaphore, #tpu.memory_space<semaphore_mem>>
    %19 = tpu.memref_squeeze %18 : memref<1x!tpu.dma_semaphore, #tpu.memory_space<semaphore_mem>> -> memref<!tpu.dma_semaphore, #tpu.memory_space<semaphore_mem>>
    tpu.enqueue_dma source(%16 : memref<1x256xf32, #tpu.memory_space<any>>) target(%17 : memref<1x256xf32, #tpu.memory_space<vmem>>) target_semaphore(%19 : memref<!tpu.dma_semaphore, #tpu.memory_space<semaphore_mem>>)
    %c4 = arith.constant 4 : index
    %20 = memref.load %arg1[%c4] : memref<32xi32, #tpu.memory_space<smem>>
    %c4_i32 = arith.constant 4 : i32
    %c0_i32_12 = arith.constant 0 : i32
    %21 = tpu.memref_slice %arg3[%20, %c0_i32_12] : memref<8192x256xf32, #tpu.memory_space<any>> -> memref<1x256xf32, #tpu.memory_space<any>>
    %c4_i32_13 = arith.constant 4 : i32
    %c0_i32_14 = arith.constant 0 : i32
    %22 = tpu.memref_slice %arg5[%c4_i32_13, %c0_i32_14] : memref<32x256xf32, #tpu.memory_space<vmem>> -> memref<1x256xf32, #tpu.memory_space<vmem>>
    %23 = tpu.memref_slice %arg6[%c4_i32] : memref<32x!tpu.dma_semaphore, #tpu.memory_space<semaphore_mem>> -> memref<1x!tpu.dma_semaphore, #tpu.memory_space<semaphore_mem>>
    %24 = tpu.memref_squeeze %23 : memref<1x!tpu.dma_semaphore, #tpu.memory_space<semaphore_mem>> -> memref<!tpu.dma_semaphore, #tpu.memory_space<semaphore_mem>>
    tpu.enqueue_dma source(%21 : memref<1x256xf32, #tpu.memory_space<any>>) target(%22 : memref<1x256xf32, #tpu.memory_space<vmem>>) target_semaphore(%24 : memref<!tpu.dma_semaphore, #tpu.memory_space<semaphore_mem>>)
    %c5 = arith.constant 5 : index
    %25 = memref.load %arg1[%c5] : memref<32xi32, #tpu.memory_space<smem>>
    %c5_i32 = arith.constant 5 : i32
    %c0_i32_15 = arith.constant 0 : i32
    %26 = tpu.memref_slice %arg3[%25, %c0_i32_15] : memref<8192x256xf32, #tpu.memory_space<any>> -> memref<1x256xf32, #tpu.memory_space<any>>
    %c5_i32_16 = arith.constant 5 : i32
    %c0_i32_17 = arith.constant 0 : i32
    %27 = tpu.memref_slice %arg5[%c5_i32_16, %c0_i32_17] : memref<32x256xf32, #tpu.memory_space<vmem>> -> memref<1x256xf32, #tpu.memory_space<vmem>>
    %28 = tpu.memref_slice %arg6[%c5_i32] : memref<32x!tpu.dma_semaphore, #tpu.memory_space<semaphore_mem>> -> memref<1x!tpu.dma_semaphore, #tpu.memory_space<semaphore_mem>>
    %29 = tpu.memref_squeeze %28 : memref<1x!tpu.dma_semaphore, #tpu.memory_space<semaphore_mem>> -> memref<!tpu.dma_semaphore, #tpu.memory_space<semaphore_mem>>
    tpu.enqueue_dma source(%26 : memref<1x256xf32, #tpu.memory_space<any>>) target(%27 : memref<1x256xf32, #tpu.memory_space<vmem>>) target_semaphore(%29 : memref<!tpu.dma_semaphore, #tpu.memory_space<semaphore_mem>>)
    %c6 = arith.constant 6 : index
    %30 = memref.load %arg1[%c6] : memref<32xi32, #tpu.memory_space<smem>>
    %c6_i32 = arith.constant 6 : i32
    %c0_i32_18 = arith.constant 0 : i32
    %31 = tpu.memref_slice %arg3[%30, %c0_i32_18] : memref<8192x256xf32, #tpu.memory_space<any>> -> memref<1x256xf32, #tpu.memory_space<any>>
    %c6_i32_19 = arith.constant 6 : i32
    %c0_i32_20 = arith.constant 0 : i32
    %32 = tpu.memref_slice %arg5[%c6_i32_19, %c0_i32_20] : memref<32x256xf32, #tpu.memory_space<vmem>> -> memref<1x256xf32, #tpu.memory_space<vmem>>
    %33 = tpu.memref_slice %arg6[%c6_i32] : memref<32x!tpu.dma_semaphore, #tpu.memory_space<semaphore_mem>> -> memref<1x!tpu.dma_semaphore, #tpu.memory_space<semaphore_mem>>
    %34 = tpu.memref_squeeze %33 : memref<1x!tpu.dma_semaphore, #tpu.memory_space<semaphore_mem>> -> memref<!tpu.dma_semaphore, #tpu.memory_space<semaphore_mem>>
    tpu.enqueue_dma source(%31 : memref<1x256xf32, #tpu.memory_space<any>>) target(%32 : memref<1x256xf32, #tpu.memory_space<vmem>>) target_semaphore(%34 : memref<!tpu.dma_semaphore, #tpu.memory_space<semaphore_mem>>)
    %c7 = arith.constant 7 : index
    %35 = memref.load %arg1[%c7] : memref<32xi32, #tpu.memory_space<smem>>
    %c7_i32 = arith.constant 7 : i32
    %c0_i32_21 = arith.constant 0 : i32
    %36 = tpu.memref_slice %arg3[%35, %c0_i32_21] : memref<8192x256xf32, #tpu.memory_space<any>> -> memref<1x256xf32, #tpu.memory_space<any>>
    %c7_i32_22 = arith.constant 7 : i32
    %c0_i32_23 = arith.constant 0 : i32
    %37 = tpu.memref_slice %arg5[%c7_i32_22, %c0_i32_23] : memref<32x256xf32, #tpu.memory_space<vmem>> -> memref<1x256xf32, #tpu.memory_space<vmem>>
    %38 = tpu.memref_slice %arg6[%c7_i32] : memref<32x!tpu.dma_semaphore, #tpu.memory_space<semaphore_mem>> -> memref<1x!tpu.dma_semaphore, #tpu.memory_space<semaphore_mem>>
    %39 = tpu.memref_squeeze %38 : memref<1x!tpu.dma_semaphore, #tpu.memory_space<semaphore_mem>> -> memref<!tpu.dma_semaphore, #tpu.memory_space<semaphore_mem>>
    tpu.enqueue_dma source(%36 : memref<1x256xf32, #tpu.memory_space<any>>) target(%37 : memref<1x256xf32, #tpu.memory_space<vmem>>) target_semaphore(%39 : memref<!tpu.dma_semaphore, #tpu.memory_space<semaphore_mem>>)
    %c8 = arith.constant 8 : index
    %40 = memref.load %arg1[%c8] : memref<32xi32, #tpu.memory_space<smem>>
    %c8_i32 = arith.constant 8 : i32
    %c0_i32_24 = arith.constant 0 : i32
    %41 = tpu.memref_slice %arg3[%40, %c0_i32_24] : memref<8192x256xf32, #tpu.memory_space<any>> -> memref<1x256xf32, #tpu.memory_space<any>>
    %c8_i32_25 = arith.constant 8 : i32
    %c0_i32_26 = arith.constant 0 : i32
    %42 = tpu.memref_slice %arg5[%c8_i32_25, %c0_i32_26] : memref<32x256xf32, #tpu.memory_space<vmem>> -> memref<1x256xf32, #tpu.memory_space<vmem>>
    %43 = tpu.memref_slice %arg6[%c8_i32] : memref<32x!tpu.dma_semaphore, #tpu.memory_space<semaphore_mem>> -> memref<1x!tpu.dma_semaphore, #tpu.memory_space<semaphore_mem>>
    %44 = tpu.memref_squeeze %43 : memref<1x!tpu.dma_semaphore, #tpu.memory_space<semaphore_mem>> -> memref<!tpu.dma_semaphore, #tpu.memory_space<semaphore_mem>>
    tpu.enqueue_dma source(%41 : memref<1x256xf32, #tpu.memory_space<any>>) target(%42 : memref<1x256xf32, #tpu.memory_space<vmem>>) target_semaphore(%44 : memref<!tpu.dma_semaphore, #tpu.memory_space<semaphore_mem>>)
    %c9 = arith.constant 9 : index
    %45 = memref.load %arg1[%c9] : memref<32xi32, #tpu.memory_space<smem>>
    %c9_i32 = arith.constant 9 : i32
    %c0_i32_27 = arith.constant 0 : i32
    %46 = tpu.memref_slice %arg3[%45, %c0_i32_27] : memref<8192x256xf32, #tpu.memory_space<any>> -> memref<1x256xf32, #tpu.memory_space<any>>
    %c9_i32_28 = arith.constant 9 : i32
    %c0_i32_29 = arith.constant 0 : i32
    %47 = tpu.memref_slice %arg5[%c9_i32_28, %c0_i32_29] : memref<32x256xf32, #tpu.memory_space<vmem>> -> memref<1x256xf32, #tpu.memory_space<vmem>>
    %48 = tpu.memref_slice %arg6[%c9_i32] : memref<32x!tpu.dma_semaphore, #tpu.memory_space<semaphore_mem>> -> memref<1x!tpu.dma_semaphore, #tpu.memory_space<semaphore_mem>>
    %49 = tpu.memref_squeeze %48 : memref<1x!tpu.dma_semaphore, #tpu.memory_space<semaphore_mem>> -> memref<!tpu.dma_semaphore, #tpu.memory_space<semaphore_mem>>
    tpu.enqueue_dma source(%46 : memref<1x256xf32, #tpu.memory_space<any>>) target(%47 : memref<1x256xf32, #tpu.memory_space<vmem>>) target_semaphore(%49 : memref<!tpu.dma_semaphore, #tpu.memory_space<semaphore_mem>>)
    %c10 = arith.constant 10 : index
    %50 = memref.load %arg1[%c10] : memref<32xi32, #tpu.memory_space<smem>>
    %c10_i32 = arith.constant 10 : i32
    %c0_i32_30 = arith.constant 0 : i32
    %51 = tpu.memref_slice %arg3[%50, %c0_i32_30] : memref<8192x256xf32, #tpu.memory_space<any>> -> memref<1x256xf32, #tpu.memory_space<any>>
    %c10_i32_31 = arith.constant 10 : i32
    %c0_i32_32 = arith.constant 0 : i32
    %52 = tpu.memref_slice %arg5[%c10_i32_31, %c0_i32_32] : memref<32x256xf32, #tpu.memory_space<vmem>> -> memref<1x256xf32, #tpu.memory_space<vmem>>
    %53 = tpu.memref_slice %arg6[%c10_i32] : memref<32x!tpu.dma_semaphore, #tpu.memory_space<semaphore_mem>> -> memref<1x!tpu.dma_semaphore, #tpu.memory_space<semaphore_mem>>
    %54 = tpu.memref_squeeze %53 : memref<1x!tpu.dma_semaphore, #tpu.memory_space<semaphore_mem>> -> memref<!tpu.dma_semaphore, #tpu.memory_space<semaphore_mem>>
    tpu.enqueue_dma source(%51 : memref<1x256xf32, #tpu.memory_space<any>>) target(%52 : memref<1x256xf32, #tpu.memory_space<vmem>>) target_semaphore(%54 : memref<!tpu.dma_semaphore, #tpu.memory_space<semaphore_mem>>)
    %c11 = arith.constant 11 : index
    %55 = memref.load %arg1[%c11] : memref<32xi32, #tpu.memory_space<smem>>
    %c11_i32 = arith.constant 11 : i32
    %c0_i32_33 = arith.constant 0 : i32
    %56 = tpu.memref_slice %arg3[%55, %c0_i32_33] : memref<8192x256xf32, #tpu.memory_space<any>> -> memref<1x256xf32, #tpu.memory_space<any>>
    %c11_i32_34 = arith.constant 11 : i32
    %c0_i32_35 = arith.constant 0 : i32
    %57 = tpu.memref_slice %arg5[%c11_i32_34, %c0_i32_35] : memref<32x256xf32, #tpu.memory_space<vmem>> -> memref<1x256xf32, #tpu.memory_space<vmem>>
    %58 = tpu.memref_slice %arg6[%c11_i32] : memref<32x!tpu.dma_semaphore, #tpu.memory_space<semaphore_mem>> -> memref<1x!tpu.dma_semaphore, #tpu.memory_space<semaphore_mem>>
    %59 = tpu.memref_squeeze %58 : memref<1x!tpu.dma_semaphore, #tpu.memory_space<semaphore_mem>> -> memref<!tpu.dma_semaphore, #tpu.memory_space<semaphore_mem>>
    tpu.enqueue_dma source(%56 : memref<1x256xf32, #tpu.memory_space<any>>) target(%57 : memref<1x256xf32, #tpu.memory_space<vmem>>) target_semaphore(%59 : memref<!tpu.dma_semaphore, #tpu.memory_space<semaphore_mem>>)
    %c12 = arith.constant 12 : index
    %60 = memref.load %arg1[%c12] : memref<32xi32, #tpu.memory_space<smem>>
    %c12_i32 = arith.constant 12 : i32
    %c0_i32_36 = arith.constant 0 : i32
    %61 = tpu.memref_slice %arg3[%60, %c0_i32_36] : memref<8192x256xf32, #tpu.memory_space<any>> -> memref<1x256xf32, #tpu.memory_space<any>>
    %c12_i32_37 = arith.constant 12 : i32
    %c0_i32_38 = arith.constant 0 : i32
    %62 = tpu.memref_slice %arg5[%c12_i32_37, %c0_i32_38] : memref<32x256xf32, #tpu.memory_space<vmem>> -> memref<1x256xf32, #tpu.memory_space<vmem>>
    %63 = tpu.memref_slice %arg6[%c12_i32] : memref<32x!tpu.dma_semaphore, #tpu.memory_space<semaphore_mem>> -> memref<1x!tpu.dma_semaphore, #tpu.memory_space<semaphore_mem>>
    %64 = tpu.memref_squeeze %63 : memref<1x!tpu.dma_semaphore, #tpu.memory_space<semaphore_mem>> -> memref<!tpu.dma_semaphore, #tpu.memory_space<semaphore_mem>>
    tpu.enqueue_dma source(%61 : memref<1x256xf32, #tpu.memory_space<any>>) target(%62 : memref<1x256xf32, #tpu.memory_space<vmem>>) target_semaphore(%64 : memref<!tpu.dma_semaphore, #tpu.memory_space<semaphore_mem>>)
    %c13 = arith.constant 13 : index
    %65 = memref.load %arg1[%c13] : memref<32xi32, #tpu.memory_space<smem>>
    %c13_i32 = arith.constant 13 : i32
    %c0_i32_39 = arith.constant 0 : i32
    %66 = tpu.memref_slice %arg3[%65, %c0_i32_39] : memref<8192x256xf32, #tpu.memory_space<any>> -> memref<1x256xf32, #tpu.memory_space<any>>
    %c13_i32_40 = arith.constant 13 : i32
    %c0_i32_41 = arith.constant 0 : i32
    %67 = tpu.memref_slice %arg5[%c13_i32_40, %c0_i32_41] : memref<32x256xf32, #tpu.memory_space<vmem>> -> memref<1x256xf32, #tpu.memory_space<vmem>>
    %68 = tpu.memref_slice %arg6[%c13_i32] : memref<32x!tpu.dma_semaphore, #tpu.memory_space<semaphore_mem>> -> memref<1x!tpu.dma_semaphore, #tpu.memory_space<semaphore_mem>>
    %69 = tpu.memref_squeeze %68 : memref<1x!tpu.dma_semaphore, #tpu.memory_space<semaphore_mem>> -> memref<!tpu.dma_semaphore, #tpu.memory_space<semaphore_mem>>
    tpu.enqueue_dma source(%66 : memref<1x256xf32, #tpu.memory_space<any>>) target(%67 : memref<1x256xf32, #tpu.memory_space<vmem>>) target_semaphore(%69 : memref<!tpu.dma_semaphore, #tpu.memory_space<semaphore_mem>>)
    %c14 = arith.constant 14 : index
    %70 = memref.load %arg1[%c14] : memref<32xi32, #tpu.memory_space<smem>>
    %c14_i32 = arith.constant 14 : i32
    %c0_i32_42 = arith.constant 0 : i32
    %71 = tpu.memref_slice %arg3[%70, %c0_i32_42] : memref<8192x256xf32, #tpu.memory_space<any>> -> memref<1x256xf32, #tpu.memory_space<any>>
    %c14_i32_43 = arith.constant 14 : i32
    %c0_i32_44 = arith.constant 0 : i32
    %72 = tpu.memref_slice %arg5[%c14_i32_43, %c0_i32_44] : memref<32x256xf32, #tpu.memory_space<vmem>> -> memref<1x256xf32, #tpu.memory_space<vmem>>
    %73 = tpu.memref_slice %arg6[%c14_i32] : memref<32x!tpu.dma_semaphore, #tpu.memory_space<semaphore_mem>> -> memref<1x!tpu.dma_semaphore, #tpu.memory_space<semaphore_mem>>
    %74 = tpu.memref_squeeze %73 : memref<1x!tpu.dma_semaphore, #tpu.memory_space<semaphore_mem>> -> memref<!tpu.dma_semaphore, #tpu.memory_space<semaphore_mem>>
    tpu.enqueue_dma source(%71 : memref<1x256xf32, #tpu.memory_space<any>>) target(%72 : memref<1x256xf32, #tpu.memory_space<vmem>>) target_semaphore(%74 : memref<!tpu.dma_semaphore, #tpu.memory_space<semaphore_mem>>)
    %c15 = arith.constant 15 : index
    %75 = memref.load %arg1[%c15] : memref<32xi32, #tpu.memory_space<smem>>
    %c15_i32 = arith.constant 15 : i32
    %c0_i32_45 = arith.constant 0 : i32
    %76 = tpu.memref_slice %arg3[%75, %c0_i32_45] : memref<8192x256xf32, #tpu.memory_space<any>> -> memref<1x256xf32, #tpu.memory_space<any>>
    %c15_i32_46 = arith.constant 15 : i32
    %c0_i32_47 = arith.constant 0 : i32
    %77 = tpu.memref_slice %arg5[%c15_i32_46, %c0_i32_47] : memref<32x256xf32, #tpu.memory_space<vmem>> -> memref<1x256xf32, #tpu.memory_space<vmem>>
    %78 = tpu.memref_slice %arg6[%c15_i32] : memref<32x!tpu.dma_semaphore, #tpu.memory_space<semaphore_mem>> -> memref<1x!tpu.dma_semaphore, #tpu.memory_space<semaphore_mem>>
    %79 = tpu.memref_squeeze %78 : memref<1x!tpu.dma_semaphore, #tpu.memory_space<semaphore_mem>> -> memref<!tpu.dma_semaphore, #tpu.memory_space<semaphore_mem>>
    tpu.enqueue_dma source(%76 : memref<1x256xf32, #tpu.memory_space<any>>) target(%77 : memref<1x256xf32, #tpu.memory_space<vmem>>) target_semaphore(%79 : memref<!tpu.dma_semaphore, #tpu.memory_space<semaphore_mem>>)
    %c16 = arith.constant 16 : index
    %80 = memref.load %arg1[%c16] : memref<32xi32, #tpu.memory_space<smem>>
    %c16_i32 = arith.constant 16 : i32
    %c0_i32_48 = arith.constant 0 : i32
    %81 = tpu.memref_slice %arg3[%80, %c0_i32_48] : memref<8192x256xf32, #tpu.memory_space<any>> -> memref<1x256xf32, #tpu.memory_space<any>>
    %c16_i32_49 = arith.constant 16 : i32
    %c0_i32_50 = arith.constant 0 : i32
    %82 = tpu.memref_slice %arg5[%c16_i32_49, %c0_i32_50] : memref<32x256xf32, #tpu.memory_space<vmem>> -> memref<1x256xf32, #tpu.memory_space<vmem>>
    %83 = tpu.memref_slice %arg6[%c16_i32] : memref<32x!tpu.dma_semaphore, #tpu.memory_space<semaphore_mem>> -> memref<1x!tpu.dma_semaphore, #tpu.memory_space<semaphore_mem>>
    %84 = tpu.memref_squeeze %83 : memref<1x!tpu.dma_semaphore, #tpu.memory_space<semaphore_mem>> -> memref<!tpu.dma_semaphore, #tpu.memory_space<semaphore_mem>>
    tpu.enqueue_dma source(%81 : memref<1x256xf32, #tpu.memory_space<any>>) target(%82 : memref<1x256xf32, #tpu.memory_space<vmem>>) target_semaphore(%84 : memref<!tpu.dma_semaphore, #tpu.memory_space<semaphore_mem>>)
    %c17 = arith.constant 17 : index
    %85 = memref.load %arg1[%c17] : memref<32xi32, #tpu.memory_space<smem>>
    %c17_i32 = arith.constant 17 : i32
    %c0_i32_51 = arith.constant 0 : i32
    %86 = tpu.memref_slice %arg3[%85, %c0_i32_51] : memref<8192x256xf32, #tpu.memory_space<any>> -> memref<1x256xf32, #tpu.memory_space<any>>
    %c17_i32_52 = arith.constant 17 : i32
    %c0_i32_53 = arith.constant 0 : i32
    %87 = tpu.memref_slice %arg5[%c17_i32_52, %c0_i32_53] : memref<32x256xf32, #tpu.memory_space<vmem>> -> memref<1x256xf32, #tpu.memory_space<vmem>>
    %88 = tpu.memref_slice %arg6[%c17_i32] : memref<32x!tpu.dma_semaphore, #tpu.memory_space<semaphore_mem>> -> memref<1x!tpu.dma_semaphore, #tpu.memory_space<semaphore_mem>>
    %89 = tpu.memref_squeeze %88 : memref<1x!tpu.dma_semaphore, #tpu.memory_space<semaphore_mem>> -> memref<!tpu.dma_semaphore, #tpu.memory_space<semaphore_mem>>
    tpu.enqueue_dma source(%86 : memref<1x256xf32, #tpu.memory_space<any>>) target(%87 : memref<1x256xf32, #tpu.memory_space<vmem>>) target_semaphore(%89 : memref<!tpu.dma_semaphore, #tpu.memory_space<semaphore_mem>>)
    %c18 = arith.constant 18 : index
    %90 = memref.load %arg1[%c18] : memref<32xi32, #tpu.memory_space<smem>>
    %c18_i32 = arith.constant 18 : i32
    %c0_i32_54 = arith.constant 0 : i32
    %91 = tpu.memref_slice %arg3[%90, %c0_i32_54] : memref<8192x256xf32, #tpu.memory_space<any>> -> memref<1x256xf32, #tpu.memory_space<any>>
    %c18_i32_55 = arith.constant 18 : i32
    %c0_i32_56 = arith.constant 0 : i32
    %92 = tpu.memref_slice %arg5[%c18_i32_55, %c0_i32_56] : memref<32x256xf32, #tpu.memory_space<vmem>> -> memref<1x256xf32, #tpu.memory_space<vmem>>
    %93 = tpu.memref_slice %arg6[%c18_i32] : memref<32x!tpu.dma_semaphore, #tpu.memory_space<semaphore_mem>> -> memref<1x!tpu.dma_semaphore, #tpu.memory_space<semaphore_mem>>
    %94 = tpu.memref_squeeze %93 : memref<1x!tpu.dma_semaphore, #tpu.memory_space<semaphore_mem>> -> memref<!tpu.dma_semaphore, #tpu.memory_space<semaphore_mem>>
    tpu.enqueue_dma source(%91 : memref<1x256xf32, #tpu.memory_space<any>>) target(%92 : memref<1x256xf32, #tpu.memory_space<vmem>>) target_semaphore(%94 : memref<!tpu.dma_semaphore, #tpu.memory_space<semaphore_mem>>)
    %c19 = arith.constant 19 : index
    %95 = memref.load %arg1[%c19] : memref<32xi32, #tpu.memory_space<smem>>
    %c19_i32 = arith.constant 19 : i32
    %c0_i32_57 = arith.constant 0 : i32
    %96 = tpu.memref_slice %arg3[%95, %c0_i32_57] : memref<8192x256xf32, #tpu.memory_space<any>> -> memref<1x256xf32, #tpu.memory_space<any>>
    %c19_i32_58 = arith.constant 19 : i32
    %c0_i32_59 = arith.constant 0 : i32
    %97 = tpu.memref_slice %arg5[%c19_i32_58, %c0_i32_59] : memref<32x256xf32, #tpu.memory_space<vmem>> -> memref<1x256xf32, #tpu.memory_space<vmem>>
    %98 = tpu.memref_slice %arg6[%c19_i32] : memref<32x!tpu.dma_semaphore, #tpu.memory_space<semaphore_mem>> -> memref<1x!tpu.dma_semaphore, #tpu.memory_space<semaphore_mem>>
    %99 = tpu.memref_squeeze %98 : memref<1x!tpu.dma_semaphore, #tpu.memory_space<semaphore_mem>> -> memref<!tpu.dma_semaphore, #tpu.memory_space<semaphore_mem>>
    tpu.enqueue_dma source(%96 : memref<1x256xf32, #tpu.memory_space<any>>) target(%97 : memref<1x256xf32, #tpu.memory_space<vmem>>) target_semaphore(%99 : memref<!tpu.dma_semaphore, #tpu.memory_space<semaphore_mem>>)
    %c20 = arith.constant 20 : index
    %100 = memref.load %arg1[%c20] : memref<32xi32, #tpu.memory_space<smem>>
    %c20_i32 = arith.constant 20 : i32
    %c0_i32_60 = arith.constant 0 : i32
    %101 = tpu.memref_slice %arg3[%100, %c0_i32_60] : memref<8192x256xf32, #tpu.memory_space<any>> -> memref<1x256xf32, #tpu.memory_space<any>>
    %c20_i32_61 = arith.constant 20 : i32
    %c0_i32_62 = arith.constant 0 : i32
    %102 = tpu.memref_slice %arg5[%c20_i32_61, %c0_i32_62] : memref<32x256xf32, #tpu.memory_space<vmem>> -> memref<1x256xf32, #tpu.memory_space<vmem>>
    %103 = tpu.memref_slice %arg6[%c20_i32] : memref<32x!tpu.dma_semaphore, #tpu.memory_space<semaphore_mem>> -> memref<1x!tpu.dma_semaphore, #tpu.memory_space<semaphore_mem>>
    %104 = tpu.memref_squeeze %103 : memref<1x!tpu.dma_semaphore, #tpu.memory_space<semaphore_mem>> -> memref<!tpu.dma_semaphore, #tpu.memory_space<semaphore_mem>>
    tpu.enqueue_dma source(%101 : memref<1x256xf32, #tpu.memory_space<any>>) target(%102 : memref<1x256xf32, #tpu.memory_space<vmem>>) target_semaphore(%104 : memref<!tpu.dma_semaphore, #tpu.memory_space<semaphore_mem>>)
    %c21 = arith.constant 21 : index
    %105 = memref.load %arg1[%c21] : memref<32xi32, #tpu.memory_space<smem>>
    %c21_i32 = arith.constant 21 : i32
    %c0_i32_63 = arith.constant 0 : i32
    %106 = tpu.memref_slice %arg3[%105, %c0_i32_63] : memref<8192x256xf32, #tpu.memory_space<any>> -> memref<1x256xf32, #tpu.memory_space<any>>
    %c21_i32_64 = arith.constant 21 : i32
    %c0_i32_65 = arith.constant 0 : i32
    %107 = tpu.memref_slice %arg5[%c21_i32_64, %c0_i32_65] : memref<32x256xf32, #tpu.memory_space<vmem>> -> memref<1x256xf32, #tpu.memory_space<vmem>>
    %108 = tpu.memref_slice %arg6[%c21_i32] : memref<32x!tpu.dma_semaphore, #tpu.memory_space<semaphore_mem>> -> memref<1x!tpu.dma_semaphore, #tpu.memory_space<semaphore_mem>>
    %109 = tpu.memref_squeeze %108 : memref<1x!tpu.dma_semaphore, #tpu.memory_space<semaphore_mem>> -> memref<!tpu.dma_semaphore, #tpu.memory_space<semaphore_mem>>
    tpu.enqueue_dma source(%106 : memref<1x256xf32, #tpu.memory_space<any>>) target(%107 : memref<1x256xf32, #tpu.memory_space<vmem>>) target_semaphore(%109 : memref<!tpu.dma_semaphore, #tpu.memory_space<semaphore_mem>>)
    %c22 = arith.constant 22 : index
    %110 = memref.load %arg1[%c22] : memref<32xi32, #tpu.memory_space<smem>>
    %c22_i32 = arith.constant 22 : i32
    %c0_i32_66 = arith.constant 0 : i32
    %111 = tpu.memref_slice %arg3[%110, %c0_i32_66] : memref<8192x256xf32, #tpu.memory_space<any>> -> memref<1x256xf32, #tpu.memory_space<any>>
    %c22_i32_67 = arith.constant 22 : i32
    %c0_i32_68 = arith.constant 0 : i32
    %112 = tpu.memref_slice %arg5[%c22_i32_67, %c0_i32_68] : memref<32x256xf32, #tpu.memory_space<vmem>> -> memref<1x256xf32, #tpu.memory_space<vmem>>
    %113 = tpu.memref_slice %arg6[%c22_i32] : memref<32x!tpu.dma_semaphore, #tpu.memory_space<semaphore_mem>> -> memref<1x!tpu.dma_semaphore, #tpu.memory_space<semaphore_mem>>
    %114 = tpu.memref_squeeze %113 : memref<1x!tpu.dma_semaphore, #tpu.memory_space<semaphore_mem>> -> memref<!tpu.dma_semaphore, #tpu.memory_space<semaphore_mem>>
    tpu.enqueue_dma source(%111 : memref<1x256xf32, #tpu.memory_space<any>>) target(%112 : memref<1x256xf32, #tpu.memory_space<vmem>>) target_semaphore(%114 : memref<!tpu.dma_semaphore, #tpu.memory_space<semaphore_mem>>)
    %c23 = arith.constant 23 : index
    %115 = memref.load %arg1[%c23] : memref<32xi32, #tpu.memory_space<smem>>
    %c23_i32 = arith.constant 23 : i32
    %c0_i32_69 = arith.constant 0 : i32
    %116 = tpu.memref_slice %arg3[%115, %c0_i32_69] : memref<8192x256xf32, #tpu.memory_space<any>> -> memref<1x256xf32, #tpu.memory_space<any>>
    %c23_i32_70 = arith.constant 23 : i32
    %c0_i32_71 = arith.constant 0 : i32
    %117 = tpu.memref_slice %arg5[%c23_i32_70, %c0_i32_71] : memref<32x256xf32, #tpu.memory_space<vmem>> -> memref<1x256xf32, #tpu.memory_space<vmem>>
    %118 = tpu.memref_slice %arg6[%c23_i32] : memref<32x!tpu.dma_semaphore, #tpu.memory_space<semaphore_mem>> -> memref<1x!tpu.dma_semaphore, #tpu.memory_space<semaphore_mem>>
    %119 = tpu.memref_squeeze %118 : memref<1x!tpu.dma_semaphore, #tpu.memory_space<semaphore_mem>> -> memref<!tpu.dma_semaphore, #tpu.memory_space<semaphore_mem>>
    tpu.enqueue_dma source(%116 : memref<1x256xf32, #tpu.memory_space<any>>) target(%117 : memref<1x256xf32, #tpu.memory_space<vmem>>) target_semaphore(%119 : memref<!tpu.dma_semaphore, #tpu.memory_space<semaphore_mem>>)
    %c24 = arith.constant 24 : index
    %120 = memref.load %arg1[%c24] : memref<32xi32, #tpu.memory_space<smem>>
    %c24_i32 = arith.constant 24 : i32
    %c0_i32_72 = arith.constant 0 : i32
    %121 = tpu.memref_slice %arg3[%120, %c0_i32_72] : memref<8192x256xf32, #tpu.memory_space<any>> -> memref<1x256xf32, #tpu.memory_space<any>>
    %c24_i32_73 = arith.constant 24 : i32
    %c0_i32_74 = arith.constant 0 : i32
    %122 = tpu.memref_slice %arg5[%c24_i32_73, %c0_i32_74] : memref<32x256xf32, #tpu.memory_space<vmem>> -> memref<1x256xf32, #tpu.memory_space<vmem>>
    %123 = tpu.memref_slice %arg6[%c24_i32] : memref<32x!tpu.dma_semaphore, #tpu.memory_space<semaphore_mem>> -> memref<1x!tpu.dma_semaphore, #tpu.memory_space<semaphore_mem>>
    %124 = tpu.memref_squeeze %123 : memref<1x!tpu.dma_semaphore, #tpu.memory_space<semaphore_mem>> -> memref<!tpu.dma_semaphore, #tpu.memory_space<semaphore_mem>>
    tpu.enqueue_dma source(%121 : memref<1x256xf32, #tpu.memory_space<any>>) target(%122 : memref<1x256xf32, #tpu.memory_space<vmem>>) target_semaphore(%124 : memref<!tpu.dma_semaphore, #tpu.memory_space<semaphore_mem>>)
    %c25 = arith.constant 25 : index
    %125 = memref.load %arg1[%c25] : memref<32xi32, #tpu.memory_space<smem>>
    %c25_i32 = arith.constant 25 : i32
    %c0_i32_75 = arith.constant 0 : i32
    %126 = tpu.memref_slice %arg3[%125, %c0_i32_75] : memref<8192x256xf32, #tpu.memory_space<any>> -> memref<1x256xf32, #tpu.memory_space<any>>
    %c25_i32_76 = arith.constant 25 : i32
    %c0_i32_77 = arith.constant 0 : i32
    %127 = tpu.memref_slice %arg5[%c25_i32_76, %c0_i32_77] : memref<32x256xf32, #tpu.memory_space<vmem>> -> memref<1x256xf32, #tpu.memory_space<vmem>>
    %128 = tpu.memref_slice %arg6[%c25_i32] : memref<32x!tpu.dma_semaphore, #tpu.memory_space<semaphore_mem>> -> memref<1x!tpu.dma_semaphore, #tpu.memory_space<semaphore_mem>>
    %129 = tpu.memref_squeeze %128 : memref<1x!tpu.dma_semaphore, #tpu.memory_space<semaphore_mem>> -> memref<!tpu.dma_semaphore, #tpu.memory_space<semaphore_mem>>
    tpu.enqueue_dma source(%126 : memref<1x256xf32, #tpu.memory_space<any>>) target(%127 : memref<1x256xf32, #tpu.memory_space<vmem>>) target_semaphore(%129 : memref<!tpu.dma_semaphore, #tpu.memory_space<semaphore_mem>>)
    %c26 = arith.constant 26 : index
    %130 = memref.load %arg1[%c26] : memref<32xi32, #tpu.memory_space<smem>>
    %c26_i32 = arith.constant 26 : i32
    %c0_i32_78 = arith.constant 0 : i32
    %131 = tpu.memref_slice %arg3[%130, %c0_i32_78] : memref<8192x256xf32, #tpu.memory_space<any>> -> memref<1x256xf32, #tpu.memory_space<any>>
    %c26_i32_79 = arith.constant 26 : i32
    %c0_i32_80 = arith.constant 0 : i32
    %132 = tpu.memref_slice %arg5[%c26_i32_79, %c0_i32_80] : memref<32x256xf32, #tpu.memory_space<vmem>> -> memref<1x256xf32, #tpu.memory_space<vmem>>
    %133 = tpu.memref_slice %arg6[%c26_i32] : memref<32x!tpu.dma_semaphore, #tpu.memory_space<semaphore_mem>> -> memref<1x!tpu.dma_semaphore, #tpu.memory_space<semaphore_mem>>
    %134 = tpu.memref_squeeze %133 : memref<1x!tpu.dma_semaphore, #tpu.memory_space<semaphore_mem>> -> memref<!tpu.dma_semaphore, #tpu.memory_space<semaphore_mem>>
    tpu.enqueue_dma source(%131 : memref<1x256xf32, #tpu.memory_space<any>>) target(%132 : memref<1x256xf32, #tpu.memory_space<vmem>>) target_semaphore(%134 : memref<!tpu.dma_semaphore, #tpu.memory_space<semaphore_mem>>)
    %c27 = arith.constant 27 : index
    %135 = memref.load %arg1[%c27] : memref<32xi32, #tpu.memory_space<smem>>
    %c27_i32 = arith.constant 27 : i32
    %c0_i32_81 = arith.constant 0 : i32
    %136 = tpu.memref_slice %arg3[%135, %c0_i32_81] : memref<8192x256xf32, #tpu.memory_space<any>> -> memref<1x256xf32, #tpu.memory_space<any>>
    %c27_i32_82 = arith.constant 27 : i32
    %c0_i32_83 = arith.constant 0 : i32
    %137 = tpu.memref_slice %arg5[%c27_i32_82, %c0_i32_83] : memref<32x256xf32, #tpu.memory_space<vmem>> -> memref<1x256xf32, #tpu.memory_space<vmem>>
    %138 = tpu.memref_slice %arg6[%c27_i32] : memref<32x!tpu.dma_semaphore, #tpu.memory_space<semaphore_mem>> -> memref<1x!tpu.dma_semaphore, #tpu.memory_space<semaphore_mem>>
    %139 = tpu.memref_squeeze %138 : memref<1x!tpu.dma_semaphore, #tpu.memory_space<semaphore_mem>> -> memref<!tpu.dma_semaphore, #tpu.memory_space<semaphore_mem>>
    tpu.enqueue_dma source(%136 : memref<1x256xf32, #tpu.memory_space<any>>) target(%137 : memref<1x256xf32, #tpu.memory_space<vmem>>) target_semaphore(%139 : memref<!tpu.dma_semaphore, #tpu.memory_space<semaphore_mem>>)
    %c28 = arith.constant 28 : index
    %140 = memref.load %arg1[%c28] : memref<32xi32, #tpu.memory_space<smem>>
    %c28_i32 = arith.constant 28 : i32
    %c0_i32_84 = arith.constant 0 : i32
    %141 = tpu.memref_slice %arg3[%140, %c0_i32_84] : memref<8192x256xf32, #tpu.memory_space<any>> -> memref<1x256xf32, #tpu.memory_space<any>>
    %c28_i32_85 = arith.constant 28 : i32
    %c0_i32_86 = arith.constant 0 : i32
    %142 = tpu.memref_slice %arg5[%c28_i32_85, %c0_i32_86] : memref<32x256xf32, #tpu.memory_space<vmem>> -> memref<1x256xf32, #tpu.memory_space<vmem>>
    %143 = tpu.memref_slice %arg6[%c28_i32] : memref<32x!tpu.dma_semaphore, #tpu.memory_space<semaphore_mem>> -> memref<1x!tpu.dma_semaphore, #tpu.memory_space<semaphore_mem>>
    %144 = tpu.memref_squeeze %143 : memref<1x!tpu.dma_semaphore, #tpu.memory_space<semaphore_mem>> -> memref<!tpu.dma_semaphore, #tpu.memory_space<semaphore_mem>>
    tpu.enqueue_dma source(%141 : memref<1x256xf32, #tpu.memory_space<any>>) target(%142 : memref<1x256xf32, #tpu.memory_space<vmem>>) target_semaphore(%144 : memref<!tpu.dma_semaphore, #tpu.memory_space<semaphore_mem>>)
    %c29 = arith.constant 29 : index
    %145 = memref.load %arg1[%c29] : memref<32xi32, #tpu.memory_space<smem>>
    %c29_i32 = arith.constant 29 : i32
    %c0_i32_87 = arith.constant 0 : i32
    %146 = tpu.memref_slice %arg3[%145, %c0_i32_87] : memref<8192x256xf32, #tpu.memory_space<any>> -> memref<1x256xf32, #tpu.memory_space<any>>
    %c29_i32_88 = arith.constant 29 : i32
    %c0_i32_89 = arith.constant 0 : i32
    %147 = tpu.memref_slice %arg5[%c29_i32_88, %c0_i32_89] : memref<32x256xf32, #tpu.memory_space<vmem>> -> memref<1x256xf32, #tpu.memory_space<vmem>>
    %148 = tpu.memref_slice %arg6[%c29_i32] : memref<32x!tpu.dma_semaphore, #tpu.memory_space<semaphore_mem>> -> memref<1x!tpu.dma_semaphore, #tpu.memory_space<semaphore_mem>>
    %149 = tpu.memref_squeeze %148 : memref<1x!tpu.dma_semaphore, #tpu.memory_space<semaphore_mem>> -> memref<!tpu.dma_semaphore, #tpu.memory_space<semaphore_mem>>
    tpu.enqueue_dma source(%146 : memref<1x256xf32, #tpu.memory_space<any>>) target(%147 : memref<1x256xf32, #tpu.memory_space<vmem>>) target_semaphore(%149 : memref<!tpu.dma_semaphore, #tpu.memory_space<semaphore_mem>>)
    %c30 = arith.constant 30 : index
    %150 = memref.load %arg1[%c30] : memref<32xi32, #tpu.memory_space<smem>>
    %c30_i32 = arith.constant 30 : i32
    %c0_i32_90 = arith.constant 0 : i32
    %151 = tpu.memref_slice %arg3[%150, %c0_i32_90] : memref<8192x256xf32, #tpu.memory_space<any>> -> memref<1x256xf32, #tpu.memory_space<any>>
    %c30_i32_91 = arith.constant 30 : i32
    %c0_i32_92 = arith.constant 0 : i32
    %152 = tpu.memref_slice %arg5[%c30_i32_91, %c0_i32_92] : memref<32x256xf32, #tpu.memory_space<vmem>> -> memref<1x256xf32, #tpu.memory_space<vmem>>
    %153 = tpu.memref_slice %arg6[%c30_i32] : memref<32x!tpu.dma_semaphore, #tpu.memory_space<semaphore_mem>> -> memref<1x!tpu.dma_semaphore, #tpu.memory_space<semaphore_mem>>
    %154 = tpu.memref_squeeze %153 : memref<1x!tpu.dma_semaphore, #tpu.memory_space<semaphore_mem>> -> memref<!tpu.dma_semaphore, #tpu.memory_space<semaphore_mem>>
    tpu.enqueue_dma source(%151 : memref<1x256xf32, #tpu.memory_space<any>>) target(%152 : memref<1x256xf32, #tpu.memory_space<vmem>>) target_semaphore(%154 : memref<!tpu.dma_semaphore, #tpu.memory_space<semaphore_mem>>)
    %c31 = arith.constant 31 : index
    %155 = memref.load %arg1[%c31] : memref<32xi32, #tpu.memory_space<smem>>
    %c31_i32 = arith.constant 31 : i32
    %c0_i32_93 = arith.constant 0 : i32
    %156 = tpu.memref_slice %arg3[%155, %c0_i32_93] : memref<8192x256xf32, #tpu.memory_space<any>> -> memref<1x256xf32, #tpu.memory_space<any>>
    %c31_i32_94 = arith.constant 31 : i32
    %c0_i32_95 = arith.constant 0 : i32
    %157 = tpu.memref_slice %arg5[%c31_i32_94, %c0_i32_95] : memref<32x256xf32, #tpu.memory_space<vmem>> -> memref<1x256xf32, #tpu.memory_space<vmem>>
    %158 = tpu.memref_slice %arg6[%c31_i32] : memref<32x!tpu.dma_semaphore, #tpu.memory_space<semaphore_mem>> -> memref<1x!tpu.dma_semaphore, #tpu.memory_space<semaphore_mem>>
    %159 = tpu.memref_squeeze %158 : memref<1x!tpu.dma_semaphore, #tpu.memory_space<semaphore_mem>> -> memref<!tpu.dma_semaphore, #tpu.memory_space<semaphore_mem>>
    tpu.enqueue_dma source(%156 : memref<1x256xf32, #tpu.memory_space<any>>) target(%157 : memref<1x256xf32, #tpu.memory_space<vmem>>) target_semaphore(%159 : memref<!tpu.dma_semaphore, #tpu.memory_space<semaphore_mem>>)
    %c0_96 = arith.constant 0 : index
    %160 = memref.load %arg1[%c0_96] : memref<32xi32, #tpu.memory_space<smem>>
    %c0_i32_97 = arith.constant 0 : i32
    %c0_i32_98 = arith.constant 0 : i32
    %161 = tpu.memref_slice %arg3[%160, %c0_i32_98] : memref<8192x256xf32, #tpu.memory_space<any>> -> memref<1x256xf32, #tpu.memory_space<any>>
    %c0_i32_99 = arith.constant 0 : i32
    %c0_i32_100 = arith.constant 0 : i32
    %162 = tpu.memref_slice %arg5[%c0_i32_99, %c0_i32_100] : memref<32x256xf32, #tpu.memory_space<vmem>> -> memref<1x256xf32, #tpu.memory_space<vmem>>
    %163 = tpu.memref_slice %arg6[%c0_i32_97] : memref<32x!tpu.dma_semaphore, #tpu.memory_space<semaphore_mem>> -> memref<1x!tpu.dma_semaphore, #tpu.memory_space<semaphore_mem>>
    %164 = tpu.memref_squeeze %163 : memref<1x!tpu.dma_semaphore, #tpu.memory_space<semaphore_mem>> -> memref<!tpu.dma_semaphore, #tpu.memory_space<semaphore_mem>>
    tpu.wait_dma2 semaphore(%164 : memref<!tpu.dma_semaphore, #tpu.memory_space<semaphore_mem>>) src(%161 : memref<1x256xf32, #tpu.memory_space<any>>) dst(%162 : memref<1x256xf32, #tpu.memory_space<vmem>>)
    %c1_101 = arith.constant 1 : index
    %165 = memref.load %arg1[%c1_101] : memref<32xi32, #tpu.memory_space<smem>>
    %c1_i32_102 = arith.constant 1 : i32
    %c0_i32_103 = arith.constant 0 : i32
    %166 = tpu.memref_slice %arg3[%165, %c0_i32_103] : memref<8192x256xf32, #tpu.memory_space<any>> -> memref<1x256xf32, #tpu.memory_space<any>>
    %c1_i32_104 = arith.constant 1 : i32
    %c0_i32_105 = arith.constant 0 : i32
    %167 = tpu.memref_slice %arg5[%c1_i32_104, %c0_i32_105] : memref<32x256xf32, #tpu.memory_space<vmem>> -> memref<1x256xf32, #tpu.memory_space<vmem>>
    %168 = tpu.memref_slice %arg6[%c1_i32_102] : memref<32x!tpu.dma_semaphore, #tpu.memory_space<semaphore_mem>> -> memref<1x!tpu.dma_semaphore, #tpu.memory_space<semaphore_mem>>
    %169 = tpu.memref_squeeze %168 : memref<1x!tpu.dma_semaphore, #tpu.memory_space<semaphore_mem>> -> memref<!tpu.dma_semaphore, #tpu.memory_space<semaphore_mem>>
    tpu.wait_dma2 semaphore(%169 : memref<!tpu.dma_semaphore, #tpu.memory_space<semaphore_mem>>) src(%166 : memref<1x256xf32, #tpu.memory_space<any>>) dst(%167 : memref<1x256xf32, #tpu.memory_space<vmem>>)
    %c2_106 = arith.constant 2 : index
    %170 = memref.load %arg1[%c2_106] : memref<32xi32, #tpu.memory_space<smem>>
    %c2_i32_107 = arith.constant 2 : i32
    %c0_i32_108 = arith.constant 0 : i32
    %171 = tpu.memref_slice %arg3[%170, %c0_i32_108] : memref<8192x256xf32, #tpu.memory_space<any>> -> memref<1x256xf32, #tpu.memory_space<any>>
    %c2_i32_109 = arith.constant 2 : i32
    %c0_i32_110 = arith.constant 0 : i32
    %172 = tpu.memref_slice %arg5[%c2_i32_109, %c0_i32_110] : memref<32x256xf32, #tpu.memory_space<vmem>> -> memref<1x256xf32, #tpu.memory_space<vmem>>
    %173 = tpu.memref_slice %arg6[%c2_i32_107] : memref<32x!tpu.dma_semaphore, #tpu.memory_space<semaphore_mem>> -> memref<1x!tpu.dma_semaphore, #tpu.memory_space<semaphore_mem>>
    %174 = tpu.memref_squeeze %173 : memref<1x!tpu.dma_semaphore, #tpu.memory_space<semaphore_mem>> -> memref<!tpu.dma_semaphore, #tpu.memory_space<semaphore_mem>>
    tpu.wait_dma2 semaphore(%174 : memref<!tpu.dma_semaphore, #tpu.memory_space<semaphore_mem>>) src(%171 : memref<1x256xf32, #tpu.memory_space<any>>) dst(%172 : memref<1x256xf32, #tpu.memory_space<vmem>>)
    %c3_111 = arith.constant 3 : index
    %175 = memref.load %arg1[%c3_111] : memref<32xi32, #tpu.memory_space<smem>>
    %c3_i32_112 = arith.constant 3 : i32
    %c0_i32_113 = arith.constant 0 : i32
    %176 = tpu.memref_slice %arg3[%175, %c0_i32_113] : memref<8192x256xf32, #tpu.memory_space<any>> -> memref<1x256xf32, #tpu.memory_space<any>>
    %c3_i32_114 = arith.constant 3 : i32
    %c0_i32_115 = arith.constant 0 : i32
    %177 = tpu.memref_slice %arg5[%c3_i32_114, %c0_i32_115] : memref<32x256xf32, #tpu.memory_space<vmem>> -> memref<1x256xf32, #tpu.memory_space<vmem>>
    %178 = tpu.memref_slice %arg6[%c3_i32_112] : memref<32x!tpu.dma_semaphore, #tpu.memory_space<semaphore_mem>> -> memref<1x!tpu.dma_semaphore, #tpu.memory_space<semaphore_mem>>
    %179 = tpu.memref_squeeze %178 : memref<1x!tpu.dma_semaphore, #tpu.memory_space<semaphore_mem>> -> memref<!tpu.dma_semaphore, #tpu.memory_space<semaphore_mem>>
    tpu.wait_dma2 semaphore(%179 : memref<!tpu.dma_semaphore, #tpu.memory_space<semaphore_mem>>) src(%176 : memref<1x256xf32, #tpu.memory_space<any>>) dst(%177 : memref<1x256xf32, #tpu.memory_space<vmem>>)
    %c4_116 = arith.constant 4 : index
    %180 = memref.load %arg1[%c4_116] : memref<32xi32, #tpu.memory_space<smem>>
    %c4_i32_117 = arith.constant 4 : i32
    %c0_i32_118 = arith.constant 0 : i32
    %181 = tpu.memref_slice %arg3[%180, %c0_i32_118] : memref<8192x256xf32, #tpu.memory_space<any>> -> memref<1x256xf32, #tpu.memory_space<any>>
    %c4_i32_119 = arith.constant 4 : i32
    %c0_i32_120 = arith.constant 0 : i32
    %182 = tpu.memref_slice %arg5[%c4_i32_119, %c0_i32_120] : memref<32x256xf32, #tpu.memory_space<vmem>> -> memref<1x256xf32, #tpu.memory_space<vmem>>
    %183 = tpu.memref_slice %arg6[%c4_i32_117] : memref<32x!tpu.dma_semaphore, #tpu.memory_space<semaphore_mem>> -> memref<1x!tpu.dma_semaphore, #tpu.memory_space<semaphore_mem>>
    %184 = tpu.memref_squeeze %183 : memref<1x!tpu.dma_semaphore, #tpu.memory_space<semaphore_mem>> -> memref<!tpu.dma_semaphore, #tpu.memory_space<semaphore_mem>>
    tpu.wait_dma2 semaphore(%184 : memref<!tpu.dma_semaphore, #tpu.memory_space<semaphore_mem>>) src(%181 : memref<1x256xf32, #tpu.memory_space<any>>) dst(%182 : memref<1x256xf32, #tpu.memory_space<vmem>>)
    %c5_121 = arith.constant 5 : index
    %185 = memref.load %arg1[%c5_121] : memref<32xi32, #tpu.memory_space<smem>>
    %c5_i32_122 = arith.constant 5 : i32
    %c0_i32_123 = arith.constant 0 : i32
    %186 = tpu.memref_slice %arg3[%185, %c0_i32_123] : memref<8192x256xf32, #tpu.memory_space<any>> -> memref<1x256xf32, #tpu.memory_space<any>>
    %c5_i32_124 = arith.constant 5 : i32
    %c0_i32_125 = arith.constant 0 : i32
    %187 = tpu.memref_slice %arg5[%c5_i32_124, %c0_i32_125] : memref<32x256xf32, #tpu.memory_space<vmem>> -> memref<1x256xf32, #tpu.memory_space<vmem>>
    %188 = tpu.memref_slice %arg6[%c5_i32_122] : memref<32x!tpu.dma_semaphore, #tpu.memory_space<semaphore_mem>> -> memref<1x!tpu.dma_semaphore, #tpu.memory_space<semaphore_mem>>
    %189 = tpu.memref_squeeze %188 : memref<1x!tpu.dma_semaphore, #tpu.memory_space<semaphore_mem>> -> memref<!tpu.dma_semaphore, #tpu.memory_space<semaphore_mem>>
    tpu.wait_dma2 semaphore(%189 : memref<!tpu.dma_semaphore, #tpu.memory_space<semaphore_mem>>) src(%186 : memref<1x256xf32, #tpu.memory_space<any>>) dst(%187 : memref<1x256xf32, #tpu.memory_space<vmem>>)
    %c6_126 = arith.constant 6 : index
    %190 = memref.load %arg1[%c6_126] : memref<32xi32, #tpu.memory_space<smem>>
    %c6_i32_127 = arith.constant 6 : i32
    %c0_i32_128 = arith.constant 0 : i32
    %191 = tpu.memref_slice %arg3[%190, %c0_i32_128] : memref<8192x256xf32, #tpu.memory_space<any>> -> memref<1x256xf32, #tpu.memory_space<any>>
    %c6_i32_129 = arith.constant 6 : i32
    %c0_i32_130 = arith.constant 0 : i32
    %192 = tpu.memref_slice %arg5[%c6_i32_129, %c0_i32_130] : memref<32x256xf32, #tpu.memory_space<vmem>> -> memref<1x256xf32, #tpu.memory_space<vmem>>
    %193 = tpu.memref_slice %arg6[%c6_i32_127] : memref<32x!tpu.dma_semaphore, #tpu.memory_space<semaphore_mem>> -> memref<1x!tpu.dma_semaphore, #tpu.memory_space<semaphore_mem>>
    %194 = tpu.memref_squeeze %193 : memref<1x!tpu.dma_semaphore, #tpu.memory_space<semaphore_mem>> -> memref<!tpu.dma_semaphore, #tpu.memory_space<semaphore_mem>>
    tpu.wait_dma2 semaphore(%194 : memref<!tpu.dma_semaphore, #tpu.memory_space<semaphore_mem>>) src(%191 : memref<1x256xf32, #tpu.memory_space<any>>) dst(%192 : memref<1x256xf32, #tpu.memory_space<vmem>>)
    %c7_131 = arith.constant 7 : index
    %195 = memref.load %arg1[%c7_131] : memref<32xi32, #tpu.memory_space<smem>>
    %c7_i32_132 = arith.constant 7 : i32
    %c0_i32_133 = arith.constant 0 : i32
    %196 = tpu.memref_slice %arg3[%195, %c0_i32_133] : memref<8192x256xf32, #tpu.memory_space<any>> -> memref<1x256xf32, #tpu.memory_space<any>>
    %c7_i32_134 = arith.constant 7 : i32
    %c0_i32_135 = arith.constant 0 : i32
    %197 = tpu.memref_slice %arg5[%c7_i32_134, %c0_i32_135] : memref<32x256xf32, #tpu.memory_space<vmem>> -> memref<1x256xf32, #tpu.memory_space<vmem>>
    %198 = tpu.memref_slice %arg6[%c7_i32_132] : memref<32x!tpu.dma_semaphore, #tpu.memory_space<semaphore_mem>> -> memref<1x!tpu.dma_semaphore, #tpu.memory_space<semaphore_mem>>
    %199 = tpu.memref_squeeze %198 : memref<1x!tpu.dma_semaphore, #tpu.memory_space<semaphore_mem>> -> memref<!tpu.dma_semaphore, #tpu.memory_space<semaphore_mem>>
    tpu.wait_dma2 semaphore(%199 : memref<!tpu.dma_semaphore, #tpu.memory_space<semaphore_mem>>) src(%196 : memref<1x256xf32, #tpu.memory_space<any>>) dst(%197 : memref<1x256xf32, #tpu.memory_space<vmem>>)
    %c8_136 = arith.constant 8 : index
    %200 = memref.load %arg1[%c8_136] : memref<32xi32, #tpu.memory_space<smem>>
    %c8_i32_137 = arith.constant 8 : i32
    %c0_i32_138 = arith.constant 0 : i32
    %201 = tpu.memref_slice %arg3[%200, %c0_i32_138] : memref<8192x256xf32, #tpu.memory_space<any>> -> memref<1x256xf32, #tpu.memory_space<any>>
    %c8_i32_139 = arith.constant 8 : i32
    %c0_i32_140 = arith.constant 0 : i32
    %202 = tpu.memref_slice %arg5[%c8_i32_139, %c0_i32_140] : memref<32x256xf32, #tpu.memory_space<vmem>> -> memref<1x256xf32, #tpu.memory_space<vmem>>
    %203 = tpu.memref_slice %arg6[%c8_i32_137] : memref<32x!tpu.dma_semaphore, #tpu.memory_space<semaphore_mem>> -> memref<1x!tpu.dma_semaphore, #tpu.memory_space<semaphore_mem>>
    %204 = tpu.memref_squeeze %203 : memref<1x!tpu.dma_semaphore, #tpu.memory_space<semaphore_mem>> -> memref<!tpu.dma_semaphore, #tpu.memory_space<semaphore_mem>>
    tpu.wait_dma2 semaphore(%204 : memref<!tpu.dma_semaphore, #tpu.memory_space<semaphore_mem>>) src(%201 : memref<1x256xf32, #tpu.memory_space<any>>) dst(%202 : memref<1x256xf32, #tpu.memory_space<vmem>>)
    %c9_141 = arith.constant 9 : index
    %205 = memref.load %arg1[%c9_141] : memref<32xi32, #tpu.memory_space<smem>>
    %c9_i32_142 = arith.constant 9 : i32
    %c0_i32_143 = arith.constant 0 : i32
    %206 = tpu.memref_slice %arg3[%205, %c0_i32_143] : memref<8192x256xf32, #tpu.memory_space<any>> -> memref<1x256xf32, #tpu.memory_space<any>>
    %c9_i32_144 = arith.constant 9 : i32
    %c0_i32_145 = arith.constant 0 : i32
    %207 = tpu.memref_slice %arg5[%c9_i32_144, %c0_i32_145] : memref<32x256xf32, #tpu.memory_space<vmem>> -> memref<1x256xf32, #tpu.memory_space<vmem>>
    %208 = tpu.memref_slice %arg6[%c9_i32_142] : memref<32x!tpu.dma_semaphore, #tpu.memory_space<semaphore_mem>> -> memref<1x!tpu.dma_semaphore, #tpu.memory_space<semaphore_mem>>
    %209 = tpu.memref_squeeze %208 : memref<1x!tpu.dma_semaphore, #tpu.memory_space<semaphore_mem>> -> memref<!tpu.dma_semaphore, #tpu.memory_space<semaphore_mem>>
    tpu.wait_dma2 semaphore(%209 : memref<!tpu.dma_semaphore, #tpu.memory_space<semaphore_mem>>) src(%206 : memref<1x256xf32, #tpu.memory_space<any>>) dst(%207 : memref<1x256xf32, #tpu.memory_space<vmem>>)
    %c10_146 = arith.constant 10 : index
    %210 = memref.load %arg1[%c10_146] : memref<32xi32, #tpu.memory_space<smem>>
    %c10_i32_147 = arith.constant 10 : i32
    %c0_i32_148 = arith.constant 0 : i32
    %211 = tpu.memref_slice %arg3[%210, %c0_i32_148] : memref<8192x256xf32, #tpu.memory_space<any>> -> memref<1x256xf32, #tpu.memory_space<any>>
    %c10_i32_149 = arith.constant 10 : i32
    %c0_i32_150 = arith.constant 0 : i32
    %212 = tpu.memref_slice %arg5[%c10_i32_149, %c0_i32_150] : memref<32x256xf32, #tpu.memory_space<vmem>> -> memref<1x256xf32, #tpu.memory_space<vmem>>
    %213 = tpu.memref_slice %arg6[%c10_i32_147] : memref<32x!tpu.dma_semaphore, #tpu.memory_space<semaphore_mem>> -> memref<1x!tpu.dma_semaphore, #tpu.memory_space<semaphore_mem>>
    %214 = tpu.memref_squeeze %213 : memref<1x!tpu.dma_semaphore, #tpu.memory_space<semaphore_mem>> -> memref<!tpu.dma_semaphore, #tpu.memory_space<semaphore_mem>>
    tpu.wait_dma2 semaphore(%214 : memref<!tpu.dma_semaphore, #tpu.memory_space<semaphore_mem>>) src(%211 : memref<1x256xf32, #tpu.memory_space<any>>) dst(%212 : memref<1x256xf32, #tpu.memory_space<vmem>>)
    %c11_151 = arith.constant 11 : index
    %215 = memref.load %arg1[%c11_151] : memref<32xi32, #tpu.memory_space<smem>>
    %c11_i32_152 = arith.constant 11 : i32
    %c0_i32_153 = arith.constant 0 : i32
    %216 = tpu.memref_slice %arg3[%215, %c0_i32_153] : memref<8192x256xf32, #tpu.memory_space<any>> -> memref<1x256xf32, #tpu.memory_space<any>>
    %c11_i32_154 = arith.constant 11 : i32
    %c0_i32_155 = arith.constant 0 : i32
    %217 = tpu.memref_slice %arg5[%c11_i32_154, %c0_i32_155] : memref<32x256xf32, #tpu.memory_space<vmem>> -> memref<1x256xf32, #tpu.memory_space<vmem>>
    %218 = tpu.memref_slice %arg6[%c11_i32_152] : memref<32x!tpu.dma_semaphore, #tpu.memory_space<semaphore_mem>> -> memref<1x!tpu.dma_semaphore, #tpu.memory_space<semaphore_mem>>
    %219 = tpu.memref_squeeze %218 : memref<1x!tpu.dma_semaphore, #tpu.memory_space<semaphore_mem>> -> memref<!tpu.dma_semaphore, #tpu.memory_space<semaphore_mem>>
    tpu.wait_dma2 semaphore(%219 : memref<!tpu.dma_semaphore, #tpu.memory_space<semaphore_mem>>) src(%216 : memref<1x256xf32, #tpu.memory_space<any>>) dst(%217 : memref<1x256xf32, #tpu.memory_space<vmem>>)
    %c12_156 = arith.constant 12 : index
    %220 = memref.load %arg1[%c12_156] : memref<32xi32, #tpu.memory_space<smem>>
    %c12_i32_157 = arith.constant 12 : i32
    %c0_i32_158 = arith.constant 0 : i32
    %221 = tpu.memref_slice %arg3[%220, %c0_i32_158] : memref<8192x256xf32, #tpu.memory_space<any>> -> memref<1x256xf32, #tpu.memory_space<any>>
    %c12_i32_159 = arith.constant 12 : i32
    %c0_i32_160 = arith.constant 0 : i32
    %222 = tpu.memref_slice %arg5[%c12_i32_159, %c0_i32_160] : memref<32x256xf32, #tpu.memory_space<vmem>> -> memref<1x256xf32, #tpu.memory_space<vmem>>
    %223 = tpu.memref_slice %arg6[%c12_i32_157] : memref<32x!tpu.dma_semaphore, #tpu.memory_space<semaphore_mem>> -> memref<1x!tpu.dma_semaphore, #tpu.memory_space<semaphore_mem>>
    %224 = tpu.memref_squeeze %223 : memref<1x!tpu.dma_semaphore, #tpu.memory_space<semaphore_mem>> -> memref<!tpu.dma_semaphore, #tpu.memory_space<semaphore_mem>>
    tpu.wait_dma2 semaphore(%224 : memref<!tpu.dma_semaphore, #tpu.memory_space<semaphore_mem>>) src(%221 : memref<1x256xf32, #tpu.memory_space<any>>) dst(%222 : memref<1x256xf32, #tpu.memory_space<vmem>>)
    %c13_161 = arith.constant 13 : index
    %225 = memref.load %arg1[%c13_161] : memref<32xi32, #tpu.memory_space<smem>>
    %c13_i32_162 = arith.constant 13 : i32
    %c0_i32_163 = arith.constant 0 : i32
    %226 = tpu.memref_slice %arg3[%225, %c0_i32_163] : memref<8192x256xf32, #tpu.memory_space<any>> -> memref<1x256xf32, #tpu.memory_space<any>>
    %c13_i32_164 = arith.constant 13 : i32
    %c0_i32_165 = arith.constant 0 : i32
    %227 = tpu.memref_slice %arg5[%c13_i32_164, %c0_i32_165] : memref<32x256xf32, #tpu.memory_space<vmem>> -> memref<1x256xf32, #tpu.memory_space<vmem>>
    %228 = tpu.memref_slice %arg6[%c13_i32_162] : memref<32x!tpu.dma_semaphore, #tpu.memory_space<semaphore_mem>> -> memref<1x!tpu.dma_semaphore, #tpu.memory_space<semaphore_mem>>
    %229 = tpu.memref_squeeze %228 : memref<1x!tpu.dma_semaphore, #tpu.memory_space<semaphore_mem>> -> memref<!tpu.dma_semaphore, #tpu.memory_space<semaphore_mem>>
    tpu.wait_dma2 semaphore(%229 : memref<!tpu.dma_semaphore, #tpu.memory_space<semaphore_mem>>) src(%226 : memref<1x256xf32, #tpu.memory_space<any>>) dst(%227 : memref<1x256xf32, #tpu.memory_space<vmem>>)
    %c14_166 = arith.constant 14 : index
    %230 = memref.load %arg1[%c14_166] : memref<32xi32, #tpu.memory_space<smem>>
    %c14_i32_167 = arith.constant 14 : i32
    %c0_i32_168 = arith.constant 0 : i32
    %231 = tpu.memref_slice %arg3[%230, %c0_i32_168] : memref<8192x256xf32, #tpu.memory_space<any>> -> memref<1x256xf32, #tpu.memory_space<any>>
    %c14_i32_169 = arith.constant 14 : i32
    %c0_i32_170 = arith.constant 0 : i32
    %232 = tpu.memref_slice %arg5[%c14_i32_169, %c0_i32_170] : memref<32x256xf32, #tpu.memory_space<vmem>> -> memref<1x256xf32, #tpu.memory_space<vmem>>
    %233 = tpu.memref_slice %arg6[%c14_i32_167] : memref<32x!tpu.dma_semaphore, #tpu.memory_space<semaphore_mem>> -> memref<1x!tpu.dma_semaphore, #tpu.memory_space<semaphore_mem>>
    %234 = tpu.memref_squeeze %233 : memref<1x!tpu.dma_semaphore, #tpu.memory_space<semaphore_mem>> -> memref<!tpu.dma_semaphore, #tpu.memory_space<semaphore_mem>>
    tpu.wait_dma2 semaphore(%234 : memref<!tpu.dma_semaphore, #tpu.memory_space<semaphore_mem>>) src(%231 : memref<1x256xf32, #tpu.memory_space<any>>) dst(%232 : memref<1x256xf32, #tpu.memory_space<vmem>>)
    %c15_171 = arith.constant 15 : index
    %235 = memref.load %arg1[%c15_171] : memref<32xi32, #tpu.memory_space<smem>>
    %c15_i32_172 = arith.constant 15 : i32
    %c0_i32_173 = arith.constant 0 : i32
    %236 = tpu.memref_slice %arg3[%235, %c0_i32_173] : memref<8192x256xf32, #tpu.memory_space<any>> -> memref<1x256xf32, #tpu.memory_space<any>>
    %c15_i32_174 = arith.constant 15 : i32
    %c0_i32_175 = arith.constant 0 : i32
    %237 = tpu.memref_slice %arg5[%c15_i32_174, %c0_i32_175] : memref<32x256xf32, #tpu.memory_space<vmem>> -> memref<1x256xf32, #tpu.memory_space<vmem>>
    %238 = tpu.memref_slice %arg6[%c15_i32_172] : memref<32x!tpu.dma_semaphore, #tpu.memory_space<semaphore_mem>> -> memref<1x!tpu.dma_semaphore, #tpu.memory_space<semaphore_mem>>
    %239 = tpu.memref_squeeze %238 : memref<1x!tpu.dma_semaphore, #tpu.memory_space<semaphore_mem>> -> memref<!tpu.dma_semaphore, #tpu.memory_space<semaphore_mem>>
    tpu.wait_dma2 semaphore(%239 : memref<!tpu.dma_semaphore, #tpu.memory_space<semaphore_mem>>) src(%236 : memref<1x256xf32, #tpu.memory_space<any>>) dst(%237 : memref<1x256xf32, #tpu.memory_space<vmem>>)
    %c16_176 = arith.constant 16 : index
    %240 = memref.load %arg1[%c16_176] : memref<32xi32, #tpu.memory_space<smem>>
    %c16_i32_177 = arith.constant 16 : i32
    %c0_i32_178 = arith.constant 0 : i32
    %241 = tpu.memref_slice %arg3[%240, %c0_i32_178] : memref<8192x256xf32, #tpu.memory_space<any>> -> memref<1x256xf32, #tpu.memory_space<any>>
    %c16_i32_179 = arith.constant 16 : i32
    %c0_i32_180 = arith.constant 0 : i32
    %242 = tpu.memref_slice %arg5[%c16_i32_179, %c0_i32_180] : memref<32x256xf32, #tpu.memory_space<vmem>> -> memref<1x256xf32, #tpu.memory_space<vmem>>
    %243 = tpu.memref_slice %arg6[%c16_i32_177] : memref<32x!tpu.dma_semaphore, #tpu.memory_space<semaphore_mem>> -> memref<1x!tpu.dma_semaphore, #tpu.memory_space<semaphore_mem>>
    %244 = tpu.memref_squeeze %243 : memref<1x!tpu.dma_semaphore, #tpu.memory_space<semaphore_mem>> -> memref<!tpu.dma_semaphore, #tpu.memory_space<semaphore_mem>>
    tpu.wait_dma2 semaphore(%244 : memref<!tpu.dma_semaphore, #tpu.memory_space<semaphore_mem>>) src(%241 : memref<1x256xf32, #tpu.memory_space<any>>) dst(%242 : memref<1x256xf32, #tpu.memory_space<vmem>>)
    %c17_181 = arith.constant 17 : index
    %245 = memref.load %arg1[%c17_181] : memref<32xi32, #tpu.memory_space<smem>>
    %c17_i32_182 = arith.constant 17 : i32
    %c0_i32_183 = arith.constant 0 : i32
    %246 = tpu.memref_slice %arg3[%245, %c0_i32_183] : memref<8192x256xf32, #tpu.memory_space<any>> -> memref<1x256xf32, #tpu.memory_space<any>>
    %c17_i32_184 = arith.constant 17 : i32
    %c0_i32_185 = arith.constant 0 : i32
    %247 = tpu.memref_slice %arg5[%c17_i32_184, %c0_i32_185] : memref<32x256xf32, #tpu.memory_space<vmem>> -> memref<1x256xf32, #tpu.memory_space<vmem>>
    %248 = tpu.memref_slice %arg6[%c17_i32_182] : memref<32x!tpu.dma_semaphore, #tpu.memory_space<semaphore_mem>> -> memref<1x!tpu.dma_semaphore, #tpu.memory_space<semaphore_mem>>
    %249 = tpu.memref_squeeze %248 : memref<1x!tpu.dma_semaphore, #tpu.memory_space<semaphore_mem>> -> memref<!tpu.dma_semaphore, #tpu.memory_space<semaphore_mem>>
    tpu.wait_dma2 semaphore(%249 : memref<!tpu.dma_semaphore, #tpu.memory_space<semaphore_mem>>) src(%246 : memref<1x256xf32, #tpu.memory_space<any>>) dst(%247 : memref<1x256xf32, #tpu.memory_space<vmem>>)
    %c18_186 = arith.constant 18 : index
    %250 = memref.load %arg1[%c18_186] : memref<32xi32, #tpu.memory_space<smem>>
    %c18_i32_187 = arith.constant 18 : i32
    %c0_i32_188 = arith.constant 0 : i32
    %251 = tpu.memref_slice %arg3[%250, %c0_i32_188] : memref<8192x256xf32, #tpu.memory_space<any>> -> memref<1x256xf32, #tpu.memory_space<any>>
    %c18_i32_189 = arith.constant 18 : i32
    %c0_i32_190 = arith.constant 0 : i32
    %252 = tpu.memref_slice %arg5[%c18_i32_189, %c0_i32_190] : memref<32x256xf32, #tpu.memory_space<vmem>> -> memref<1x256xf32, #tpu.memory_space<vmem>>
    %253 = tpu.memref_slice %arg6[%c18_i32_187] : memref<32x!tpu.dma_semaphore, #tpu.memory_space<semaphore_mem>> -> memref<1x!tpu.dma_semaphore, #tpu.memory_space<semaphore_mem>>
    %254 = tpu.memref_squeeze %253 : memref<1x!tpu.dma_semaphore, #tpu.memory_space<semaphore_mem>> -> memref<!tpu.dma_semaphore, #tpu.memory_space<semaphore_mem>>
    tpu.wait_dma2 semaphore(%254 : memref<!tpu.dma_semaphore, #tpu.memory_space<semaphore_mem>>) src(%251 : memref<1x256xf32, #tpu.memory_space<any>>) dst(%252 : memref<1x256xf32, #tpu.memory_space<vmem>>)
    %c19_191 = arith.constant 19 : index
    %255 = memref.load %arg1[%c19_191] : memref<32xi32, #tpu.memory_space<smem>>
    %c19_i32_192 = arith.constant 19 : i32
    %c0_i32_193 = arith.constant 0 : i32
    %256 = tpu.memref_slice %arg3[%255, %c0_i32_193] : memref<8192x256xf32, #tpu.memory_space<any>> -> memref<1x256xf32, #tpu.memory_space<any>>
    %c19_i32_194 = arith.constant 19 : i32
    %c0_i32_195 = arith.constant 0 : i32
    %257 = tpu.memref_slice %arg5[%c19_i32_194, %c0_i32_195] : memref<32x256xf32, #tpu.memory_space<vmem>> -> memref<1x256xf32, #tpu.memory_space<vmem>>
    %258 = tpu.memref_slice %arg6[%c19_i32_192] : memref<32x!tpu.dma_semaphore, #tpu.memory_space<semaphore_mem>> -> memref<1x!tpu.dma_semaphore, #tpu.memory_space<semaphore_mem>>
    %259 = tpu.memref_squeeze %258 : memref<1x!tpu.dma_semaphore, #tpu.memory_space<semaphore_mem>> -> memref<!tpu.dma_semaphore, #tpu.memory_space<semaphore_mem>>
    tpu.wait_dma2 semaphore(%259 : memref<!tpu.dma_semaphore, #tpu.memory_space<semaphore_mem>>) src(%256 : memref<1x256xf32, #tpu.memory_space<any>>) dst(%257 : memref<1x256xf32, #tpu.memory_space<vmem>>)
    %c20_196 = arith.constant 20 : index
    %260 = memref.load %arg1[%c20_196] : memref<32xi32, #tpu.memory_space<smem>>
    %c20_i32_197 = arith.constant 20 : i32
    %c0_i32_198 = arith.constant 0 : i32
    %261 = tpu.memref_slice %arg3[%260, %c0_i32_198] : memref<8192x256xf32, #tpu.memory_space<any>> -> memref<1x256xf32, #tpu.memory_space<any>>
    %c20_i32_199 = arith.constant 20 : i32
    %c0_i32_200 = arith.constant 0 : i32
    %262 = tpu.memref_slice %arg5[%c20_i32_199, %c0_i32_200] : memref<32x256xf32, #tpu.memory_space<vmem>> -> memref<1x256xf32, #tpu.memory_space<vmem>>
    %263 = tpu.memref_slice %arg6[%c20_i32_197] : memref<32x!tpu.dma_semaphore, #tpu.memory_space<semaphore_mem>> -> memref<1x!tpu.dma_semaphore, #tpu.memory_space<semaphore_mem>>
    %264 = tpu.memref_squeeze %263 : memref<1x!tpu.dma_semaphore, #tpu.memory_space<semaphore_mem>> -> memref<!tpu.dma_semaphore, #tpu.memory_space<semaphore_mem>>
    tpu.wait_dma2 semaphore(%264 : memref<!tpu.dma_semaphore, #tpu.memory_space<semaphore_mem>>) src(%261 : memref<1x256xf32, #tpu.memory_space<any>>) dst(%262 : memref<1x256xf32, #tpu.memory_space<vmem>>)
    %c21_201 = arith.constant 21 : index
    %265 = memref.load %arg1[%c21_201] : memref<32xi32, #tpu.memory_space<smem>>
    %c21_i32_202 = arith.constant 21 : i32
    %c0_i32_203 = arith.constant 0 : i32
    %266 = tpu.memref_slice %arg3[%265, %c0_i32_203] : memref<8192x256xf32, #tpu.memory_space<any>> -> memref<1x256xf32, #tpu.memory_space<any>>
    %c21_i32_204 = arith.constant 21 : i32
    %c0_i32_205 = arith.constant 0 : i32
    %267 = tpu.memref_slice %arg5[%c21_i32_204, %c0_i32_205] : memref<32x256xf32, #tpu.memory_space<vmem>> -> memref<1x256xf32, #tpu.memory_space<vmem>>
    %268 = tpu.memref_slice %arg6[%c21_i32_202] : memref<32x!tpu.dma_semaphore, #tpu.memory_space<semaphore_mem>> -> memref<1x!tpu.dma_semaphore, #tpu.memory_space<semaphore_mem>>
    %269 = tpu.memref_squeeze %268 : memref<1x!tpu.dma_semaphore, #tpu.memory_space<semaphore_mem>> -> memref<!tpu.dma_semaphore, #tpu.memory_space<semaphore_mem>>
    tpu.wait_dma2 semaphore(%269 : memref<!tpu.dma_semaphore, #tpu.memory_space<semaphore_mem>>) src(%266 : memref<1x256xf32, #tpu.memory_space<any>>) dst(%267 : memref<1x256xf32, #tpu.memory_space<vmem>>)
    %c22_206 = arith.constant 22 : index
    %270 = memref.load %arg1[%c22_206] : memref<32xi32, #tpu.memory_space<smem>>
    %c22_i32_207 = arith.constant 22 : i32
    %c0_i32_208 = arith.constant 0 : i32
    %271 = tpu.memref_slice %arg3[%270, %c0_i32_208] : memref<8192x256xf32, #tpu.memory_space<any>> -> memref<1x256xf32, #tpu.memory_space<any>>
    %c22_i32_209 = arith.constant 22 : i32
    %c0_i32_210 = arith.constant 0 : i32
    %272 = tpu.memref_slice %arg5[%c22_i32_209, %c0_i32_210] : memref<32x256xf32, #tpu.memory_space<vmem>> -> memref<1x256xf32, #tpu.memory_space<vmem>>
    %273 = tpu.memref_slice %arg6[%c22_i32_207] : memref<32x!tpu.dma_semaphore, #tpu.memory_space<semaphore_mem>> -> memref<1x!tpu.dma_semaphore, #tpu.memory_space<semaphore_mem>>
    %274 = tpu.memref_squeeze %273 : memref<1x!tpu.dma_semaphore, #tpu.memory_space<semaphore_mem>> -> memref<!tpu.dma_semaphore, #tpu.memory_space<semaphore_mem>>
    tpu.wait_dma2 semaphore(%274 : memref<!tpu.dma_semaphore, #tpu.memory_space<semaphore_mem>>) src(%271 : memref<1x256xf32, #tpu.memory_space<any>>) dst(%272 : memref<1x256xf32, #tpu.memory_space<vmem>>)
    %c23_211 = arith.constant 23 : index
    %275 = memref.load %arg1[%c23_211] : memref<32xi32, #tpu.memory_space<smem>>
    %c23_i32_212 = arith.constant 23 : i32
    %c0_i32_213 = arith.constant 0 : i32
    %276 = tpu.memref_slice %arg3[%275, %c0_i32_213] : memref<8192x256xf32, #tpu.memory_space<any>> -> memref<1x256xf32, #tpu.memory_space<any>>
    %c23_i32_214 = arith.constant 23 : i32
    %c0_i32_215 = arith.constant 0 : i32
    %277 = tpu.memref_slice %arg5[%c23_i32_214, %c0_i32_215] : memref<32x256xf32, #tpu.memory_space<vmem>> -> memref<1x256xf32, #tpu.memory_space<vmem>>
    %278 = tpu.memref_slice %arg6[%c23_i32_212] : memref<32x!tpu.dma_semaphore, #tpu.memory_space<semaphore_mem>> -> memref<1x!tpu.dma_semaphore, #tpu.memory_space<semaphore_mem>>
    %279 = tpu.memref_squeeze %278 : memref<1x!tpu.dma_semaphore, #tpu.memory_space<semaphore_mem>> -> memref<!tpu.dma_semaphore, #tpu.memory_space<semaphore_mem>>
    tpu.wait_dma2 semaphore(%279 : memref<!tpu.dma_semaphore, #tpu.memory_space<semaphore_mem>>) src(%276 : memref<1x256xf32, #tpu.memory_space<any>>) dst(%277 : memref<1x256xf32, #tpu.memory_space<vmem>>)
    %c24_216 = arith.constant 24 : index
    %280 = memref.load %arg1[%c24_216] : memref<32xi32, #tpu.memory_space<smem>>
    %c24_i32_217 = arith.constant 24 : i32
    %c0_i32_218 = arith.constant 0 : i32
    %281 = tpu.memref_slice %arg3[%280, %c0_i32_218] : memref<8192x256xf32, #tpu.memory_space<any>> -> memref<1x256xf32, #tpu.memory_space<any>>
    %c24_i32_219 = arith.constant 24 : i32
    %c0_i32_220 = arith.constant 0 : i32
    %282 = tpu.memref_slice %arg5[%c24_i32_219, %c0_i32_220] : memref<32x256xf32, #tpu.memory_space<vmem>> -> memref<1x256xf32, #tpu.memory_space<vmem>>
    %283 = tpu.memref_slice %arg6[%c24_i32_217] : memref<32x!tpu.dma_semaphore, #tpu.memory_space<semaphore_mem>> -> memref<1x!tpu.dma_semaphore, #tpu.memory_space<semaphore_mem>>
    %284 = tpu.memref_squeeze %283 : memref<1x!tpu.dma_semaphore, #tpu.memory_space<semaphore_mem>> -> memref<!tpu.dma_semaphore, #tpu.memory_space<semaphore_mem>>
    tpu.wait_dma2 semaphore(%284 : memref<!tpu.dma_semaphore, #tpu.memory_space<semaphore_mem>>) src(%281 : memref<1x256xf32, #tpu.memory_space<any>>) dst(%282 : memref<1x256xf32, #tpu.memory_space<vmem>>)
    %c25_221 = arith.constant 25 : index
    %285 = memref.load %arg1[%c25_221] : memref<32xi32, #tpu.memory_space<smem>>
    %c25_i32_222 = arith.constant 25 : i32
    %c0_i32_223 = arith.constant 0 : i32
    %286 = tpu.memref_slice %arg3[%285, %c0_i32_223] : memref<8192x256xf32, #tpu.memory_space<any>> -> memref<1x256xf32, #tpu.memory_space<any>>
    %c25_i32_224 = arith.constant 25 : i32
    %c0_i32_225 = arith.constant 0 : i32
    %287 = tpu.memref_slice %arg5[%c25_i32_224, %c0_i32_225] : memref<32x256xf32, #tpu.memory_space<vmem>> -> memref<1x256xf32, #tpu.memory_space<vmem>>
    %288 = tpu.memref_slice %arg6[%c25_i32_222] : memref<32x!tpu.dma_semaphore, #tpu.memory_space<semaphore_mem>> -> memref<1x!tpu.dma_semaphore, #tpu.memory_space<semaphore_mem>>
    %289 = tpu.memref_squeeze %288 : memref<1x!tpu.dma_semaphore, #tpu.memory_space<semaphore_mem>> -> memref<!tpu.dma_semaphore, #tpu.memory_space<semaphore_mem>>
    tpu.wait_dma2 semaphore(%289 : memref<!tpu.dma_semaphore, #tpu.memory_space<semaphore_mem>>) src(%286 : memref<1x256xf32, #tpu.memory_space<any>>) dst(%287 : memref<1x256xf32, #tpu.memory_space<vmem>>)
    %c26_226 = arith.constant 26 : index
    %290 = memref.load %arg1[%c26_226] : memref<32xi32, #tpu.memory_space<smem>>
    %c26_i32_227 = arith.constant 26 : i32
    %c0_i32_228 = arith.constant 0 : i32
    %291 = tpu.memref_slice %arg3[%290, %c0_i32_228] : memref<8192x256xf32, #tpu.memory_space<any>> -> memref<1x256xf32, #tpu.memory_space<any>>
    %c26_i32_229 = arith.constant 26 : i32
    %c0_i32_230 = arith.constant 0 : i32
    %292 = tpu.memref_slice %arg5[%c26_i32_229, %c0_i32_230] : memref<32x256xf32, #tpu.memory_space<vmem>> -> memref<1x256xf32, #tpu.memory_space<vmem>>
    %293 = tpu.memref_slice %arg6[%c26_i32_227] : memref<32x!tpu.dma_semaphore, #tpu.memory_space<semaphore_mem>> -> memref<1x!tpu.dma_semaphore, #tpu.memory_space<semaphore_mem>>
    %294 = tpu.memref_squeeze %293 : memref<1x!tpu.dma_semaphore, #tpu.memory_space<semaphore_mem>> -> memref<!tpu.dma_semaphore, #tpu.memory_space<semaphore_mem>>
    tpu.wait_dma2 semaphore(%294 : memref<!tpu.dma_semaphore, #tpu.memory_space<semaphore_mem>>) src(%291 : memref<1x256xf32, #tpu.memory_space<any>>) dst(%292 : memref<1x256xf32, #tpu.memory_space<vmem>>)
    %c27_231 = arith.constant 27 : index
    %295 = memref.load %arg1[%c27_231] : memref<32xi32, #tpu.memory_space<smem>>
    %c27_i32_232 = arith.constant 27 : i32
    %c0_i32_233 = arith.constant 0 : i32
    %296 = tpu.memref_slice %arg3[%295, %c0_i32_233] : memref<8192x256xf32, #tpu.memory_space<any>> -> memref<1x256xf32, #tpu.memory_space<any>>
    %c27_i32_234 = arith.constant 27 : i32
    %c0_i32_235 = arith.constant 0 : i32
    %297 = tpu.memref_slice %arg5[%c27_i32_234, %c0_i32_235] : memref<32x256xf32, #tpu.memory_space<vmem>> -> memref<1x256xf32, #tpu.memory_space<vmem>>
    %298 = tpu.memref_slice %arg6[%c27_i32_232] : memref<32x!tpu.dma_semaphore, #tpu.memory_space<semaphore_mem>> -> memref<1x!tpu.dma_semaphore, #tpu.memory_space<semaphore_mem>>
    %299 = tpu.memref_squeeze %298 : memref<1x!tpu.dma_semaphore, #tpu.memory_space<semaphore_mem>> -> memref<!tpu.dma_semaphore, #tpu.memory_space<semaphore_mem>>
    tpu.wait_dma2 semaphore(%299 : memref<!tpu.dma_semaphore, #tpu.memory_space<semaphore_mem>>) src(%296 : memref<1x256xf32, #tpu.memory_space<any>>) dst(%297 : memref<1x256xf32, #tpu.memory_space<vmem>>)
    %c28_236 = arith.constant 28 : index
    %300 = memref.load %arg1[%c28_236] : memref<32xi32, #tpu.memory_space<smem>>
    %c28_i32_237 = arith.constant 28 : i32
    %c0_i32_238 = arith.constant 0 : i32
    %301 = tpu.memref_slice %arg3[%300, %c0_i32_238] : memref<8192x256xf32, #tpu.memory_space<any>> -> memref<1x256xf32, #tpu.memory_space<any>>
    %c28_i32_239 = arith.constant 28 : i32
    %c0_i32_240 = arith.constant 0 : i32
    %302 = tpu.memref_slice %arg5[%c28_i32_239, %c0_i32_240] : memref<32x256xf32, #tpu.memory_space<vmem>> -> memref<1x256xf32, #tpu.memory_space<vmem>>
    %303 = tpu.memref_slice %arg6[%c28_i32_237] : memref<32x!tpu.dma_semaphore, #tpu.memory_space<semaphore_mem>> -> memref<1x!tpu.dma_semaphore, #tpu.memory_space<semaphore_mem>>
    %304 = tpu.memref_squeeze %303 : memref<1x!tpu.dma_semaphore, #tpu.memory_space<semaphore_mem>> -> memref<!tpu.dma_semaphore, #tpu.memory_space<semaphore_mem>>
    tpu.wait_dma2 semaphore(%304 : memref<!tpu.dma_semaphore, #tpu.memory_space<semaphore_mem>>) src(%301 : memref<1x256xf32, #tpu.memory_space<any>>) dst(%302 : memref<1x256xf32, #tpu.memory_space<vmem>>)
    %c29_241 = arith.constant 29 : index
    %305 = memref.load %arg1[%c29_241] : memref<32xi32, #tpu.memory_space<smem>>
    %c29_i32_242 = arith.constant 29 : i32
    %c0_i32_243 = arith.constant 0 : i32
    %306 = tpu.memref_slice %arg3[%305, %c0_i32_243] : memref<8192x256xf32, #tpu.memory_space<any>> -> memref<1x256xf32, #tpu.memory_space<any>>
    %c29_i32_244 = arith.constant 29 : i32
    %c0_i32_245 = arith.constant 0 : i32
    %307 = tpu.memref_slice %arg5[%c29_i32_244, %c0_i32_245] : memref<32x256xf32, #tpu.memory_space<vmem>> -> memref<1x256xf32, #tpu.memory_space<vmem>>
    %308 = tpu.memref_slice %arg6[%c29_i32_242] : memref<32x!tpu.dma_semaphore, #tpu.memory_space<semaphore_mem>> -> memref<1x!tpu.dma_semaphore, #tpu.memory_space<semaphore_mem>>
    %309 = tpu.memref_squeeze %308 : memref<1x!tpu.dma_semaphore, #tpu.memory_space<semaphore_mem>> -> memref<!tpu.dma_semaphore, #tpu.memory_space<semaphore_mem>>
    tpu.wait_dma2 semaphore(%309 : memref<!tpu.dma_semaphore, #tpu.memory_space<semaphore_mem>>) src(%306 : memref<1x256xf32, #tpu.memory_space<any>>) dst(%307 : memref<1x256xf32, #tpu.memory_space<vmem>>)
    %c30_246 = arith.constant 30 : index
    %310 = memref.load %arg1[%c30_246] : memref<32xi32, #tpu.memory_space<smem>>
    %c30_i32_247 = arith.constant 30 : i32
    %c0_i32_248 = arith.constant 0 : i32
    %311 = tpu.memref_slice %arg3[%310, %c0_i32_248] : memref<8192x256xf32, #tpu.memory_space<any>> -> memref<1x256xf32, #tpu.memory_space<any>>
    %c30_i32_249 = arith.constant 30 : i32
    %c0_i32_250 = arith.constant 0 : i32
    %312 = tpu.memref_slice %arg5[%c30_i32_249, %c0_i32_250] : memref<32x256xf32, #tpu.memory_space<vmem>> -> memref<1x256xf32, #tpu.memory_space<vmem>>
    %313 = tpu.memref_slice %arg6[%c30_i32_247] : memref<32x!tpu.dma_semaphore, #tpu.memory_space<semaphore_mem>> -> memref<1x!tpu.dma_semaphore, #tpu.memory_space<semaphore_mem>>
    %314 = tpu.memref_squeeze %313 : memref<1x!tpu.dma_semaphore, #tpu.memory_space<semaphore_mem>> -> memref<!tpu.dma_semaphore, #tpu.memory_space<semaphore_mem>>
    tpu.wait_dma2 semaphore(%314 : memref<!tpu.dma_semaphore, #tpu.memory_space<semaphore_mem>>) src(%311 : memref<1x256xf32, #tpu.memory_space<any>>) dst(%312 : memref<1x256xf32, #tpu.memory_space<vmem>>)
    %c31_251 = arith.constant 31 : index
    %315 = memref.load %arg1[%c31_251] : memref<32xi32, #tpu.memory_space<smem>>
    %c31_i32_252 = arith.constant 31 : i32
    %c0_i32_253 = arith.constant 0 : i32
    %316 = tpu.memref_slice %arg3[%315, %c0_i32_253] : memref<8192x256xf32, #tpu.memory_space<any>> -> memref<1x256xf32, #tpu.memory_space<any>>
    %c31_i32_254 = arith.constant 31 : i32
    %c0_i32_255 = arith.constant 0 : i32
    %317 = tpu.memref_slice %arg5[%c31_i32_254, %c0_i32_255] : memref<32x256xf32, #tpu.memory_space<vmem>> -> memref<1x256xf32, #tpu.memory_space<vmem>>
    %318 = tpu.memref_slice %arg6[%c31_i32_252] : memref<32x!tpu.dma_semaphore, #tpu.memory_space<semaphore_mem>> -> memref<1x!tpu.dma_semaphore, #tpu.memory_space<semaphore_mem>>
    %319 = tpu.memref_squeeze %318 : memref<1x!tpu.dma_semaphore, #tpu.memory_space<semaphore_mem>> -> memref<!tpu.dma_semaphore, #tpu.memory_space<semaphore_mem>>
    tpu.wait_dma2 semaphore(%319 : memref<!tpu.dma_semaphore, #tpu.memory_space<semaphore_mem>>) src(%316 : memref<1x256xf32, #tpu.memory_space<any>>) dst(%317 : memref<1x256xf32, #tpu.memory_space<vmem>>)
    %c0_256 = arith.constant 0 : index
    %c0_257 = arith.constant 0 : index
    %320 = vector.load %arg2[%c0_256, %c0_257] : memref<16x256xf32, #tpu.memory_space<vmem>>, vector<16x256xf32>
    %321 = tpu.concatenate %320, %320 in 0 : vector<16x256xf32>, vector<16x256xf32> -> vector<32x256xf32>
    %c0_258 = arith.constant 0 : index
    %c0_259 = arith.constant 0 : index
    %322 = vector.load %arg5[%c0_258, %c0_259] : memref<32x256xf32, #tpu.memory_space<vmem>>, vector<32x256xf32>
    %323 = arith.addf %322, %321 : vector<32x256xf32>
    %324 = arith.truncf %323 : vector<32x256xf32> to vector<32x256xbf16>
    %c0_260 = arith.constant 0 : index
    %c0_261 = arith.constant 0 : index
    %325 = vector.load %arg4[%c0_260, %c0_261] : memref<32x256xbf16, #tpu.memory_space<vmem>>, vector<32x256xbf16>
    tpu.vector_store %arg4[%c0_260, %c0_261], %324 {strides = array<i32>} : memref<32x256xbf16, #tpu.memory_space<vmem>>, vector<32x256xbf16>,
    return
  }
  func.func @transform_0(%arg0: i32, %arg1: memref<32xi32, #tpu.memory_space<smem>>) -> (i32, i32) {
    %c0_i32 = arith.constant 0 : i32
    %c0_i32_0 = arith.constant 0 : i32
    %c0_i32_1 = arith.constant 0 : i32
    return %c0_i32, %c0_i32_0 : i32, i32
  }
  func.func @transform_2(%arg0: i32, %arg1: memref<32xi32, #tpu.memory_space<smem>>) -> (i32, i32) {
    %c0_i32 = arith.constant 0 : i32
    %c0_i32_0 = arith.constant 0 : i32
    %c0_i32_1 = arith.constant 0 : i32
    return %c0_i32, %c0_i32_0 : i32, i32
  }
}

</mosaic_0001>

<bundles_post_ra>
// kernel: tpu_custom_call.1
= control target key start
LH: loop header
LB: loop body
LE: loop exit
PB: predicated region body
PF: predicated region fallthrough
CT: control target
= control target key end

     0   :  { %s2736_s0 = inlined_call_operand.hbm [shape: s32[32], index: 0, kind: input, shape index: {}]   ;;  %s2737_s1 = inlined_call_operand.hbm [shape: f32[16,256], index: 1, kind: input, shape index: {}]   ;;  %s2738_s2 = inlined_call_operand.hbm [shape: f32[8192,256], index: 2, kind: input, shape index: {}]   ;;  %s2739_s3 = inlined_call_operand.hbm [shape: bf16[32,256], index: 3, kind: output, shape index: {}]  }
   0x1   :  { %s1163_s14 = scalar_lea.hbm %s2736_s0, 16 }
   0x2   :  { %p1164_p0 = scmp.ne.s32.totalorder %s2736_s0, %s1163_s14  ;;  %p1167_p1 = scmp.lt.u32.totalorder %s1163_s14, %s2736_s0 }
   0x4   :  { %p1169_p2 = pnand %p1167_p1, %p1164_p0 }
   0x6   :  { %1172 = shalt.err (!%p1169_p2)  }
   0x7   :  { %s2055_s19 = smov [#allocation5]  }
   0x8   :  { %9 = dma.hbm_to_smem %s2736_s0, 16, %s2055_s19, [#allocation4] }
   0x9   :  { %1985 = dma.done.wait [#allocation4], 16 }
   0xa   :  { %1986 = vsyncadd [#allocation4], 4294967280 }
   0xb   :  { %11 = sfence }
   0xc   :  { %12 = vsyncpa [#allocation7], 0 }
   0xd   :  { %13 = vsyncpa [#allocation8], 0  ;;  %s2056_s22 = smov [#allocation6]   ;;  %s1173_s26 = scalar_lea.hbm %s2737_s1, 512 }
   0xe   :  { %s19_s23 = sshll.u32 %s2056_s22, 4  ;;  %p1174_p3 = scmp.ne.s32.totalorder %s2737_s1, %s1173_s26  ;;  %s20_s23 = int_to_ptr.vmem [resolvable:$true] %s19_s23 }
   0xf   :  { %p1177_p4 = scmp.lt.u32.totalorder %s1173_s26, %s2737_s1 }
  0x11   :  { %p1179_p5 = pnand %p1177_p4, %p1174_p3 }
  0x13   :  { %1182 = shalt.err (!%p1179_p5)
}
  0x14   :  { %s1183_s0 = scalar_lea.vmem %s20_s23, 512  ;;  %p1188_p7 = scmp.lt.s32.totalorder %s20_s23, %s20_s23 }
  0x15   :  { %p1184_p6 = scmp.ne.s32.totalorder %s20_s23, %s1183_s0  ;;  %p1189_p8 = scmp.lt.s32.totalorder %s1183_s0, %s1183_s0 }
  0x17   :  { %p1190_p9 = por %p1189_p8, %p1188_p7 }
  0x19   :  { %p1191_p10 = pnand %p1190_p9, %p1184_p6 }
  0x1b   :  { %1194 = shalt.err (!%p1191_p10)
}
  0x1c   :  { %s2057_s4 = smov 256   ;;  %s2058_s5 = smov 16  }
  0x1d   :  { %25 = dma.hbm_to_vmem [thread:$0]  %s2737_s1, 512, %s20_s23, [#allocation7], %s2057_s4, %s2057_s4, %s2058_s5  }
  0x1e   :  { %1987 = dma.done.wait [#allocation7], 512  }
  0x1f   :  { %1988 = vsyncadd [#allocation7], 4294966784  ;;  %s29_s8 = sld [smem:[#allocation5]]  ;;  %s2059_s9 = smov [#allocation2]  }
  0x20   :  { %s37_s10 = sshll.u32 %s2059_s9, 4  ;;  %s2141_s11 = sld [smem:[#allocation5 + $0x1]]  ;;  %s2139_s10 = int_to_ptr.vmem [resolvable:$true] %s37_s10 }
  0x21   :  { %s2060_s12 = smov [#allocation2 + $0x1]   ;;  %s2143_s14 = sld [smem:[#allocation5 + $0x2]] }
  0x22   :  { %s51_s13 = sshll.u32 %s2060_s12, 4  ;;  %s2061_s15 = smov [#allocation2 + $0x2]   ;;  %s2145_s13 = int_to_ptr.vmem [resolvable:$true] %s51_s13 }
  0x23   :  { %s65_s16 = sshll.u32 %s2061_s15, 4  ;;  %s2147_s1 = sld [smem:[#allocation5 + $0x3]]  ;;  %s2149_s16 = int_to_ptr.vmem [resolvable:$true] %s65_s16 }
  0x24   :  { %s2159_s0 = scalar_lea.hbm %s2738_s2, 262144 }
  0x25   :  { %s30_s17 = sshrl.u32 %s29_s8, 3  ;;  %s31_s18 = sand.u32 7, %s29_s8  }
  0x26   :  { %s988_s19 = sshll.u32 %s30_s17, 4  ;;  %s42_s21 = sshrl.u32 %s2141_s11, 3 }
  0x27   :  { %s33_s20 = sadd.s32 %s988_s19, %s31_s18  ;;  %s43_s23 = sand.u32 7, %s2141_s11  }
  0x28   :  { %s989_s22 = sshll.u32 %s33_s20, 4  ;;  %s991_s27 = sshll.u32 %s42_s21, 4 }
  0x29   :  { %s35_s26 = scalar_lea.hbm %s2738_s2, %s989_s22 }
  0x2a   :  { %s1195_s28 = scalar_lea.hbm %s35_s26, 32  ;;  %p1198_p12 = scmp.lt.u32.totalorder %s35_s26, %s2738_s2 }
  0x2b   :  { %p1196_p11 = scmp.ne.s32.totalorder %s35_s26, %s1195_s28  ;;  %p1199_p13 = scmp.lt.u32.totalorder %s2159_s0, %s1195_s28 }
  0x2c   :  { %p1201_p1 = scmp.lt.u32.totalorder %s1195_s28, %s35_s26 }
  0x2d   :  { %p1200_p0 = por %p1199_p13, %p1198_p12 }
  0x2f   :  { %p1202_p2 = por %p1201_p1, %p1200_p0 }
  0x31   :  { %p1203_p3 = pnand %p1202_p2, %p1196_p11 }
  0x33   :  { %1206 = shalt.err (!%p1203_p3)  }
  0x34   :  { %s1207_s6 = scalar_lea.vmem %s2139_s10, 32  ;;  %s2168_s7 = scalar_lea.vmem %s2139_s10, 1024 }
  0x35   :  { %p1208_p4 = scmp.ne.s32.totalorder %s2139_s10, %s1207_s6  ;;  %p1212_p5 = scmp.lt.s32.totalorder %s2139_s10, %s2139_s10 }
  0x36   :  { %p1213_p6 = scmp.lt.s32.totalorder %s2168_s7, %s1207_s6 }
  0x38   :  { %p1214_p7 = por %p1213_p6, %p1212_p5 }
  0x3a   :  { %p1215_p8 = pnand %p1214_p7, %p1208_p4 }
  0x3c   :  { %1218 = shalt.err (!%p1215_p8)  }
  0x3d   :  { %s2062_s8 = smov 128   ;;  %s2063_s9 = smov 1  }
  0x3e   :  { %40 = dma.hbm_to_vmem [thread:$0]  %s35_s26, 32, %s2139_s10, [#allocation3], %s2062_s8, %s2062_s8, %s2063_s9 }
  0x3f   :  { %s45_s11 = sadd.s32 %s991_s27, %s43_s23  ;;  %s56_s12 = sshrl.u32 %s2143_s14, 3 }
  0x40   :  { %s992_s15 = sshll.u32 %s45_s11, 4  ;;  %s57_s17 = sand.u32 7, %s2143_s14  }
  0x41   :  { %s47_s20 = scalar_lea.hbm %s2738_s2, %s992_s15  ;;  %s994_s21 = sshll.u32 %s56_s12, 4 }
  0x42   :  { %s1219_s22 = scalar_lea.hbm %s47_s20, 32  ;;  %p1222_p10 = scmp.lt.u32.totalorder %s47_s20, %s2738_s2 }
  0x43   :  { %p1220_p9 = scmp.ne.s32.totalorder %s47_s20, %s1219_s22  ;;  %p1223_p11 = scmp.lt.u32.totalorder %s2159_s0, %s1219_s22 }
  0x44   :  { %p1225_p13 = scmp.lt.u32.totalorder %s1219_s22, %s47_s20 }
  0x45   :  { %p1224_p12 = por %p1223_p11, %p1222_p10 }
  0x47   :  { %p1226_p0 = por %p1225_p13, %p1224_p12 }
  0x49   :  { %p1227_p1 = pnand %p1226_p0, %p1220_p9 }
  0x4b   :  { %1230 = shalt.err (!%p1227_p1)  }
  0x4c   :  { %s1231_s14 = scalar_lea.vmem %s2145_s13, 32  ;;  %p1236_p3 = scmp.lt.s32.totalorder %s2145_s13, %s2139_s10 }
  0x4d   :  { %p1232_p2 = scmp.ne.s32.totalorder %s2145_s13, %s1231_s14  ;;  %p1237_p4 = scmp.lt.s32.totalorder %s2168_s7, %s1231_s14 }
  0x4f   :  { %p1238_p5 = por %p1237_p4, %p1236_p3 }
  0x51   :  { %p1239_p6 = pnand %p1238_p5, %p1232_p2 }
  0x53   :  { %1242 = shalt.err (!%p1239_p6)  }
  0x54   :  { %54 = dma.hbm_to_vmem [thread:$0]  %s47_s20, 32, %s2145_s13, [#allocation3 + $0x1], %s2062_s8, %s2062_s8, %s2063_s9 }
  0x55   :  { %s59_s23 = sadd.s32 %s994_s21, %s57_s17  ;;  %s70_s26 = sshrl.u32 %s2147_s1, 3 }
  0x56   :  { %s995_s27 = sshll.u32 %s59_s23, 4  ;;  %s71_s28 = sand.u32 7, %s2147_s1  }
  0x57   :  { %s61_s4 = scalar_lea.hbm %s2738_s2, %s995_s27  ;;  %s997_s5 = sshll.u32 %s70_s26, 4 }
  0x58   :  { %s1243_s6 = scalar_lea.hbm %s61_s4, 32  ;;  %p1246_p8 = scmp.lt.u32.totalorder %s61_s4, %s2738_s2 }
  0x59   :  { %p1244_p7 = scmp.ne.s32.totalorder %s61_s4, %s1243_s6  ;;  %p1247_p9 = scmp.lt.u32.totalorder %s2159_s0, %s1243_s6 }
  0x5a   :  { %p1249_p11 = scmp.lt.u32.totalorder %s1243_s6, %s61_s4 }
  0x5b   :  { %p1248_p10 = por %p1247_p9, %p1246_p8 }
  0x5d   :  { %p1250_p12 = por %p1249_p11, %p1248_p10 }
  0x5f   :  { %p1251_p13 = pnand %p1250_p12, %p1244_p7 }
  0x61   :  { %1254 = shalt.err (!%p1251_p13)  }
  0x62   :  { %s1255_s13 = scalar_lea.vmem %s2149_s16, 32  ;;  %p1260_p1 = scmp.lt.s32.totalorder %s2149_s16, %s2139_s10 }
  0x63   :  { %p1256_p0 = scmp.ne.s32.totalorder %s2149_s16, %s1255_s13  ;;  %p1261_p2 = scmp.lt.s32.totalorder %s2168_s7, %s1255_s13 }
  0x65   :  { %p1262_p3 = por %p1261_p2, %p1260_p1 }
  0x67   :  { %p1263_p4 = pnand %p1262_p3, %p1256_p0 }
  0x69   :  { %1266 = shalt.err (!%p1263_p4)  }
  0x6a   :  { %68 = dma.hbm_to_vmem [thread:$0]  %s61_s4, 32, %s2149_s16, [#allocation3 + $0x2], %s2062_s8, %s2062_s8, %s2063_s9 }
  0x6b   :  { %s73_s1 = sadd.s32 %s997_s5, %s71_s28  ;;  %s2064_s17 = smov [#allocation2 + $0x3]  }
  0x6c   :  { %s998_s15 = sshll.u32 %s73_s1, 4  ;;  %s79_s18 = sshll.u32 %s2064_s17, 4  ;;  %s80_s18 = int_to_ptr.vmem [resolvable:$true] %s79_s18 }
  0x6d   :  { %s75_s21 = scalar_lea.hbm %s2738_s2, %s998_s15 }
  0x6e   :  { %s1267_s22 = scalar_lea.hbm %s75_s21, 32  ;;  %p1270_p6 = scmp.lt.u32.totalorder %s75_s21, %s2738_s2 }
  0x6f   :  { %p1268_p5 = scmp.ne.s32.totalorder %s75_s21, %s1267_s22  ;;  %p1271_p7 = scmp.lt.u32.totalorder %s2159_s0, %s1267_s22 }
  0x70   :  { %p1273_p9 = scmp.lt.u32.totalorder %s1267_s22, %s75_s21 }
  0x71   :  { %p1272_p8 = por %p1271_p7, %p1270_p6 }
  0x73   :  { %p1274_p10 = por %p1273_p9, %p1272_p8 }
  0x75   :  { %p1275_p11 = pnand %p1274_p10, %p1268_p5 }
  0x77   :  { %1278 = shalt.err (!%p1275_p11)  }
  0x78   :  { %s1279_s16 = scalar_lea.vmem %s80_s18, 32  ;;  %p1284_p13 = scmp.lt.s32.totalorder %s80_s18, %s2139_s10 }
  0x79   :  { %p1280_p12 = scmp.ne.s32.totalorder %s80_s18, %s1279_s16  ;;  %p1285_p0 = scmp.lt.s32.totalorder %s2168_s7, %s1279_s16 }
  0x7b   :  { %p1286_p1 = por %p1285_p0, %p1284_p13 }
  0x7d   :  { %p1287_p2 = pnand %p1286_p1, %p1280_p12 }
  0x7f   :  { %1290 = shalt.err (!%p1287_p2)  }
  0x80   :  { %82 = dma.hbm_to_vmem [thread:$0]  %s75_s21, 32, %s80_s18, [#allocation3 + $0x3], %s2062_s8, %s2062_s8, %s2063_s9 }
  0x81   :  { %s999_s14 = sld [smem:[#allocation5 + $0x4]]  ;;  %s2065_s23 = smov [#allocation2 + $0x4]  }
  0x82   :  { %s93_s26 = sshll.u32 %s2065_s23, 4  ;;  %s1002_s27 = sld [smem:[#allocation5 + $0x5]]  ;;  %s2225_s26 = int_to_ptr.vmem [resolvable:$true] %s93_s26 }
  0x83   :  { %s2066_s28 = smov [#allocation2 + $0x5]   ;;  %s2227_s30 = sld [smem:[#allocation5 + $0x6]] }
  0x84   :  { %s107_s29 = sshll.u32 %s2066_s28, 4  ;;  %s2067_s4 = smov [#allocation2 + $0x6]   ;;  %s2229_s29 = int_to_ptr.vmem [resolvable:$true] %s107_s29 }
  0x85   :  { %s2231_s5 = sshll.u32 %s2067_s4, 4  ;;  %s2233_s6 = sld [smem:[#allocation5 + $0x7]]  ;;  %s122_s5 = int_to_ptr.vmem [resolvable:$true] %s2231_s5 }
  0x87   :  { %s84_s11 = sshrl.u32 %s999_s14, 3  ;;  %s85_s12 = sand.u32 7, %s999_s14  }
  0x88   :  { %s1000_s13 = sshll.u32 %s84_s11, 4  ;;  %s98_s1 = sshrl.u32 %s1002_s27, 3 }
  0x89   :  { %s87_s15 = sadd.s32 %s1000_s13, %s85_s12  ;;  %s99_s17 = sand.u32 7, %s1002_s27  }
  0x8a   :  { %s1001_s18 = sshll.u32 %s87_s15, 4  ;;  %s1003_s19 = sshll.u32 %s98_s1, 4 }
  0x8b   :  { %s89_s22 = scalar_lea.hbm %s2738_s2, %s1001_s18  ;;  %s101_s24 = sadd.s32 %s1003_s19, %s99_s17 }
  0x8c   :  { %s1291_s25 = scalar_lea.hbm %s89_s22, 32  ;;  %p1294_p4 = scmp.lt.u32.totalorder %s89_s22, %s2738_s2 }
  0x8d   :  { %p1292_p3 = scmp.ne.s32.totalorder %s89_s22, %s1291_s25  ;;  %p1295_p5 = scmp.lt.u32.totalorder %s2159_s0, %s1291_s25 }
  0x8e   :  { %p1297_p7 = scmp.lt.u32.totalorder %s1291_s25, %s89_s22 }
  0x8f   :  { %p1296_p6 = por %p1295_p5, %p1294_p4 }
  0x91   :  { %p1298_p8 = por %p1297_p7, %p1296_p6 }
  0x93   :  { %p1299_p9 = pnand %p1298_p8, %p1292_p3 }
  0x95   :  { %1302 = shalt.err (!%p1299_p9)  }
  0x96   :  { %s1303_s14 = scalar_lea.vmem %s2225_s26, 32  ;;  %p1308_p11 = scmp.lt.s32.totalorder %s2225_s26, %s2139_s10 }
  0x97   :  { %p1304_p10 = scmp.ne.s32.totalorder %s2225_s26, %s1303_s14  ;;  %p1309_p12 = scmp.lt.s32.totalorder %s2168_s7, %s1303_s14 }
  0x99   :  { %p1310_p13 = por %p1309_p12, %p1308_p11 }
  0x9b   :  { %p1311_p0 = pnand %p1310_p13, %p1304_p10 }
  0x9d   :  { %1314 = shalt.err (!%p1311_p0)  }
  0x9e   :  { %96 = dma.hbm_to_vmem [thread:$0]  %s89_s22, 32, %s2225_s26, [#allocation3 + $0x4], %s2062_s8, %s2062_s8, %s2063_s9 }
  0x9f   :  { %s1004_s27 = sshll.u32 %s101_s24, 4  ;;  %s112_s28 = sshrl.u32 %s2227_s30, 3 }
  0xa0   :  { %s103_s12 = scalar_lea.hbm %s2738_s2, %s1004_s27  ;;  %s113_s13 = sand.u32 7, %s2227_s30  }
  0xa1   :  { %s1315_s1 = scalar_lea.hbm %s103_s12, 32  ;;  %p1318_p2 = scmp.lt.u32.totalorder %s103_s12, %s2738_s2 }
  0xa2   :  { %p1316_p1 = scmp.ne.s32.totalorder %s103_s12, %s1315_s1  ;;  %p1319_p3 = scmp.lt.u32.totalorder %s2159_s0, %s1315_s1 }
  0xa3   :  { %p1321_p5 = scmp.lt.u32.totalorder %s1315_s1, %s103_s12 }
  0xa4   :  { %p1320_p4 = por %p1319_p3, %p1318_p2 }
  0xa6   :  { %p1322_p6 = por %p1321_p5, %p1320_p4 }
  0xa8   :  { %p1323_p7 = pnand %p1322_p6, %p1316_p1 }
  0xaa   :  { %1326 = shalt.err (!%p1323_p7)  }
  0xab   :  { %s1327_s26 = scalar_lea.vmem %s2229_s29, 32  ;;  %p1332_p9 = scmp.lt.s32.totalorder %s2229_s29, %s2139_s10 }
  0xac   :  { %p1328_p8 = scmp.ne.s32.totalorder %s2229_s29, %s1327_s26  ;;  %p1333_p10 = scmp.lt.s32.totalorder %s2168_s7, %s1327_s26 }
  0xae   :  { %p1334_p11 = por %p1333_p10, %p1332_p9 }
  0xb0   :  { %p1335_p12 = pnand %p1334_p11, %p1328_p8 }
  0xb2   :  { %1338 = shalt.err (!%p1335_p12)  }
  0xb3   :  { %110 = dma.hbm_to_vmem [thread:$0]  %s103_s12, 32, %s2229_s29, [#allocation3 + $0x5], %s2062_s8, %s2062_s8, %s2063_s9 }
  0xb4   :  { %s1006_s30 = sshll.u32 %s112_s28, 4  ;;  %s126_s19 = sshrl.u32 %s2233_s6, 3 }
  0xb5   :  { %s115_s18 = sadd.s32 %s1006_s30, %s113_s13  ;;  %s127_s21 = sand.u32 7, %s2233_s6  }
  0xb6   :  { %s1007_s20 = sshll.u32 %s115_s18, 4  ;;  %s1009_s16 = sshll.u32 %s126_s19, 4 }
  0xb7   :  { %s117_s25 = scalar_lea.hbm %s2738_s2, %s1007_s20 }
  0xb8   :  { %s1339_s23 = scalar_lea.hbm %s117_s25, 32  ;;  %p1342_p0 = scmp.lt.u32.totalorder %s117_s25, %s2738_s2 }
  0xb9   :  { %p1340_p13 = scmp.ne.s32.totalorder %s117_s25, %s1339_s23  ;;  %p1343_p1 = scmp.lt.u32.totalorder %s2159_s0, %s1339_s23 }
  0xba   :  { %p1345_p3 = scmp.lt.u32.totalorder %s1339_s23, %s117_s25 }
  0xbb   :  { %p1344_p2 = por %p1343_p1, %p1342_p0 }
  0xbd   :  { %p1346_p4 = por %p1345_p3, %p1344_p2 }
  0xbf   :  { %p1347_p5 = pnand %p1346_p4, %p1340_p13 }
  0xc1   :  { %1350 = shalt.err (!%p1347_p5)  }
  0xc2   :  { %s1351_s29 = scalar_lea.vmem %s122_s5, 32  ;;  %p1356_p7 = scmp.lt.s32.totalorder %s122_s5, %s2139_s10 }
  0xc3   :  { %p1352_p6 = scmp.ne.s32.totalorder %s122_s5, %s1351_s29  ;;  %p1357_p8 = scmp.lt.s32.totalorder %s2168_s7, %s1351_s29 }
  0xc5   :  { %p1358_p9 = por %p1357_p8, %p1356_p7 }
  0xc7   :  { %p1359_p10 = pnand %p1358_p9, %p1352_p6 }
  0xc9   :  { %1362 = shalt.err (!%p1359_p10)  }
  0xca   :  { %124 = dma.hbm_to_vmem [thread:$0]  %s117_s25, 32, %s122_s5, [#allocation3 + $0x6], %s2062_s8, %s2062_s8, %s2063_s9 }
  0xcb   :  { %s129_s6 = sadd.s32 %s1009_s16, %s127_s21  ;;  %s2068_s4 = smov [#allocation2 + $0x7]  }
  0xcc   :  { %s1010_s28 = sshll.u32 %s129_s6, 4  ;;  %s135_s11 = sshll.u32 %s2068_s4, 4  ;;  %s136_s11 = int_to_ptr.vmem [resolvable:$true] %s135_s11 }
  0xcd   :  { %s131_s1 = scalar_lea.hbm %s2738_s2, %s1010_s28 }
  0xce   :  { %s1363_s15 = scalar_lea.hbm %s131_s1, 32  ;;  %p1366_p12 = scmp.lt.u32.totalorder %s131_s1, %s2738_s2 }
  0xcf   :  { %p1364_p11 = scmp.ne.s32.totalorder %s131_s1, %s1363_s15  ;;  %p1367_p13 = scmp.lt.u32.totalorder %s2159_s0, %s1363_s15 }
  0xd0   :  { %p1369_p1 = scmp.lt.u32.totalorder %s1363_s15, %s131_s1 }
  0xd1   :  { %p1368_p0 = por %p1367_p13, %p1366_p12 }
  0xd3   :  { %p1370_p2 = por %p1369_p1, %p1368_p0 }
  0xd5   :  { %p1371_p3 = pnand %p1370_p2, %p1364_p11 }
  0xd7   :  { %1374 = shalt.err (!%p1371_p3)  }
  0xd8   :  { %s1375_s5 = scalar_lea.vmem %s136_s11, 32  ;;  %p1380_p5 = scmp.lt.s32.totalorder %s136_s11, %s2139_s10 }
  0xd9   :  { %p1376_p4 = scmp.ne.s32.totalorder %s136_s11, %s1375_s5  ;;  %p1381_p6 = scmp.lt.s32.totalorder %s2168_s7, %s1375_s5 }
  0xdb   :  { %p1382_p7 = por %p1381_p6, %p1380_p5 }
  0xdd   :  { %p1383_p8 = pnand %p1382_p7, %p1376_p4 }
  0xdf   :  { %1386 = shalt.err (!%p1383_p8)  }
  0xe0   :  { %138 = dma.hbm_to_vmem [thread:$0]  %s131_s1, 32, %s136_s11, [#allocation3 + $0x7], %s2062_s8, %s2062_s8, %s2063_s9 }
  0xe1   :  { %s1011_s30 = sld [smem:[#allocation5 + $0x8]]  ;;  %s2069_s18 = smov [#allocation2 + $0x10]  }
  0xe2   :  { %s149_s19 = sshll.u32 %s2069_s18, 4  ;;  %s1014_s20 = sld [smem:[#allocation5 + $0x9]]  ;;  %s2296_s19 = int_to_ptr.vmem [resolvable:$true] %s149_s19 }
  0xe3   :  { %s2070_s21 = smov [#allocation2 + $0x11]   ;;  %s2298_s24 = sld [smem:[#allocation5 + $0xa]] }
  0xe4   :  { %s163_s22 = sshll.u32 %s2070_s21, 4  ;;  %s2071_s25 = smov [#allocation2 + $0x12]   ;;  %s2300_s22 = int_to_ptr.vmem [resolvable:$true] %s163_s22 }
  0xe5   :  { %s2302_s16 = sshll.u32 %s2071_s25, 4  ;;  %s2304_s23 = sld [smem:[#allocation5 + $0xb]]  ;;  %s178_s16 = int_to_ptr.vmem [resolvable:$true] %s2302_s16 }
  0xe7   :  { %s140_s14 = sshrl.u32 %s1011_s30, 3  ;;  %s141_s27 = sand.u32 7, %s1011_s30  }
  0xe8   :  { %s1012_s29 = sshll.u32 %s140_s14, 4  ;;  %s154_s6 = sshrl.u32 %s1014_s20, 3 }
  0xe9   :  { %s143_s28 = sadd.s32 %s1012_s29, %s141_s27  ;;  %s155_s4 = sand.u32 7, %s1014_s20  }
  0xea   :  { %s1013_s11 = sshll.u32 %s143_s28, 4  ;;  %s1015_s12 = sshll.u32 %s154_s6, 4 }
  0xeb   :  { %s145_s15 = scalar_lea.hbm %s2738_s2, %s1013_s11  ;;  %s157_s17 = sadd.s32 %s1015_s12, %s155_s4 }
  0xec   :  { %s1387_s26 = scalar_lea.hbm %s145_s15, 32  ;;  %p1390_p10 = scmp.lt.u32.totalorder %s145_s15, %s2738_s2 }
  0xed   :  { %p1388_p9 = scmp.ne.s32.totalorder %s145_s15, %s1387_s26  ;;  %p1391_p11 = scmp.lt.u32.totalorder %s2159_s0, %s1387_s26 }
  0xee   :  { %p1393_p13 = scmp.lt.u32.totalorder %s1387_s26, %s145_s15 }
  0xef   :  { %p1392_p12 = por %p1391_p11, %p1390_p10 }
  0xf1   :  { %p1394_p0 = por %p1393_p13, %p1392_p12 }
  0xf3   :  { %p1395_p1 = pnand %p1394_p0, %p1388_p9 }
  0xf5   :  { %1398 = shalt.err (!%p1395_p1)  }
  0xf6   :  { %s1399_s30 = scalar_lea.vmem %s2296_s19, 32  ;;  %p1404_p3 = scmp.lt.s32.totalorder %s2296_s19, %s2139_s10 }
  0xf7   :  { %p1400_p2 = scmp.ne.s32.totalorder %s2296_s19, %s1399_s30  ;;  %p1405_p4 = scmp.lt.s32.totalorder %s2168_s7, %s1399_s30 }
  0xf9   :  { %p1406_p5 = por %p1405_p4, %p1404_p3 }
  0xfb   :  { %p1407_p6 = pnand %p1406_p5, %p1400_p2 }
  0xfd   :  { %1410 = shalt.err (!%p1407_p6)  }
  0xfe   :  { %152 = dma.hbm_to_vmem [thread:$0]  %s145_s15, 32, %s2296_s19, [#allocation3 + $0x8], %s2062_s8, %s2062_s8, %s2063_s9 }
  0xff   :  { %s1016_s20 = sshll.u32 %s157_s17, 4  ;;  %s168_s21 = sshrl.u32 %s2298_s24, 3 }
 0x100   :  { %s159_s27 = scalar_lea.hbm %s2738_s2, %s1016_s20  ;;  %s169_s29 = sand.u32 7, %s2298_s24  }
 0x101   :  { %s1411_s6 = scalar_lea.hbm %s159_s27, 32  ;;  %p1414_p8 = scmp.lt.u32.totalorder %s159_s27, %s2738_s2 }
 0x102   :  { %p1412_p7 = scmp.ne.s32.totalorder %s159_s27, %s1411_s6  ;;  %p1415_p9 = scmp.lt.u32.totalorder %s2159_s0, %s1411_s6 }
 0x103   :  { %p1417_p11 = scmp.lt.u32.totalorder %s1411_s6, %s159_s27 }
 0x104   :  { %p1416_p10 = por %p1415_p9, %p1414_p8 }
 0x106   :  { %p1418_p12 = por %p1417_p11, %p1416_p10 }
 0x108   :  { %p1419_p13 = pnand %p1418_p12, %p1412_p7 }
 0x10a   :  { %1422 = shalt.err (!%p1419_p13)  }
 0x10b   :  { %s1423_s19 = scalar_lea.vmem %s2300_s22, 32  ;;  %p1428_p1 = scmp.lt.s32.totalorder %s2300_s22, %s2139_s10 }
 0x10c   :  { %p1424_p0 = scmp.ne.s32.totalorder %s2300_s22, %s1423_s19  ;;  %p1429_p2 = scmp.lt.s32.totalorder %s2168_s7, %s1423_s19 }
 0x10e   :  { %p1430_p3 = por %p1429_p2, %p1428_p1 }
 0x110   :  { %p1431_p4 = pnand %p1430_p3, %p1424_p0 }
 0x112   :  { %1434 = shalt.err (!%p1431_p4)  }
 0x113   :  { %166 = dma.hbm_to_vmem [thread:$0]  %s159_s27, 32, %s2300_s22, [#allocation3 + $0x9], %s2062_s8, %s2062_s8, %s2063_s9 }
 0x114   :  { %s1018_s24 = sshll.u32 %s168_s21, 4  ;;  %s182_s12 = sshrl.u32 %s2304_s23, 3 }
 0x115   :  { %s171_s11 = sadd.s32 %s1018_s24, %s169_s29  ;;  %s183_s1 = sand.u32 7, %s2304_s23  }
 0x116   :  { %s1019_s13 = sshll.u32 %s171_s11, 4  ;;  %s1021_s5 = sshll.u32 %s182_s12, 4 }
 0x117   :  { %s173_s26 = scalar_lea.hbm %s2738_s2, %s1019_s13 }
 0x118   :  { %s1435_s18 = scalar_lea.hbm %s173_s26, 32  ;;  %p1438_p6 = scmp.lt.u32.totalorder %s173_s26, %s2738_s2 }
 0x119   :  { %p1436_p5 = scmp.ne.s32.totalorder %s173_s26, %s1435_s18  ;;  %p1439_p7 = scmp.lt.u32.totalorder %s2159_s0, %s1435_s18 }
 0x11a   :  { %p1441_p9 = scmp.lt.u32.totalorder %s1435_s18, %s173_s26 }
 0x11b   :  { %p1440_p8 = por %p1439_p7, %p1438_p6 }
 0x11d   :  { %p1442_p10 = por %p1441_p9, %p1440_p8 }
 0x11f   :  { %p1443_p11 = pnand %p1442_p10, %p1436_p5 }
 0x121   :  { %1446 = shalt.err (!%p1443_p11)  }
 0x122   :  { %s1447_s22 = scalar_lea.vmem %s178_s16, 32  ;;  %p1452_p13 = scmp.lt.s32.totalorder %s178_s16, %s2139_s10 }
 0x123   :  { %p1448_p12 = scmp.ne.s32.totalorder %s178_s16, %s1447_s22  ;;  %p1453_p0 = scmp.lt.s32.totalorder %s2168_s7, %s1447_s22 }
 0x125   :  { %p1454_p1 = por %p1453_p0, %p1452_p13 }
 0x127   :  { %p1455_p2 = pnand %p1454_p1, %p1448_p12 }
 0x129   :  { %1458 = shalt.err (!%p1455_p2)  }
 0x12a   :  { %180 = dma.hbm_to_vmem [thread:$0]  %s173_s26, 32, %s178_s16, [#allocation3 + $0xa], %s2062_s8, %s2062_s8, %s2063_s9 }
 0x12b   :  { %s185_s23 = sadd.s32 %s1021_s5, %s183_s1  ;;  %s2072_s25 = smov [#allocation2 + $0x13]  }
 0x12c   :  { %s1022_s21 = sshll.u32 %s185_s23, 4  ;;  %s191_s14 = sshll.u32 %s2072_s25, 4  ;;  %s192_s14 = int_to_ptr.vmem [resolvable:$true] %s191_s14 }
 0x12d   :  { %s187_s6 = scalar_lea.hbm %s2738_s2, %s1022_s21 }
 0x12e   :  { %s1459_s28 = scalar_lea.hbm %s187_s6, 32  ;;  %p1462_p4 = scmp.lt.u32.totalorder %s187_s6, %s2738_s2 }
 0x12f   :  { %p1460_p3 = scmp.ne.s32.totalorder %s187_s6, %s1459_s28  ;;  %p1463_p5 = scmp.lt.u32.totalorder %s2159_s0, %s1459_s28 }
 0x130   :  { %p1465_p7 = scmp.lt.u32.totalorder %s1459_s28, %s187_s6 }
 0x131   :  { %p1464_p6 = por %p1463_p5, %p1462_p4 }
 0x133   :  { %p1466_p8 = por %p1465_p7, %p1464_p6 }
 0x135   :  { %p1467_p9 = pnand %p1466_p8, %p1460_p3 }
 0x137   :  { %1470 = shalt.err (!%p1467_p9)  }
 0x138   :  { %s1471_s16 = scalar_lea.vmem %s192_s14, 32  ;;  %p1476_p11 = scmp.lt.s32.totalorder %s192_s14, %s2139_s10 }
 0x139   :  { %p1472_p10 = scmp.ne.s32.totalorder %s192_s14, %s1471_s16  ;;  %p1477_p12 = scmp.lt.s32.totalorder %s2168_s7, %s1471_s16 }
 0x13b   :  { %p1478_p13 = por %p1477_p12, %p1476_p11 }
 0x13d   :  { %p1479_p0 = pnand %p1478_p13, %p1472_p10 }
 0x13f   :  { %1482 = shalt.err (!%p1479_p0)  }
 0x140   :  { %194 = dma.hbm_to_vmem [thread:$0]  %s187_s6, 32, %s192_s14, [#allocation3 + $0xb], %s2062_s8, %s2062_s8, %s2063_s9 }
 0x141   :  { %s1023_s24 = sld [smem:[#allocation5 + $0xc]]  ;;  %s2073_s11 = smov [#allocation2 + $0x14]  }
 0x142   :  { %s205_s12 = sshll.u32 %s2073_s11, 4  ;;  %s1026_s13 = sld [smem:[#allocation5 + $0xd]]  ;;  %s2367_s12 = int_to_ptr.vmem [resolvable:$true] %s205_s12 }
 0x143   :  { %s2074_s1 = smov [#allocation2 + $0x15]   ;;  %s2369_s17 = sld [smem:[#allocation5 + $0xe]] }
 0x144   :  { %s219_s15 = sshll.u32 %s2074_s1, 4  ;;  %s2075_s26 = smov [#allocation2 + $0x16]   ;;  %s2371_s15 = int_to_ptr.vmem [resolvable:$true] %s219_s15 }
 0x145   :  { %s2373_s5 = sshll.u32 %s2075_s26, 4  ;;  %s2375_s18 = sld [smem:[#allocation5 + $0xf]]  ;;  %s234_s5 = int_to_ptr.vmem [resolvable:$true] %s2373_s5 }
 0x147   :  { %s196_s30 = sshrl.u32 %s1023_s24, 3  ;;  %s197_s20 = sand.u32 7, %s1023_s24  }
 0x148   :  { %s1024_s22 = sshll.u32 %s196_s30, 4  ;;  %s210_s23 = sshrl.u32 %s1026_s13, 3 }
 0x149   :  { %s199_s21 = sadd.s32 %s1024_s22, %s197_s20  ;;  %s211_s25 = sand.u32 7, %s1026_s13  }
 0x14a   :  { %s1025_s14 = sshll.u32 %s199_s21, 4  ;;  %s1027_s27 = sshll.u32 %s210_s23, 4 }
 0x14b   :  { %s201_s28 = scalar_lea.hbm %s2738_s2, %s1025_s14  ;;  %s213_s4 = sadd.s32 %s1027_s27, %s211_s25 }
 0x14c   :  { %s1483_s19 = scalar_lea.hbm %s201_s28, 32  ;;  %p1486_p2 = scmp.lt.u32.totalorder %s201_s28, %s2738_s2 }
 0x14d   :  { %p1484_p1 = scmp.ne.s32.totalorder %s201_s28, %s1483_s19  ;;  %p1487_p3 = scmp.lt.u32.totalorder %s2159_s0, %s1483_s19 }
 0x14e   :  { %p1489_p5 = scmp.lt.u32.totalorder %s1483_s19, %s201_s28 }
 0x14f   :  { %p1488_p4 = por %p1487_p3, %p1486_p2 }
 0x151   :  { %p1490_p6 = por %p1489_p5, %p1488_p4 }
 0x153   :  { %p1491_p7 = pnand %p1490_p6, %p1484_p1 }
 0x155   :  { %1494 = shalt.err (!%p1491_p7)  }
 0x156   :  { %s1495_s24 = scalar_lea.vmem %s2367_s12, 32  ;;  %p1500_p9 = scmp.lt.s32.totalorder %s2367_s12, %s2139_s10 }
 0x157   :  { %p1496_p8 = scmp.ne.s32.totalorder %s2367_s12, %s1495_s24  ;;  %p1501_p10 = scmp.lt.s32.totalorder %s2168_s7, %s1495_s24 }
 0x159   :  { %p1502_p11 = por %p1501_p10, %p1500_p9 }
 0x15b   :  { %p1503_p12 = pnand %p1502_p11, %p1496_p8 }
 0x15d   :  { %1506 = shalt.err (!%p1503_p12)  }
 0x15e   :  { %208 = dma.hbm_to_vmem [thread:$0]  %s201_s28, 32, %s2367_s12, [#allocation3 + $0xc], %s2062_s8, %s2062_s8, %s2063_s9 }
 0x15f   :  { %s1028_s13 = sshll.u32 %s213_s4, 4  ;;  %s224_s1 = sshrl.u32 %s2369_s17, 3 }
 0x160   :  { %s215_s20 = scalar_lea.hbm %s2738_s2, %s1028_s13  ;;  %s225_s22 = sand.u32 7, %s2369_s17  }
 0x161   :  { %s1507_s23 = scalar_lea.hbm %s215_s20, 32  ;;  %p1510_p0 = scmp.lt.u32.totalorder %s215_s20, %s2738_s2 }
 0x162   :  { %p1508_p13 = scmp.ne.s32.totalorder %s215_s20, %s1507_s23  ;;  %p1511_p1 = scmp.lt.u32.totalorder %s2159_s0, %s1507_s23 }
 0x163   :  { %p1513_p3 = scmp.lt.u32.totalorder %s1507_s23, %s215_s20 }
 0x164   :  { %p1512_p2 = por %p1511_p1, %p1510_p0 }
 0x166   :  { %p1514_p4 = por %p1513_p3, %p1512_p2 }
 0x168   :  { %p1515_p5 = pnand %p1514_p4, %p1508_p13 }
 0x16a   :  { %1518 = shalt.err (!%p1515_p5)  }
 0x16b   :  { %s1519_s12 = scalar_lea.vmem %s2371_s15, 32  ;;  %p1524_p7 = scmp.lt.s32.totalorder %s2371_s15, %s2139_s10 }
 0x16c   :  { %p1520_p6 = scmp.ne.s32.totalorder %s2371_s15, %s1519_s12  ;;  %p1525_p8 = scmp.lt.s32.totalorder %s2168_s7, %s1519_s12 }
 0x16e   :  { %p1526_p9 = por %p1525_p8, %p1524_p7 }
 0x170   :  { %p1527_p10 = pnand %p1526_p9, %p1520_p6 }
 0x172   :  { %1530 = shalt.err (!%p1527_p10)  }
 0x173   :  { %222 = dma.hbm_to_vmem [thread:$0]  %s215_s20, 32, %s2371_s15, [#allocation3 + $0xd], %s2062_s8, %s2062_s8, %s2063_s9 }
 0x174   :  { %s1030_s17 = sshll.u32 %s224_s1, 4  ;;  %s238_s27 = sshrl.u32 %s2375_s18, 3 }
 0x175   :  { %s227_s14 = sadd.s32 %s1030_s17, %s225_s22  ;;  %s239_s6 = sand.u32 7, %s2375_s18  }
 0x176   :  { %s1031_s29 = sshll.u32 %s227_s14, 4  ;;  %s1033_s16 = sshll.u32 %s238_s27, 4 }
 0x177   :  { %s229_s19 = scalar_lea.hbm %s2738_s2, %s1031_s29 }
 0x178   :  { %s1531_s11 = scalar_lea.hbm %s229_s19, 32  ;;  %p1534_p12 = scmp.lt.u32.totalorder %s229_s19, %s2738_s2 }
 0x179   :  { %p1532_p11 = scmp.ne.s32.totalorder %s229_s19, %s1531_s11  ;;  %p1535_p13 = scmp.lt.u32.totalorder %s2159_s0, %s1531_s11 }
 0x17a   :  { %p1537_p1 = scmp.lt.u32.totalorder %s1531_s11, %s229_s19 }
 0x17b   :  { %p1536_p0 = por %p1535_p13, %p1534_p12 }
 0x17d   :  { %p1538_p2 = por %p1537_p1, %p1536_p0 }
 0x17f   :  { %p1539_p3 = pnand %p1538_p2, %p1532_p11 }
 0x181   :  { %1542 = shalt.err (!%p1539_p3)  }
 0x182   :  { %s1543_s15 = scalar_lea.vmem %s234_s5, 32  ;;  %p1548_p5 = scmp.lt.s32.totalorder %s234_s5, %s2139_s10 }
 0x183   :  { %p1544_p4 = scmp.ne.s32.totalorder %s234_s5, %s1543_s15  ;;  %p1549_p6 = scmp.lt.s32.totalorder %s2168_s7, %s1543_s15 }
 0x185   :  { %p1550_p7 = por %p1549_p6, %p1548_p5 }
 0x187   :  { %p1551_p8 = pnand %p1550_p7, %p1544_p4 }
 0x189   :  { %1554 = shalt.err (!%p1551_p8)  }
 0x18a   :  { %236 = dma.hbm_to_vmem [thread:$0]  %s229_s19, 32, %s234_s5, [#allocation3 + $0xe], %s2062_s8, %s2062_s8, %s2063_s9 }
 0x18b   :  { %s241_s18 = sadd.s32 %s1033_s16, %s239_s6  ;;  %s2076_s26 = smov [#allocation2 + $0x17]  }
 0x18c   :  { %s1034_s1 = sshll.u32 %s241_s18, 4  ;;  %s247_s30 = sshll.u32 %s2076_s26, 4  ;;  %s248_s30 = int_to_ptr.vmem [resolvable:$true] %s247_s30 }
 0x18d   :  { %s243_s23 = scalar_lea.hbm %s2738_s2, %s1034_s1 }
 0x18e   :  { %s1555_s21 = scalar_lea.hbm %s243_s23, 32  ;;  %p1558_p10 = scmp.lt.u32.totalorder %s243_s23, %s2738_s2 }
 0x18f   :  { %p1556_p9 = scmp.ne.s32.totalorder %s243_s23, %s1555_s21  ;;  %p1559_p11 = scmp.lt.u32.totalorder %s2159_s0, %s1555_s21 }
 0x190   :  { %p1561_p13 = scmp.lt.u32.totalorder %s1555_s21, %s243_s23 }
 0x191   :  { %p1560_p12 = por %p1559_p11, %p1558_p10 }
 0x193   :  { %p1562_p0 = por %p1561_p13, %p1560_p12 }
 0x195   :  { %p1563_p1 = pnand %p1562_p0, %p1556_p9 }
 0x197   :  { %1566 = shalt.err (!%p1563_p1)  }
 0x198   :  { %s1567_s5 = scalar_lea.vmem %s248_s30, 32  ;;  %p1572_p3 = scmp.lt.s32.totalorder %s248_s30, %s2139_s10 }
 0x199   :  { %p1568_p2 = scmp.ne.s32.totalorder %s248_s30, %s1567_s5  ;;  %p1573_p4 = scmp.lt.s32.totalorder %s2168_s7, %s1567_s5 }
 0x19b   :  { %p1574_p5 = por %p1573_p4, %p1572_p3 }
 0x19d   :  { %p1575_p6 = pnand %p1574_p5, %p1568_p2 }
 0x19f   :  { %1578 = shalt.err (!%p1575_p6)  }
 0x1a0   :  { %250 = dma.hbm_to_vmem [thread:$0]  %s243_s23, 32, %s248_s30, [#allocation3 + $0xf], %s2062_s8, %s2062_s8, %s2063_s9 }
 0x1a1   :  { %s1035_s17 = sld [smem:[#allocation5 + $0x10]]  ;;  %s2077_s14 = smov [#allocation2 + $0x20]  }
 0x1a2   :  { %s261_s27 = sshll.u32 %s2077_s14, 4  ;;  %s1038_s29 = sld [smem:[#allocation5 + $0x11]]  ;;  %s2438_s27 = int_to_ptr.vmem [resolvable:$true] %s261_s27 }
 0x1a3   :  { %s2078_s6 = smov [#allocation2 + $0x21]   ;;  %s2440_s4 = sld [smem:[#allocation5 + $0x12]] }
 0x1a4   :  { %s275_s28 = sshll.u32 %s2078_s6, 4  ;;  %s2079_s19 = smov [#allocation2 + $0x22]   ;;  %s2442_s28 = int_to_ptr.vmem [resolvable:$true] %s275_s28 }
 0x1a5   :  { %s2444_s16 = sshll.u32 %s2079_s19, 4  ;;  %s2446_s11 = sld [smem:[#allocation5 + $0x13]]  ;;  %s290_s16 = int_to_ptr.vmem [resolvable:$true] %s2444_s16 }
 0x1a7   :  { %s252_s24 = sshrl.u32 %s1035_s17, 3  ;;  %s253_s13 = sand.u32 7, %s1035_s17  }
 0x1a8   :  { %s1036_s15 = sshll.u32 %s252_s24, 4  ;;  %s266_s18 = sshrl.u32 %s1038_s29, 3 }
 0x1a9   :  { %s255_s1 = sadd.s32 %s1036_s15, %s253_s13  ;;  %s267_s26 = sand.u32 7, %s1038_s29  }
 0x1aa   :  { %s1037_s30 = sshll.u32 %s255_s1, 4  ;;  %s1039_s20 = sshll.u32 %s266_s18, 4 }
 0x1ab   :  { %s257_s21 = scalar_lea.hbm %s2738_s2, %s1037_s30  ;;  %s269_s25 = sadd.s32 %s1039_s20, %s267_s26 }
 0x1ac   :  { %s1579_s12 = scalar_lea.hbm %s257_s21, 32  ;;  %p1582_p8 = scmp.lt.u32.totalorder %s257_s21, %s2738_s2 }
 0x1ad   :  { %p1580_p7 = scmp.ne.s32.totalorder %s257_s21, %s1579_s12  ;;  %p1583_p9 = scmp.lt.u32.totalorder %s2159_s0, %s1579_s12 }
 0x1ae   :  { %p1585_p11 = scmp.lt.u32.totalorder %s1579_s12, %s257_s21 }
 0x1af   :  { %p1584_p10 = por %p1583_p9, %p1582_p8 }
 0x1b1   :  { %p1586_p12 = por %p1585_p11, %p1584_p10 }
 0x1b3   :  { %p1587_p13 = pnand %p1586_p12, %p1580_p7 }
 0x1b5   :  { %1590 = shalt.err (!%p1587_p13)  }
 0x1b6   :  { %s1591_s17 = scalar_lea.vmem %s2438_s27, 32  ;;  %p1596_p1 = scmp.lt.s32.totalorder %s2438_s27, %s2139_s10 }
 0x1b7   :  { %p1592_p0 = scmp.ne.s32.totalorder %s2438_s27, %s1591_s17  ;;  %p1597_p2 = scmp.lt.s32.totalorder %s2168_s7, %s1591_s17 }
 0x1b9   :  { %p1598_p3 = por %p1597_p2, %p1596_p1 }
 0x1bb   :  { %p1599_p4 = pnand %p1598_p3, %p1592_p0 }
 0x1bd   :  { %1602 = shalt.err (!%p1599_p4)  }
 0x1be   :  { %264 = dma.hbm_to_vmem [thread:$0]  %s257_s21, 32, %s2438_s27, [#allocation3 + $0x10], %s2062_s8, %s2062_s8, %s2063_s9 }
 0x1bf   :  { %s1040_s29 = sshll.u32 %s269_s25, 4  ;;  %s280_s6 = sshrl.u32 %s2440_s4, 3 }
 0x1c0   :  { %s271_s13 = scalar_lea.hbm %s2738_s2, %s1040_s29  ;;  %s281_s15 = sand.u32 7, %s2440_s4  }
 0x1c1   :  { %s1603_s18 = scalar_lea.hbm %s271_s13, 32  ;;  %p1606_p6 = scmp.lt.u32.totalorder %s271_s13, %s2738_s2 }
 0x1c2   :  { %p1604_p5 = scmp.ne.s32.totalorder %s271_s13, %s1603_s18  ;;  %p1607_p7 = scmp.lt.u32.totalorder %s2159_s0, %s1603_s18 }
 0x1c3   :  { %p1609_p9 = scmp.lt.u32.totalorder %s1603_s18, %s271_s13 }
 0x1c4   :  { %p1608_p8 = por %p1607_p7, %p1606_p6 }
 0x1c6   :  { %p1610_p10 = por %p1609_p9, %p1608_p8 }
 0x1c8   :  { %p1611_p11 = pnand %p1610_p10, %p1604_p5 }
 0x1ca   :  { %1614 = shalt.err (!%p1611_p11)  }
 0x1cb   :  { %s1615_s27 = scalar_lea.vmem %s2442_s28, 32  ;;  %p1620_p13 = scmp.lt.s32.totalorder %s2442_s28, %s2139_s10 }
 0x1cc   :  { %p1616_p12 = scmp.ne.s32.totalorder %s2442_s28, %s1615_s27  ;;  %p1621_p0 = scmp.lt.s32.totalorder %s2168_s7, %s1615_s27 }
 0x1ce   :  { %p1622_p1 = por %p1621_p0, %p1620_p13 }
 0x1d0   :  { %p1623_p2 = pnand %p1622_p1, %p1616_p12 }
 0x1d2   :  { %1626 = shalt.err (!%p1623_p2)  }
 0x1d3   :  { %278 = dma.hbm_to_vmem [thread:$0]  %s271_s13, 32, %s2442_s28, [#allocation3 + $0x11], %s2062_s8, %s2062_s8, %s2063_s9 }
 0x1d4   :  { %s1042_s4 = sshll.u32 %s280_s6, 4  ;;  %s294_s20 = sshrl.u32 %s2446_s11, 3 }
 0x1d5   :  { %s283_s30 = sadd.s32 %s1042_s4, %s281_s15  ;;  %s295_s23 = sand.u32 7, %s2446_s11  }
 0x1d6   :  { %s1043_s22 = sshll.u32 %s283_s30, 4  ;;  %s1045_s5 = sshll.u32 %s294_s20, 4 }
 0x1d7   :  { %s285_s12 = scalar_lea.hbm %s2738_s2, %s1043_s22 }
 0x1d8   :  { %s1627_s14 = scalar_lea.hbm %s285_s12, 32  ;;  %p1630_p4 = scmp.lt.u32.totalorder %s285_s12, %s2738_s2 }
 0x1d9   :  { %p1628_p3 = scmp.ne.s32.totalorder %s285_s12, %s1627_s14  ;;  %p1631_p5 = scmp.lt.u32.totalorder %s2159_s0, %s1627_s14 }
 0x1da   :  { %p1633_p7 = scmp.lt.u32.totalorder %s1627_s14, %s285_s12 }
 0x1db   :  { %p1632_p6 = por %p1631_p5, %p1630_p4 }
 0x1dd   :  { %p1634_p8 = por %p1633_p7, %p1632_p6 }
 0x1df   :  { %p1635_p9 = pnand %p1634_p8, %p1628_p3 }
 0x1e1   :  { %1638 = shalt.err (!%p1635_p9)  }
 0x1e2   :  { %s1639_s28 = scalar_lea.vmem %s290_s16, 32  ;;  %p1644_p11 = scmp.lt.s32.totalorder %s290_s16, %s2139_s10 }
 0x1e3   :  { %p1640_p10 = scmp.ne.s32.totalorder %s290_s16, %s1639_s28  ;;  %p1645_p12 = scmp.lt.s32.totalorder %s2168_s7, %s1639_s28 }
 0x1e5   :  { %p1646_p13 = por %p1645_p12, %p1644_p11 }
 0x1e7   :  { %p1647_p0 = pnand %p1646_p13, %p1640_p10 }
 0x1e9   :  { %1650 = shalt.err (!%p1647_p0)  }
 0x1ea   :  { %292 = dma.hbm_to_vmem [thread:$0]  %s285_s12, 32, %s290_s16, [#allocation3 + $0x12], %s2062_s8, %s2062_s8, %s2063_s9 }
 0x1eb   :  { %s297_s11 = sadd.s32 %s1045_s5, %s295_s23  ;;  %s2080_s19 = smov [#allocation2 + $0x23]  }
 0x1ec   :  { %s1046_s6 = sshll.u32 %s297_s11, 4  ;;  %s303_s24 = sshll.u32 %s2080_s19, 4  ;;  %s304_s24 = int_to_ptr.vmem [resolvable:$true] %s303_s24 }
 0x1ed   :  { %s299_s18 = scalar_lea.hbm %s2738_s2, %s1046_s6 }
 0x1ee   :  { %s1651_s1 = scalar_lea.hbm %s299_s18, 32  ;;  %p1654_p2 = scmp.lt.u32.totalorder %s299_s18, %s2738_s2 }
 0x1ef   :  { %p1652_p1 = scmp.ne.s32.totalorder %s299_s18, %s1651_s1  ;;  %p1655_p3 = scmp.lt.u32.totalorder %s2159_s0, %s1651_s1 }
 0x1f0   :  { %p1657_p5 = scmp.lt.u32.totalorder %s1651_s1, %s299_s18 }
 0x1f1   :  { %p1656_p4 = por %p1655_p3, %p1654_p2 }
 0x1f3   :  { %p1658_p6 = por %p1657_p5, %p1656_p4 }
 0x1f5   :  { %p1659_p7 = pnand %p1658_p6, %p1652_p1 }
 0x1f7   :  { %1662 = shalt.err (!%p1659_p7)  }
 0x1f8   :  { %s1663_s16 = scalar_lea.vmem %s304_s24, 32  ;;  %p1668_p9 = scmp.lt.s32.totalorder %s304_s24, %s2139_s10 }
 0x1f9   :  { %p1664_p8 = scmp.ne.s32.totalorder %s304_s24, %s1663_s16  ;;  %p1669_p10 = scmp.lt.s32.totalorder %s2168_s7, %s1663_s16 }
 0x1fb   :  { %p1670_p11 = por %p1669_p10, %p1668_p9 }
 0x1fd   :  { %p1671_p12 = pnand %p1670_p11, %p1664_p8 }
 0x1ff   :  { %1674 = shalt.err (!%p1671_p12)  }
 0x200   :  { %306 = dma.hbm_to_vmem [thread:$0]  %s299_s18, 32, %s304_s24, [#allocation3 + $0x13], %s2062_s8, %s2062_s8, %s2063_s9 }
 0x201   :  { %s1047_s4 = sld [smem:[#allocation5 + $0x14]]  ;;  %s2081_s30 = smov [#allocation2 + $0x24]  }
 0x202   :  { %s317_s20 = sshll.u32 %s2081_s30, 4  ;;  %s1050_s22 = sld [smem:[#allocation5 + $0x15]]  ;;  %s2509_s20 = int_to_ptr.vmem [resolvable:$true] %s317_s20 }
 0x203   :  { %s2082_s23 = smov [#allocation2 + $0x25]   ;;  %s2511_s25 = sld [smem:[#allocation5 + $0x16]] }
 0x204   :  { %s331_s21 = sshll.u32 %s2082_s23, 4  ;;  %s2083_s12 = smov [#allocation2 + $0x26]   ;;  %s2513_s21 = int_to_ptr.vmem [resolvable:$true] %s331_s21 }
 0x205   :  { %s2515_s5 = sshll.u32 %s2083_s12, 4  ;;  %s2517_s14 = sld [smem:[#allocation5 + $0x17]]  ;;  %s346_s5 = int_to_ptr.vmem [resolvable:$true] %s2515_s5 }
 0x207   :  { %s308_s17 = sshrl.u32 %s1047_s4, 3  ;;  %s309_s29 = sand.u32 7, %s1047_s4  }
 0x208   :  { %s1048_s28 = sshll.u32 %s308_s17, 4  ;;  %s322_s11 = sshrl.u32 %s1050_s22, 3 }
 0x209   :  { %s311_s6 = sadd.s32 %s1048_s28, %s309_s29  ;;  %s323_s19 = sand.u32 7, %s1050_s22  }
 0x20a   :  { %s1049_s24 = sshll.u32 %s311_s6, 4  ;;  %s1051_s13 = sshll.u32 %s322_s11, 4 }
 0x20b   :  { %s313_s1 = scalar_lea.hbm %s2738_s2, %s1049_s24  ;;  %s325_s26 = sadd.s32 %s1051_s13, %s323_s19 }
 0x20c   :  { %s1675_s27 = scalar_lea.hbm %s313_s1, 32  ;;  %p1678_p0 = scmp.lt.u32.totalorder %s313_s1, %s2738_s2 }
 0x20d   :  { %p1676_p13 = scmp.ne.s32.totalorder %s313_s1, %s1675_s27  ;;  %p1679_p1 = scmp.lt.u32.totalorder %s2159_s0, %s1675_s27 }
 0x20e   :  { %p1681_p3 = scmp.lt.u32.totalorder %s1675_s27, %s313_s1 }
 0x20f   :  { %p1680_p2 = por %p1679_p1, %p1678_p0 }
 0x211   :  { %p1682_p4 = por %p1681_p3, %p1680_p2 }
 0x213   :  { %p1683_p5 = pnand %p1682_p4, %p1676_p13 }
 0x215   :  { %1686 = shalt.err (!%p1683_p5)  }
 0x216   :  { %s1687_s4 = scalar_lea.vmem %s2509_s20, 32  ;;  %p1692_p7 = scmp.lt.s32.totalorder %s2509_s20, %s2139_s10 }
 0x217   :  { %p1688_p6 = scmp.ne.s32.totalorder %s2509_s20, %s1687_s4  ;;  %p1693_p8 = scmp.lt.s32.totalorder %s2168_s7, %s1687_s4 }
 0x219   :  { %p1694_p9 = por %p1693_p8, %p1692_p7 }
 0x21b   :  { %p1695_p10 = pnand %p1694_p9, %p1688_p6 }
 0x21d   :  { %1698 = shalt.err (!%p1695_p10)  }
 0x21e   :  { %320 = dma.hbm_to_vmem [thread:$0]  %s313_s1, 32, %s2509_s20, [#allocation3 + $0x14], %s2062_s8, %s2062_s8, %s2063_s9 }
 0x21f   :  { %s1052_s22 = sshll.u32 %s325_s26, 4  ;;  %s336_s23 = sshrl.u32 %s2511_s25, 3 }
 0x220   :  { %s327_s29 = scalar_lea.hbm %s2738_s2, %s1052_s22  ;;  %s337_s28 = sand.u32 7, %s2511_s25  }
 0x221   :  { %s1699_s11 = scalar_lea.hbm %s327_s29, 32  ;;  %p1702_p12 = scmp.lt.u32.totalorder %s327_s29, %s2738_s2 }
 0x222   :  { %p1700_p11 = scmp.ne.s32.totalorder %s327_s29, %s1699_s11  ;;  %p1703_p13 = scmp.lt.u32.totalorder %s2159_s0, %s1699_s11 }
 0x223   :  { %p1705_p1 = scmp.lt.u32.totalorder %s1699_s11, %s327_s29 }
 0x224   :  { %p1704_p0 = por %p1703_p13, %p1702_p12 }
 0x226   :  { %p1706_p2 = por %p1705_p1, %p1704_p0 }
 0x228   :  { %p1707_p3 = pnand %p1706_p2, %p1700_p11 }
 0x22a   :  { %1710 = shalt.err (!%p1707_p3)  }
 0x22b   :  { %s1711_s20 = scalar_lea.vmem %s2513_s21, 32  ;;  %p1716_p5 = scmp.lt.s32.totalorder %s2513_s21, %s2139_s10 }
 0x22c   :  { %p1712_p4 = scmp.ne.s32.totalorder %s2513_s21, %s1711_s20  ;;  %p1717_p6 = scmp.lt.s32.totalorder %s2168_s7, %s1711_s20 }
 0x22e   :  { %p1718_p7 = por %p1717_p6, %p1716_p5 }
 0x230   :  { %p1719_p8 = pnand %p1718_p7, %p1712_p4 }
 0x232   :  { %1722 = shalt.err (!%p1719_p8)  }
 0x233   :  { %334 = dma.hbm_to_vmem [thread:$0]  %s327_s29, 32, %s2513_s21, [#allocation3 + $0x15], %s2062_s8, %s2062_s8, %s2063_s9 }
 0x234   :  { %s1054_s25 = sshll.u32 %s336_s23, 4  ;;  %s350_s13 = sshrl.u32 %s2517_s14, 3 }
 0x235   :  { %s339_s24 = sadd.s32 %s1054_s25, %s337_s28  ;;  %s351_s18 = sand.u32 7, %s2517_s14  }
 0x236   :  { %s1055_s15 = sshll.u32 %s339_s24, 4  ;;  %s1057_s16 = sshll.u32 %s350_s13, 4 }
 0x237   :  { %s341_s27 = scalar_lea.hbm %s2738_s2, %s1055_s15 }
 0x238   :  { %s1723_s30 = scalar_lea.hbm %s341_s27, 32  ;;  %p1726_p10 = scmp.lt.u32.totalorder %s341_s27, %s2738_s2 }
 0x239   :  { %p1724_p9 = scmp.ne.s32.totalorder %s341_s27, %s1723_s30  ;;  %p1727_p11 = scmp.lt.u32.totalorder %s2159_s0, %s1723_s30 }
 0x23a   :  { %p1729_p13 = scmp.lt.u32.totalorder %s1723_s30, %s341_s27 }
 0x23b   :  { %p1728_p12 = por %p1727_p11, %p1726_p10 }
 0x23d   :  { %p1730_p0 = por %p1729_p13, %p1728_p12 }
 0x23f   :  { %p1731_p1 = pnand %p1730_p0, %p1724_p9 }
 0x241   :  { %1734 = shalt.err (!%p1731_p1)  }
 0x242   :  { %s1735_s21 = scalar_lea.vmem %s346_s5, 32  ;;  %p1740_p3 = scmp.lt.s32.totalorder %s346_s5, %s2139_s10 }
 0x243   :  { %p1736_p2 = scmp.ne.s32.totalorder %s346_s5, %s1735_s21  ;;  %p1741_p4 = scmp.lt.s32.totalorder %s2168_s7, %s1735_s21 }
 0x245   :  { %p1742_p5 = por %p1741_p4, %p1740_p3 }
 0x247   :  { %p1743_p6 = pnand %p1742_p5, %p1736_p2 }
 0x249   :  { %1746 = shalt.err (!%p1743_p6)  }
 0x24a   :  { %348 = dma.hbm_to_vmem [thread:$0]  %s341_s27, 32, %s346_s5, [#allocation3 + $0x16], %s2062_s8, %s2062_s8, %s2063_s9 }
 0x24b   :  { %s353_s14 = sadd.s32 %s1057_s16, %s351_s18  ;;  %s2084_s12 = smov [#allocation2 + $0x27]  }
 0x24c   :  { %s1058_s23 = sshll.u32 %s353_s14, 4  ;;  %s359_s17 = sshll.u32 %s2084_s12, 4  ;;  %s360_s17 = int_to_ptr.vmem [resolvable:$true] %s359_s17 }
 0x24d   :  { %s355_s11 = scalar_lea.hbm %s2738_s2, %s1058_s23 }
 0x24e   :  { %s1747_s6 = scalar_lea.hbm %s355_s11, 32  ;;  %p1750_p8 = scmp.lt.u32.totalorder %s355_s11, %s2738_s2 }
 0x24f   :  { %p1748_p7 = scmp.ne.s32.totalorder %s355_s11, %s1747_s6  ;;  %p1751_p9 = scmp.lt.u32.totalorder %s2159_s0, %s1747_s6 }
 0x250   :  { %p1753_p11 = scmp.lt.u32.totalorder %s1747_s6, %s355_s11 }
 0x251   :  { %p1752_p10 = por %p1751_p9, %p1750_p8 }
 0x253   :  { %p1754_p12 = por %p1753_p11, %p1752_p10 }
 0x255   :  { %p1755_p13 = pnand %p1754_p12, %p1748_p7 }
 0x257   :  { %1758 = shalt.err (!%p1755_p13)  }
 0x258   :  { %s1759_s5 = scalar_lea.vmem %s360_s17, 32  ;;  %p1764_p1 = scmp.lt.s32.totalorder %s360_s17, %s2139_s10 }
 0x259   :  { %p1760_p0 = scmp.ne.s32.totalorder %s360_s17, %s1759_s5  ;;  %p1765_p2 = scmp.lt.s32.totalorder %s2168_s7, %s1759_s5 }
 0x25b   :  { %p1766_p3 = por %p1765_p2, %p1764_p1 }
 0x25d   :  { %p1767_p4 = pnand %p1766_p3, %p1760_p0 }
 0x25f   :  { %1770 = shalt.err (!%p1767_p4)  }
 0x260   :  { %362 = dma.hbm_to_vmem [thread:$0]  %s355_s11, 32, %s360_s17, [#allocation3 + $0x17], %s2062_s8, %s2062_s8, %s2063_s9 }
 0x261   :  { %s1059_s25 = sld [smem:[#allocation5 + $0x18]]  ;;  %s2085_s24 = smov [#allocation2 + $0x30]  }
 0x262   :  { %s373_s13 = sshll.u32 %s2085_s24, 4  ;;  %s1062_s15 = sld [smem:[#allocation5 + $0x19]]  ;;  %s2580_s13 = int_to_ptr.vmem [resolvable:$true] %s373_s13 }
 0x263   :  { %s2086_s18 = smov [#allocation2 + $0x31]   ;;  %s2582_s26 = sld [smem:[#allocation5 + $0x1a]] }
 0x264   :  { %s387_s1 = sshll.u32 %s2086_s18, 4  ;;  %s2087_s27 = smov [#allocation2 + $0x32]   ;;  %s2584_s1 = int_to_ptr.vmem [resolvable:$true] %s387_s1 }
 0x265   :  { %s2586_s16 = sshll.u32 %s2087_s27, 4  ;;  %s2588_s30 = sld [smem:[#allocation5 + $0x1b]]  ;;  %s402_s16 = int_to_ptr.vmem [resolvable:$true] %s2586_s16 }
 0x267   :  { %s364_s4 = sshrl.u32 %s1059_s25, 3  ;;  %s365_s22 = sand.u32 7, %s1059_s25  }
 0x268   :  { %s1060_s21 = sshll.u32 %s364_s4, 4  ;;  %s378_s14 = sshrl.u32 %s1062_s15, 3 }
 0x269   :  { %s367_s23 = sadd.s32 %s1060_s21, %s365_s22  ;;  %s379_s12 = sand.u32 7, %s1062_s15  }
 0x26a   :  { %s1061_s17 = sshll.u32 %s367_s23, 4  ;;  %s1063_s29 = sshll.u32 %s378_s14, 4 }
 0x26b   :  { %s369_s6 = scalar_lea.hbm %s2738_s2, %s1061_s17  ;;  %s381_s19 = sadd.s32 %s1063_s29, %s379_s12 }
 0x26c   :  { %s1771_s20 = scalar_lea.hbm %s369_s6, 32  ;;  %p1774_p6 = scmp.lt.u32.totalorder %s369_s6, %s2738_s2 }
 0x26d   :  { %p1772_p5 = scmp.ne.s32.totalorder %s369_s6, %s1771_s20  ;;  %p1775_p7 = scmp.lt.u32.totalorder %s2159_s0, %s1771_s20 }
 0x26e   :  { %p1777_p9 = scmp.lt.u32.totalorder %s1771_s20, %s369_s6 }
 0x26f   :  { %p1776_p8 = por %p1775_p7, %p1774_p6 }
 0x271   :  { %p1778_p10 = por %p1777_p9, %p1776_p8 }
 0x273   :  { %p1779_p11 = pnand %p1778_p10, %p1772_p5 }
 0x275   :  { %1782 = shalt.err (!%p1779_p11)  }
 0x276   :  { %s1783_s25 = scalar_lea.vmem %s2580_s13, 32  ;;  %p1788_p13 = scmp.lt.s32.totalorder %s2580_s13, %s2139_s10 }
 0x277   :  { %p1784_p12 = scmp.ne.s32.totalorder %s2580_s13, %s1783_s25  ;;  %p1789_p0 = scmp.lt.s32.totalorder %s2168_s7, %s1783_s25 }
 0x279   :  { %p1790_p1 = por %p1789_p0, %p1788_p13 }
 0x27b   :  { %p1791_p2 = pnand %p1790_p1, %p1784_p12 }
 0x27d   :  { %1794 = shalt.err (!%p1791_p2)  }
 0x27e   :  { %376 = dma.hbm_to_vmem [thread:$0]  %s369_s6, 32, %s2580_s13, [#allocation3 + $0x18], %s2062_s8, %s2062_s8, %s2063_s9 }
 0x27f   :  { %s1064_s15 = sshll.u32 %s381_s19, 4  ;;  %s392_s18 = sshrl.u32 %s2582_s26, 3 }
 0x280   :  { %s383_s22 = scalar_lea.hbm %s2738_s2, %s1064_s15  ;;  %s393_s21 = sand.u32 7, %s2582_s26  }
 0x281   :  { %s1795_s14 = scalar_lea.hbm %s383_s22, 32  ;;  %p1798_p4 = scmp.lt.u32.totalorder %s383_s22, %s2738_s2 }
 0x282   :  { %p1796_p3 = scmp.ne.s32.totalorder %s383_s22, %s1795_s14  ;;  %p1799_p5 = scmp.lt.u32.totalorder %s2159_s0, %s1795_s14 }
 0x283   :  { %p1801_p7 = scmp.lt.u32.totalorder %s1795_s14, %s383_s22 }
 0x284   :  { %p1800_p6 = por %p1799_p5, %p1798_p4 }
 0x286   :  { %p1802_p8 = por %p1801_p7, %p1800_p6 }
 0x288   :  { %p1803_p9 = pnand %p1802_p8, %p1796_p3 }
 0x28a   :  { %1806 = shalt.err (!%p1803_p9)  }
 0x28b   :  { %s1807_s13 = scalar_lea.vmem %s2584_s1, 32  ;;  %p1812_p11 = scmp.lt.s32.totalorder %s2584_s1, %s2139_s10 }
 0x28c   :  { %p1808_p10 = scmp.ne.s32.totalorder %s2584_s1, %s1807_s13  ;;  %p1813_p12 = scmp.lt.s32.totalorder %s2168_s7, %s1807_s13 }
 0x28e   :  { %p1814_p13 = por %p1813_p12, %p1812_p11 }
 0x290   :  { %p1815_p0 = pnand %p1814_p13, %p1808_p10 }
 0x292   :  { %1818 = shalt.err (!%p1815_p0)  }
 0x293   :  { %390 = dma.hbm_to_vmem [thread:$0]  %s383_s22, 32, %s2584_s1, [#allocation3 + $0x19], %s2062_s8, %s2062_s8, %s2063_s9 }
 0x294   :  { %s1066_s26 = sshll.u32 %s392_s18, 4  ;;  %s406_s29 = sshrl.u32 %s2588_s30, 3 }
 0x295   :  { %s395_s17 = sadd.s32 %s1066_s26, %s393_s21  ;;  %s407_s11 = sand.u32 7, %s2588_s30  }
 0x296   :  { %s1067_s28 = sshll.u32 %s395_s17, 4  ;;  %s1069_s5 = sshll.u32 %s406_s29, 4 }
 0x297   :  { %s397_s20 = scalar_lea.hbm %s2738_s2, %s1067_s28 }
 0x298   :  { %s1819_s24 = scalar_lea.hbm %s397_s20, 32  ;;  %p1822_p2 = scmp.lt.u32.totalorder %s397_s20, %s2738_s2 }
 0x299   :  { %p1820_p1 = scmp.ne.s32.totalorder %s397_s20, %s1819_s24  ;;  %p1823_p3 = scmp.lt.u32.totalorder %s2159_s0, %s1819_s24 }
 0x29a   :  { %p1825_p5 = scmp.lt.u32.totalorder %s1819_s24, %s397_s20 }
 0x29b   :  { %p1824_p4 = por %p1823_p3, %p1822_p2 }
 0x29d   :  { %p1826_p6 = por %p1825_p5, %p1824_p4 }
 0x29f   :  { %p1827_p7 = pnand %p1826_p6, %p1820_p1 }
 0x2a1   :  { %1830 = shalt.err (!%p1827_p7)  }
 0x2a2   :  { %s1831_s1 = scalar_lea.vmem %s402_s16, 32  ;;  %p1836_p9 = scmp.lt.s32.totalorder %s402_s16, %s2139_s10 }
 0x2a3   :  { %p1832_p8 = scmp.ne.s32.totalorder %s402_s16, %s1831_s1  ;;  %p1837_p10 = scmp.lt.s32.totalorder %s2168_s7, %s1831_s1 }
 0x2a5   :  { %p1838_p11 = por %p1837_p10, %p1836_p9 }
 0x2a7   :  { %p1839_p12 = pnand %p1838_p11, %p1832_p8 }
 0x2a9   :  { %1842 = shalt.err (!%p1839_p12)  }
 0x2aa   :  { %404 = dma.hbm_to_vmem [thread:$0]  %s397_s20, 32, %s402_s16, [#allocation3 + $0x1a], %s2062_s8, %s2062_s8, %s2063_s9 }
 0x2ab   :  { %s409_s30 = sadd.s32 %s1069_s5, %s407_s11  ;;  %s2088_s27 = smov [#allocation2 + $0x33]  }
 0x2ac   :  { %s1070_s18 = sshll.u32 %s409_s30, 4  ;;  %s415_s4 = sshll.u32 %s2088_s27, 4  ;;  %s416_s4 = int_to_ptr.vmem [resolvable:$true] %s415_s4 }
 0x2ad   :  { %s411_s14 = scalar_lea.hbm %s2738_s2, %s1070_s18 }
 0x2ae   :  { %s1843_s23 = scalar_lea.hbm %s411_s14, 32  ;;  %p1846_p0 = scmp.lt.u32.totalorder %s411_s14, %s2738_s2 }
 0x2af   :  { %p1844_p13 = scmp.ne.s32.totalorder %s411_s14, %s1843_s23  ;;  %p1847_p1 = scmp.lt.u32.totalorder %s2159_s0, %s1843_s23 }
 0x2b0   :  { %p1849_p3 = scmp.lt.u32.totalorder %s1843_s23, %s411_s14 }
 0x2b1   :  { %p1848_p2 = por %p1847_p1, %p1846_p0 }
 0x2b3   :  { %p1850_p4 = por %p1849_p3, %p1848_p2 }
 0x2b5   :  { %p1851_p5 = pnand %p1850_p4, %p1844_p13 }
 0x2b7   :  { %1854 = shalt.err (!%p1851_p5)  }
 0x2b8   :  { %s1855_s16 = scalar_lea.vmem %s416_s4, 32  ;;  %p1860_p7 = scmp.lt.s32.totalorder %s416_s4, %s2139_s10 }
 0x2b9   :  { %p1856_p6 = scmp.ne.s32.totalorder %s416_s4, %s1855_s16  ;;  %p1861_p8 = scmp.lt.s32.totalorder %s2168_s7, %s1855_s16 }
 0x2bb   :  { %p1862_p9 = por %p1861_p8, %p1860_p7 }
 0x2bd   :  { %p1863_p10 = pnand %p1862_p9, %p1856_p6 }
 0x2bf   :  { %1866 = shalt.err (!%p1863_p10)  }
 0x2c0   :  { %418 = dma.hbm_to_vmem [thread:$0]  %s411_s14, 32, %s416_s4, [#allocation3 + $0x1b], %s2062_s8, %s2062_s8, %s2063_s9 }
 0x2c1   :  { %s1071_s26 = sld [smem:[#allocation5 + $0x1c]]  ;;  %s2089_s17 = smov [#allocation2 + $0x34]  }
 0x2c2   :  { %s429_s29 = sshll.u32 %s2089_s17, 4  ;;  %s1074_s28 = sld [smem:[#allocation5 + $0x1d]]  ;;  %s2651_s29 = int_to_ptr.vmem [resolvable:$true] %s429_s29 }
 0x2c3   :  { %s2090_s11 = smov [#allocation2 + $0x35]   ;;  %s2653_s19 = sld [smem:[#allocation5 + $0x1e]] }
 0x2c4   :  { %s443_s6 = sshll.u32 %s2090_s11, 4  ;;  %s2091_s20 = smov [#allocation2 + $0x36]   ;;  %s2655_s6 = int_to_ptr.vmem [resolvable:$true] %s443_s6 }
 0x2c5   :  { %s2657_s5 = sshll.u32 %s2091_s20, 4  ;;  %s2659_s24 = sld [smem:[#allocation5 + $0x1f]]  ;;  %s458_s5 = int_to_ptr.vmem [resolvable:$true] %s2657_s5 }
 0x2c7   :  { %s420_s25 = sshrl.u32 %s1071_s26, 3  ;;  %s421_s15 = sand.u32 7, %s1071_s26  }
 0x2c8   :  { %s1072_s1 = sshll.u32 %s420_s25, 4  ;;  %s434_s30 = sshrl.u32 %s1074_s28, 3 }
 0x2c9   :  { %s423_s18 = sadd.s32 %s1072_s1, %s421_s15  ;;  %s435_s27 = sand.u32 7, %s1074_s28  }
 0x2ca   :  { %s1073_s4 = sshll.u32 %s423_s18, 4  ;;  %s1075_s22 = sshll.u32 %s434_s30, 4 }
 0x2cb   :  { %s425_s23 = scalar_lea.hbm %s2738_s2, %s1073_s4  ;;  %s437_s12 = sadd.s32 %s1075_s22, %s435_s27 }
 0x2cc   :  { %s1867_s13 = scalar_lea.hbm %s425_s23, 32  ;;  %p1870_p12 = scmp.lt.u32.totalorder %s425_s23, %s2738_s2 }
 0x2cd   :  { %p1868_p11 = scmp.ne.s32.totalorder %s425_s23, %s1867_s13  ;;  %p1871_p13 = scmp.lt.u32.totalorder %s2159_s0, %s1867_s13 }
 0x2ce   :  { %p1873_p1 = scmp.lt.u32.totalorder %s1867_s13, %s425_s23 }
 0x2cf   :  { %p1872_p0 = por %p1871_p13, %p1870_p12 }
 0x2d1   :  { %p1874_p2 = por %p1873_p1, %p1872_p0 }
 0x2d3   :  { %p1875_p3 = pnand %p1874_p2, %p1868_p11 }
 0x2d5   :  { %1878 = shalt.err (!%p1875_p3)  }
 0x2d6   :  { %s1879_s26 = scalar_lea.vmem %s2651_s29, 32  ;;  %p1884_p5 = scmp.lt.s32.totalorder %s2651_s29, %s2139_s10 }
 0x2d7   :  { %p1880_p4 = scmp.ne.s32.totalorder %s2651_s29, %s1879_s26  ;;  %p1885_p6 = scmp.lt.s32.totalorder %s2168_s7, %s1879_s26 }
 0x2d9   :  { %p1886_p7 = por %p1885_p6, %p1884_p5 }
 0x2db   :  { %p1887_p8 = pnand %p1886_p7, %p1880_p4 }
 0x2dd   :  { %1890 = shalt.err (!%p1887_p8)  }
 0x2de   :  { %432 = dma.hbm_to_vmem [thread:$0]  %s425_s23, 32, %s2651_s29, [#allocation3 + $0x1c], %s2062_s8, %s2062_s8, %s2063_s9 }
 0x2df   :  { %s1076_s28 = sshll.u32 %s437_s12, 4  ;;  %s448_s11 = sshrl.u32 %s2653_s19, 3 }
 0x2e0   :  { %s439_s15 = scalar_lea.hbm %s2738_s2, %s1076_s28  ;;  %s449_s1 = sand.u32 7, %s2653_s19  }
 0x2e1   :  { %s1891_s30 = scalar_lea.hbm %s439_s15, 32  ;;  %p1894_p10 = scmp.lt.u32.totalorder %s439_s15, %s2738_s2 }
 0x2e2   :  { %p1892_p9 = scmp.ne.s32.totalorder %s439_s15, %s1891_s30  ;;  %p1895_p11 = scmp.lt.u32.totalorder %s2159_s0, %s1891_s30 }
 0x2e3   :  { %p1897_p13 = scmp.lt.u32.totalorder %s1891_s30, %s439_s15 }
 0x2e4   :  { %p1896_p12 = por %p1895_p11, %p1894_p10 }
 0x2e6   :  { %p1898_p0 = por %p1897_p13, %p1896_p12 }
 0x2e8   :  { %p1899_p1 = pnand %p1898_p0, %p1892_p9 }
 0x2ea   :  { %1902 = shalt.err (!%p1899_p1)  }
 0x2eb   :  { %s1903_s29 = scalar_lea.vmem %s2655_s6, 32  ;;  %p1908_p3 = scmp.lt.s32.totalorder %s2655_s6, %s2139_s10 }
 0x2ec   :  { %p1904_p2 = scmp.ne.s32.totalorder %s2655_s6, %s1903_s29  ;;  %p1909_p4 = scmp.lt.s32.totalorder %s2168_s7, %s1903_s29 }
 0x2ee   :  { %p1910_p5 = por %p1909_p4, %p1908_p3 }
 0x2f0   :  { %p1911_p6 = pnand %p1910_p5, %p1904_p2 }
 0x2f2   :  { %1914 = shalt.err (!%p1911_p6)  }
 0x2f3   :  { %446 = dma.hbm_to_vmem [thread:$0]  %s439_s15, 32, %s2655_s6, [#allocation3 + $0x1d], %s2062_s8, %s2062_s8, %s2063_s9 }
 0x2f4   :  { %s1078_s19 = sshll.u32 %s448_s11, 4  ;;  %s462_s22 = sshrl.u32 %s2659_s24, 3 }
 0x2f5   :  { %s451_s4 = sadd.s32 %s1078_s19, %s449_s1  ;;  %s463_s14 = sand.u32 7, %s2659_s24  }
 0x2f6   :  { %s1079_s21 = sshll.u32 %s451_s4, 4  ;;  %s1081_s16 = sshll.u32 %s462_s22, 4 }
 0x2f7   :  { %s453_s13 = scalar_lea.hbm %s2738_s2, %s1079_s21 }
 0x2f8   :  { %s1915_s17 = scalar_lea.hbm %s453_s13, 32  ;;  %p1918_p8 = scmp.lt.u32.totalorder %s453_s13, %s2738_s2 }
 0x2f9   :  { %p1916_p7 = scmp.ne.s32.totalorder %s453_s13, %s1915_s17  ;;  %p1919_p9 = scmp.lt.u32.totalorder %s2159_s0, %s1915_s17 }
 0x2fa   :  { %p1921_p11 = scmp.lt.u32.totalorder %s1915_s17, %s453_s13 }
 0x2fb   :  { %p1920_p10 = por %p1919_p9, %p1918_p8 }
 0x2fd   :  { %p1922_p12 = por %p1921_p11, %p1920_p10 }
 0x2ff   :  { %p1923_p13 = pnand %p1922_p12, %p1916_p7 }
 0x301   :  { %1926 = shalt.err (!%p1923_p13)  }
 0x302   :  { %s1927_s6 = scalar_lea.vmem %s458_s5, 32  ;;  %p1932_p1 = scmp.lt.s32.totalorder %s458_s5, %s2139_s10 }
 0x303   :  { %p1928_p0 = scmp.ne.s32.totalorder %s458_s5, %s1927_s6  ;;  %p1933_p2 = scmp.lt.s32.totalorder %s2168_s7, %s1927_s6 }
 0x305   :  { %p1934_p3 = por %p1933_p2, %p1932_p1 }
 0x307   :  { %p1935_p4 = pnand %p1934_p3, %p1928_p0 }
 0x309   :  { %1938 = shalt.err (!%p1935_p4)  }
 0x30a   :  { %460 = dma.hbm_to_vmem [thread:$0]  %s453_s13, 32, %s458_s5, [#allocation3 + $0x1e], %s2062_s8, %s2062_s8, %s2063_s9 }
 0x30b   :  { %s465_s24 = sadd.s32 %s1081_s16, %s463_s14  ;;  %s2092_s20 = smov [#allocation2 + $0x37]  }
 0x30c   :  { %s1082_s11 = sshll.u32 %s465_s24, 4  ;;  %s471_s25 = sshll.u32 %s2092_s20, 4  ;;  %s472_s25 = int_to_ptr.vmem [resolvable:$true] %s471_s25 }
 0x30d   :  { %s467_s30 = scalar_lea.hbm %s2738_s2, %s1082_s11 }
 0x30e   :  { %s1939_s18 = scalar_lea.hbm %s467_s30, 32  ;;  %p1942_p6 = scmp.lt.u32.totalorder %s467_s30, %s2738_s2 }
 0x30f   :  { %p1940_p5 = scmp.ne.s32.totalorder %s467_s30, %s1939_s18  ;;  %p1943_p7 = scmp.lt.u32.totalorder %s2159_s0, %s1939_s18 }
 0x310   :  { %p1945_p9 = scmp.lt.u32.totalorder %s1939_s18, %s467_s30 }
 0x311   :  { %p1944_p8 = por %p1943_p7, %p1942_p6 }
 0x313   :  { %p1946_p10 = por %p1945_p9, %p1944_p8 }
 0x315   :  { %p1947_p11 = pnand %p1946_p10, %p1940_p5 }
 0x317   :  { %1950 = shalt.err (!%p1947_p11)  }
 0x318   :  { %s1951_s5 = scalar_lea.vmem %s472_s25, 32  ;;  %p1956_p13 = scmp.lt.s32.totalorder %s472_s25, %s2139_s10 }
 0x319   :  { %p1952_p12 = scmp.ne.s32.totalorder %s472_s25, %s1951_s5  ;;  %p1957_p0 = scmp.lt.s32.totalorder %s2168_s7, %s1951_s5 }
 0x31b   :  { %p1958_p1 = por %p1957_p0, %p1956_p13 }
 0x31d   :  { %p1959_p2 = pnand %p1958_p1, %p1952_p12 }
 0x31f   :  { %1962 = shalt.err (!%p1959_p2)  }
 0x320   :  { %474 = dma.hbm_to_vmem [thread:$0]  %s467_s30, 32, %s472_s25, [#allocation3 + $0x1f], %s2062_s8, %s2062_s8, %s2063_s9 }
 0x321   :  { %1989 = dma.done.wait [#allocation3], 32 }
 0x322   :  { %1990 = vsyncadd [#allocation3], 4294967264 }
 0x323   :  { %1991 = dma.done.wait [#allocation3 + $0x1], 32 }
 0x324   :  { %1992 = vsyncadd [#allocation3 + $0x1], 4294967264 }
 0x325   :  { %1993 = dma.done.wait [#allocation3 + $0x2], 32 }
 0x326   :  { %1994 = vsyncadd [#allocation3 + $0x2], 4294967264 }
 0x327   :  { %1995 = dma.done.wait [#allocation3 + $0x3], 32 }
 0x328   :  { %1996 = vsyncadd [#allocation3 + $0x3], 4294967264 }
 0x329   :  { %1997 = dma.done.wait [#allocation3 + $0x4], 32 }
 0x32a   :  { %1998 = vsyncadd [#allocation3 + $0x4], 4294967264 }
 0x32b   :  { %1999 = dma.done.wait [#allocation3 + $0x5], 32 }
 0x32c   :  { %2000 = vsyncadd [#allocation3 + $0x5], 4294967264 }
 0x32d   :  { %2001 = dma.done.wait [#allocation3 + $0x6], 32 }
 0x32e   :  { %2002 = vsyncadd [#allocation3 + $0x6], 4294967264 }
 0x32f   :  { %2003 = dma.done.wait [#allocation3 + $0x7], 32 }
 0x330   :  { %2004 = vsyncadd [#allocation3 + $0x7], 4294967264 }
 0x331   :  { %2005 = dma.done.wait [#allocation3 + $0x8], 32 }
 0x332   :  { %2006 = vsyncadd [#allocation3 + $0x8], 4294967264 }
 0x333   :  { %2007 = dma.done.wait [#allocation3 + $0x9], 32 }
 0x334   :  { %2008 = vsyncadd [#allocation3 + $0x9], 4294967264 }
 0x335   :  { %2009 = dma.done.wait [#allocation3 + $0xa], 32 }
 0x336   :  { %2010 = vsyncadd [#allocation3 + $0xa], 4294967264 }
 0x337   :  { %2011 = dma.done.wait [#allocation3 + $0xb], 32 }
 0x338   :  { %2012 = vsyncadd [#allocation3 + $0xb], 4294967264 }
 0x339   :  { %2013 = dma.done.wait [#allocation3 + $0xc], 32 }
 0x33a   :  { %2014 = vsyncadd [#allocation3 + $0xc], 4294967264 }
 0x33b   :  { %2015 = dma.done.wait [#allocation3 + $0xd], 32 }
 0x33c   :  { %2016 = vsyncadd [#allocation3 + $0xd], 4294967264 }
 0x33d   :  { %2017 = dma.done.wait [#allocation3 + $0xe], 32 }
 0x33e   :  { %2018 = vsyncadd [#allocation3 + $0xe], 4294967264 }
 0x33f   :  { %2019 = dma.done.wait [#allocation3 + $0xf], 32 }
 0x340   :  { %2020 = vsyncadd [#allocation3 + $0xf], 4294967264 }
 0x341   :  { %2021 = dma.done.wait [#allocation3 + $0x10], 32 }
 0x342   :  { %2022 = vsyncadd [#allocation3 + $0x10], 4294967264 }
 0x343   :  { %2023 = dma.done.wait [#allocation3 + $0x11], 32 }
 0x344   :  { %2024 = vsyncadd [#allocation3 + $0x11], 4294967264 }
 0x345   :  { %2025 = dma.done.wait [#allocation3 + $0x12], 32 }
 0x346   :  { %2026 = vsyncadd [#allocation3 + $0x12], 4294967264 }
 0x347   :  { %2027 = dma.done.wait [#allocation3 + $0x13], 32 }
 0x348   :  { %2028 = vsyncadd [#allocation3 + $0x13], 4294967264 }
 0x349   :  { %2029 = dma.done.wait [#allocation3 + $0x14], 32 }
 0x34a   :  { %2030 = vsyncadd [#allocation3 + $0x14], 4294967264 }
 0x34b   :  { %2031 = dma.done.wait [#allocation3 + $0x15], 32 }
 0x34c   :  { %2032 = vsyncadd [#allocation3 + $0x15], 4294967264 }
 0x34d   :  { %2033 = dma.done.wait [#allocation3 + $0x16], 32 }
 0x34e   :  { %2034 = vsyncadd [#allocation3 + $0x16], 4294967264 }
 0x34f   :  { %2035 = dma.done.wait [#allocation3 + $0x17], 32 }
 0x350   :  { %2036 = vsyncadd [#allocation3 + $0x17], 4294967264 }
 0x351   :  { %2037 = dma.done.wait [#allocation3 + $0x18], 32 }
 0x352   :  { %2038 = vsyncadd [#allocation3 + $0x18], 4294967264 }
 0x353   :  { %2039 = dma.done.wait [#allocation3 + $0x19], 32 }
 0x354   :  { %2040 = vsyncadd [#allocation3 + $0x19], 4294967264 }
 0x355   :  { %2041 = dma.done.wait [#allocation3 + $0x1a], 32 }
 0x356   :  { %2042 = vsyncadd [#allocation3 + $0x1a], 4294967264 }
 0x357   :  { %2043 = dma.done.wait [#allocation3 + $0x1b], 32 }
 0x358   :  { %2044 = vsyncadd [#allocation3 + $0x1b], 4294967264 }
 0x359   :  { %2045 = dma.done.wait [#allocation3 + $0x1c], 32 }
 0x35a   :  { %2046 = vsyncadd [#allocation3 + $0x1c], 4294967264 }
 0x35b   :  { %2047 = dma.done.wait [#allocation3 + $0x1d], 32 }
 0x35c   :  { %2048 = vsyncadd [#allocation3 + $0x1d], 4294967264 }
 0x35d   :  { %2049 = dma.done.wait [#allocation3 + $0x1e], 32 }
 0x35e   :  { %2050 = vsyncadd [#allocation3 + $0x1e], 4294967264 }
 0x35f   :  { %2051 = dma.done.wait [#allocation3 + $0x1f], 32 }
 0x360   :  { %2052 = vsyncadd [#allocation3 + $0x1f], 4294967264  ;;  %v572_v0 = vld [vmem:[#allocation6] sm:$0xff]  ;;  %v573_v1 = vld [vmem:[#allocation6 + $0x8] sm:$0xff]  ;;  %s2093_s2 = smov [#allocation9]  }
 0x361   :  { %v576_v2 = vld [vmem:[#allocation2] sm:$0xff]  ;;  %v577_v3 = vld [vmem:[#allocation2 + $0x8] sm:$0xff]  ;;  %v574_v5 = vld [vmem:[#allocation6 + $0x10] sm:$0xff]  ;;  %s625_s10 = sshll.u32 %s2093_s2, 4  ;;  %s626_s10 = int_to_ptr.vmem [resolvable:$true] %s625_s10 }
 0x362   :  { %v584_v4 = vadd.f32 %v576_v2, %v572_v0  ;;  %v575_v6 = vld [vmem:[#allocation6 + $0x18] sm:$0xff]  ;;  %v585_v7 = vadd.f32 %v577_v3, %v573_v1  ;;  %v578_v8 = vld [vmem:[#allocation2 + $0x10] sm:$0xff]  ;;  %v580_v10 = vld [vmem:[#allocation2 + $0x20] sm:$0xff]  ;;  %s1963_s0 = scalar_lea.vmem %s626_s10, 512  ;;  %p1968_p4 = scmp.lt.s32.totalorder %s626_s10, %s626_s10 }
 0x363   :  { %v579_v9 = vld [vmem:[#allocation2 + $0x18] sm:$0xff]  ;;  %v586_v11 = vadd.f32 %v578_v8, %v574_v5  ;;  %v581_v13 = vld [vmem:[#allocation2 + $0x28] sm:$0xff]  ;;  %v588_v14 = vadd.f32 %v580_v10, %v572_v0  ;;  %v582_v15 = vld [vmem:[#allocation2 + $0x30] sm:$0xff]  ;;  %p1964_p3 = scmp.ne.s32.totalorder %s626_s10, %s1963_s0  ;;  %p1969_p5 = scmp.lt.s32.totalorder %s1963_s0, %s1963_s0 }
 0x364   :  { %v587_v12 = vadd.f32 %v579_v9, %v575_v6  ;;  %v583_v16 = vld [vmem:[#allocation2 + $0x38] sm:$0xff]  ;;  %v1119_v17 = vpack.c.bf16 %v585_v7, %v584_v4  ;;  %v589_v18 = vadd.f32 %v581_v13, %v573_v1  ;;  %v590_v19 = vadd.f32 %v582_v15, %v574_v5 }
 0x365   :  { %v591_v20 = vadd.f32 %v583_v16, %v575_v6  ;;  %p1970_p6 = por %p1969_p5, %p1968_p4 }
 0x366   :  { %v1120_v21 = vpack.c.bf16 %v587_v12, %v586_v11  ;;  %616 = vst [vmem:[#allocation9] sm:$0xff] %v1119_v17  ;;  %v1121_v22 = vpack.c.bf16 %v589_v18, %v588_v14 }
 0x367   :  { %v1122_v23 = vpack.c.bf16 %v591_v20, %v590_v19  ;;  %p1971_p7 = pnand %p1970_p6, %p1964_p3 }
 0x368   :  { %617 = vst [vmem:[#allocation9 + $0x8] sm:$0xff] %v1120_v21  ;;  %618 = vst [vmem:[#allocation9 + $0x10] sm:$0xff] %v1121_v22 }
 0x369   :  { %619 = vst [vmem:[#allocation9 + $0x18] sm:$0xff] %v1122_v23 }
 0x36a   :  { %1974 = shalt.err (!%p1971_p7)
}
 0x36b   :  { %s1975_s19 = scalar_lea.hbm %s2739_s3, 512 }
 0x36c   :  { %p1976_p8 = scmp.ne.s32.totalorder %s2739_s3, %s1975_s19  ;;  %p1979_p9 = scmp.lt.u32.totalorder %s1975_s19, %s2739_s3 }
 0x36e   :  { %p1981_p10 = pnand %p1979_p9, %p1976_p8 }
 0x370   :  { %1984 = shalt.err (!%p1981_p10)
}
 0x371   :  { %s2094_s23 = smov 8  }
 0x372   :  { %631 = dma.vmem_to_hbm [thread:$0]  %s626_s10, 512, %s2739_s3, [#allocation8], %s2062_s8, %s2062_s8, %s2094_s23  }
 0x373   :  { %2053 = dma.done.wait [#allocation8], 512  }
 0x374   :  { %2054 = vsyncadd [#allocation8], 4294966784 }
 0x375   :  { %635 = vsyncpa [#allocation7], 1 }
 0x376   :  { %636 = vsyncpa [#allocation8], 1 }
 0x377   :  { %637 = vsyncmov [#allocation3] }
 0x37a   :  { %s638_s16 = vpop.sfrf %637 }
 0x37b   :  { %p1087_p11 = scmp.ne.s32.totalorder %s638_s16, 0 }
 0x37d   :  { %642 = shalt.err (%p1087_p11)  }
 0x37e   :  { %644 = vsyncmov [#allocation3 + $0x1] }
 0x381   :  { %s645_s17 = vpop.sfrf %644 }
 0x382   :  { %p1088_p12 = scmp.ne.s32.totalorder %s645_s17, 0 }
 0x384   :  { %649 = shalt.err (%p1088_p12)  }
 0x385   :  { %651 = vsyncmov [#allocation3 + $0x2] }
 0x388   :  { %s652_s26 = vpop.sfrf %651 }
 0x389   :  { %p1089_p13 = scmp.ne.s32.totalorder %s652_s26, 0 }
 0x38b   :  { %656 = shalt.err (%p1089_p13)  }
 0x38c   :  { %658 = vsyncmov [#allocation3 + $0x3] }
 0x38f   :  { %s659_s28 = vpop.sfrf %658 }
 0x390   :  { %p1090_p0 = scmp.ne.s32.totalorder %s659_s28, 0 }
 0x392   :  { %663 = shalt.err (%p1090_p0)  }
 0x393   :  { %665 = vsyncmov [#allocation3 + $0x4] }
 0x396   :  { %s666_s3 = vpop.sfrf %665 }
 0x397   :  { %p1091_p1 = scmp.ne.s32.totalorder %s666_s3, 0 }
 0x399   :  { %670 = shalt.err (%p1091_p1)  }
 0x39a   :  { %672 = vsyncmov [#allocation3 + $0x5] }
 0x39d   :  { %s673_s8 = vpop.sfrf %672 }
 0x39e   :  { %p1092_p2 = scmp.ne.s32.totalorder %s673_s8, 0 }
 0x3a0   :  { %677 = shalt.err (%p1092_p2)  }
 0x3a1   :  { %679 = vsyncmov [#allocation3 + $0x6] }
 0x3a4   :  { %s680_s6 = vpop.sfrf %679 }
 0x3a5   :  { %p1093_p3 = scmp.ne.s32.totalorder %s680_s6, 0 }
 0x3a7   :  { %684 = shalt.err (%p1093_p3)  }
 0x3a8   :  { %686 = vsyncmov [#allocation3 + $0x7] }
 0x3ab   :  { %s687_s24 = vpop.sfrf %686 }
 0x3ac   :  { %p1094_p4 = scmp.ne.s32.totalorder %s687_s24, 0 }
 0x3ae   :  { %691 = shalt.err (%p1094_p4)  }
 0x3af   :  { %693 = vsyncmov [#allocation3 + $0x8] }
 0x3b2   :  { %s694_s11 = vpop.sfrf %693 }
 0x3b3   :  { %p1095_p5 = scmp.ne.s32.totalorder %s694_s11, 0 }
 0x3b5   :  { %698 = shalt.err (%p1095_p5)  }
 0x3b6   :  { %700 = vsyncmov [#allocation3 + $0x9] }
 0x3b9   :  { %s701_s20 = vpop.sfrf %700 }
 0x3ba   :  { %p1096_p6 = scmp.ne.s32.totalorder %s701_s20, 0 }
 0x3bc   :  { %705 = shalt.err (%p1096_p6)  }
 0x3bd   :  { %707 = vsyncmov [#allocation3 + $0xa] }
 0x3c0   :  { %s708_s25 = vpop.sfrf %707 }
 0x3c1   :  { %p1097_p7 = scmp.ne.s32.totalorder %s708_s25, 0 }
 0x3c3   :  { %712 = shalt.err (%p1097_p7)  }
 0x3c4   :  { %714 = vsyncmov [#allocation3 + $0xb] }
 0x3c7   :  { %s715_s15 = vpop.sfrf %714 }
 0x3c8   :  { %p1098_p8 = scmp.ne.s32.totalorder %s715_s15, 0 }
 0x3ca   :  { %719 = shalt.err (%p1098_p8)  }
 0x3cb   :  { %721 = vsyncmov [#allocation3 + $0xc] }
 0x3ce   :  { %s722_s1 = vpop.sfrf %721 }
 0x3cf   :  { %p1099_p9 = scmp.ne.s32.totalorder %s722_s1, 0 }
 0x3d1   :  { %726 = shalt.err (%p1099_p9)  }
 0x3d2   :  { %728 = vsyncmov [#allocation3 + $0xd] }
 0x3d5   :  { %s729_s30 = vpop.sfrf %728 }
 0x3d6   :  { %p1100_p10 = scmp.ne.s32.totalorder %s729_s30, 0 }
 0x3d8   :  { %733 = shalt.err (%p1100_p10)  }
 0x3d9   :  { %735 = vsyncmov [#allocation3 + $0xe] }
 0x3dc   :  { %s736_s18 = vpop.sfrf %735 }
 0x3dd   :  { %p1101_p11 = scmp.ne.s32.totalorder %s736_s18, 0 }
 0x3df   :  { %740 = shalt.err (%p1101_p11)  }
 0x3e0   :  { %742 = vsyncmov [#allocation3 + $0xf] }
 0x3e3   :  { %s743_s27 = vpop.sfrf %742 }
 0x3e4   :  { %p1102_p12 = scmp.ne.s32.totalorder %s743_s27, 0 }
 0x3e6   :  { %747 = shalt.err (%p1102_p12)  }
 0x3e7   :  { %749 = vsyncmov [#allocation3 + $0x10] }
 0x3ea   :  { %s750_s29 = vpop.sfrf %749 }
 0x3eb   :  { %p1103_p13 = scmp.ne.s32.totalorder %s750_s29, 0 }
 0x3ed   :  { %754 = shalt.err (%p1103_p13)  }
 0x3ee   :  { %756 = vsyncmov [#allocation3 + $0x11] }
 0x3f1   :  { %s757_s5 = vpop.sfrf %756 }
 0x3f2   :  { %p1104_p0 = scmp.ne.s32.totalorder %s757_s5, 0 }
 0x3f4   :  { %761 = shalt.err (%p1104_p0)  }
 0x3f5   :  { %763 = vsyncmov [#allocation3 + $0x12] }
 0x3f8   :  { %s764_s2 = vpop.sfrf %763 }
 0x3f9   :  { %p1105_p1 = scmp.ne.s32.totalorder %s764_s2, 0 }
 0x3fb   :  { %768 = shalt.err (%p1105_p1)  }
 0x3fc   :  { %770 = vsyncmov [#allocation3 + $0x13] }
 0x3ff   :  { %s771_s10 = vpop.sfrf %770 }
 0x400   :  { %p1106_p2 = scmp.ne.s32.totalorder %s771_s10, 0 }
 0x402   :  { %775 = shalt.err (%p1106_p2)  }
 0x403   :  { %777 = vsyncmov [#allocation3 + $0x14] }
 0x406   :  { %s778_s0 = vpop.sfrf %777 }
 0x407   :  { %p1107_p3 = scmp.ne.s32.totalorder %s778_s0, 0 }
 0x409   :  { %782 = shalt.err (%p1107_p3)  }
 0x40a   :  { %784 = vsyncmov [#allocation3 + $0x15] }
 0x40d   :  { %s785_s7 = vpop.sfrf %784 }
 0x40e   :  { %p1108_p4 = scmp.ne.s32.totalorder %s785_s7, 0 }
 0x410   :  { %789 = shalt.err (%p1108_p4)  }
 0x411   :  { %791 = vsyncmov [#allocation3 + $0x16] }
 0x414   :  { %s792_s9 = vpop.sfrf %791 }
 0x415   :  { %p1109_p5 = scmp.ne.s32.totalorder %s792_s9, 0 }
 0x417   :  { %796 = shalt.err (%p1109_p5)  }
 0x418   :  { %798 = vsyncmov [#allocation3 + $0x17] }
 0x41b   :  { %s799_s19 = vpop.sfrf %798 }
 0x41c   :  { %p1110_p6 = scmp.ne.s32.totalorder %s799_s19, 0 }
 0x41e   :  { %803 = shalt.err (%p1110_p6)  }
 0x41f   :  { %805 = vsyncmov [#allocation3 + $0x18] }
 0x422   :  { %s806_s4 = vpop.sfrf %805 }
 0x423   :  { %p1111_p7 = scmp.ne.s32.totalorder %s806_s4, 0 }
 0x425   :  { %810 = shalt.err (%p1111_p7)  }
 0x426   :  { %812 = vsyncmov [#allocation3 + $0x19] }
 0x429   :  { %s813_s22 = vpop.sfrf %812 }
 0x42a   :  { %p1112_p8 = scmp.ne.s32.totalorder %s813_s22, 0 }
 0x42c   :  { %817 = shalt.err (%p1112_p8)  }
 0x42d   :  { %819 = vsyncmov [#allocation3 + $0x1a] }
 0x430   :  { %s820_s21 = vpop.sfrf %819 }
 0x431   :  { %p1113_p9 = scmp.ne.s32.totalorder %s820_s21, 0 }
 0x433   :  { %824 = shalt.err (%p1113_p9)  }
 0x434   :  { %826 = vsyncmov [#allocation3 + $0x1b] }
 0x437   :  { %s827_s14 = vpop.sfrf %826 }
 0x438   :  { %p1114_p10 = scmp.ne.s32.totalorder %s827_s14, 0 }
 0x43a   :  { %831 = shalt.err (%p1114_p10)  }
 0x43b   :  { %833 = vsyncmov [#allocation3 + $0x1c] }
 0x43e   :  { %s834_s23 = vpop.sfrf %833 }
 0x43f   :  { %p1115_p11 = scmp.ne.s32.totalorder %s834_s23, 0 }
 0x441   :  { %838 = shalt.err (%p1115_p11)  }
 0x442   :  { %840 = vsyncmov [#allocation3 + $0x1d] }
 0x445   :  { %s841_s12 = vpop.sfrf %840 }
 0x446   :  { %p1116_p12 = scmp.ne.s32.totalorder %s841_s12, 0 }
 0x448   :  { %845 = shalt.err (%p1116_p12)  }
 0x449   :  { %847 = vsyncmov [#allocation3 + $0x1e] }
 0x44c   :  { %s848_s13 = vpop.sfrf %847 }
 0x44d   :  { %p1117_p13 = scmp.ne.s32.totalorder %s848_s13, 0 }
 0x44f   :  { %852 = shalt.err (%p1117_p13)  }
 0x450   :  { %854 = vsyncmov [#allocation3 + $0x1f] }
 0x453   :  { %s855_s16 = vpop.sfrf %854 }
 0x454   :  { %p1118_p0 = scmp.ne.s32.totalorder %s855_s16, 0 }
 0x456   :  { %859 = shalt.err (%p1118_p0)  }

</bundles_post_ra>
